<compile_context>
chip_gen: v7x
topology: tpu7x:2x2x1
jax: 0.10.0
libtpu: 0.0.40
codegen_flags: <defaults>
</compile_context>

<pallas_src>
import functools

import numpy as np
import jax
import jax.numpy as jnp
from jax.experimental import pallas as pl
from jax.experimental.pallas import tpu as pltpu


# ------------------------- fused decoder-block kernel ----------------------- #

def _decoder_block_kernel(
    x_ref, ctx_ref,
    sa_wqkv_ref, sa_bqkv_ref, sa_wo_ref, sa_bo_ref, ln1_g_ref, ln1_b_ref,
    ca_wq_ref, ca_bq_ref, ca_wkv_ref, ca_bkv_ref, ca_wo_ref, ca_bo_ref,
    ln2_g_ref, ln2_b_ref,
    w1_ref, b1_ref, w2_ref, b2_ref, ln3_g_ref, ln3_b_ref,
    o_ref, *, num_heads, eps):
    """One full post-norm decoder block on a (TB, Sq, D) batch tile."""
    TB, Sq, D = x_ref.shape
    Sk = ctx_ref.shape[1]
    Dh = D // num_heads
    f32 = jnp.float32

    # Flatten batch*seq into rows for the weight matmuls / LayerNorms.
    # (Sq, Sk are sublane-aligned at the test sizes -> layout-preserving.)
    x = x_ref[...].astype(f32).reshape(TB * Sq, D)
    c = ctx_ref[...].astype(f32).reshape(TB * Sk, D)

    def layer_norm(y, g_ref, b_ref):
        mu = jnp.mean(y, axis=-1, keepdims=True)
        var = jnp.mean(jnp.square(y - mu), axis=-1, keepdims=True)
        return (y - mu) * jax.lax.rsqrt(var + eps) * g_ref[...] + b_ref[...]

    def attention(q, k, v, s_kv, wo_ref, bo_ref):
        # q: (TB*Sq, D); k, v: (TB*s_kv, D).  Each head's (p @ v_h) is pushed
        # straight through its rows of W_o and accumulated into one (rows, D)
        # f32 accumulator -> no lane-offset concat, clean MXU pushes.
        q3 = q.reshape(TB, Sq, D)
        k3 = k.reshape(TB, s_kv, D)
        v3 = v.reshape(TB, s_kv, D)
        wo = wo_ref[...].astype(f32)                       # (D, D), VMEM-resident
        acc = jnp.zeros((TB * Sq, D), f32)
        for h in range(num_heads):
            lo, hi = h * Dh, (h + 1) * Dh
            s = jnp.einsum('bqd,bkd->bqk', q3[..., lo:hi], k3[..., lo:hi],
                           preferred_element_type=f32)     # (TB, Sq, s_kv)
            m = jnp.max(s, axis=-1, keepdims=True)
            p = jnp.exp(s - m)
            p = p * pl.reciprocal(jnp.sum(p, axis=-1, keepdims=True), approx=True)
            av = jnp.einsum('bqk,bkd->bqd', p, v3[..., lo:hi],
                            preferred_element_type=f32)    # (TB, Sq, Dh)
            acc = acc + jnp.dot(av.reshape(TB * Sq, Dh), wo[lo:hi, :],
                                preferred_element_type=f32)
        return acc + bo_ref[...]

    # --- self-attention (1/sqrt(Dh) pre-folded into the Q slice of W_qkv) ---
    qkv = jnp.dot(x, sa_wqkv_ref[...], preferred_element_type=f32) + sa_bqkv_ref[...]
    sa = attention(qkv[:, :D], qkv[:, D:2 * D], qkv[:, 2 * D:], Sq,
                   sa_wo_ref, sa_bo_ref)
    x = layer_norm(x + sa, ln1_g_ref, ln1_b_ref)

    # --- cross-attention (Q from x, fused KV projection of ctx) ---
    q = jnp.dot(x, ca_wq_ref[...], preferred_element_type=f32) + ca_bq_ref[...]
    kv = jnp.dot(c, ca_wkv_ref[...], preferred_element_type=f32) + ca_bkv_ref[...]
    ca = attention(q, kv[:, :D], kv[:, D:], Sk, ca_wo_ref, ca_bo_ref)
    x = layer_norm(x + ca, ln2_g_ref, ln2_b_ref)

    # --- FFN: matmul -> GELU -> matmul, fused residual + LN ---
    h = jnp.dot(x, w1_ref[...], preferred_element_type=f32) + b1_ref[...]
    # TODO(synk): PyTorch nn.GELU defaults to exact erf; tanh approximation kept
    # here (EUP-friendly, matches the previously validated lowering path).
    h = jax.nn.gelu(h, approximate=True)
    ff = jnp.dot(h, w2_ref[...], preferred_element_type=f32) + b2_ref[...]
    x = layer_norm(x + ff, ln3_g_ref, ln3_b_ref)

    o_ref[...] = x.reshape(TB, Sq, D).astype(o_ref.dtype)


# ----------------------------- kernel wrapper ------------------------------- #

def _batch_tile(B, S, max_rows=512):
    """Largest divisor of B so each grid step carries TB*S rows (<= max_rows).

    Targets >=128 rows per step where B allows (fills MXU sublanes and
    amortizes the ~0.35us/step overhead)."""
    best = 1
    for t in range(1, B + 1):
        if B % t == 0 and t * S <= max(max_rows, S):
            best = t
    return best


def _vmem_limit_bytes(TB, Sq, Sk, D, weights, act_itemsize=4):
    act_in = (TB * Sq * D + TB * Sk * D) * act_itemsize
    act_out = TB * Sq * D * act_itemsize
    w_bytes = sum(int(np.prod(w.shape)) * w.dtype.itemsize for w in weights)
    # Streamed activation blocks are double-buffered by the pipeline; constant
    # index-map weights are budgeted at 2x (default buffering).
    # TODO(synk): pipeline_mode=pl.Buffered(1) on the weight BlockSpecs would
    # halve the weight budget (matters on v7x's 64 MiB VMEM at large D); left
    # out until verified on the target jax build.
    intermediates = TB * Sq * (10 * D) * 4   # qkv(3D)+kv(2D)+ffn hidden(4D)+slack, f32
    est = 2 * (act_in + act_out) + 2 * w_bytes + intermediates + (2 << 20)
    return int(min(max(est, 4 << 20), 64 << 20))   # cap at v7x physical VMEM


def decoder_block(x, ctx, p, num_heads, eps=1e-5):
    """One fused pallas_call per decoder block.  x: (B,Sq,D)  ctx: (B,Sk,D)."""
    B, Sq, D = x.shape
    Sk = ctx.shape[1]
    assert D % num_heads == 0
    TB = _batch_tile(B, max(Sq, Sk))
    grid = (B // TB,)

    weights = [
        p["sa_wqkv"], p["sa_bqkv"], p["sa_wo"], p["sa_bo"], p["ln1_g"], p["ln1_b"],
        p["ca_wq"], p["ca_bq"], p["ca_wkv"], p["ca_bkv"], p["ca_wo"], p["ca_bo"],
        p["ln2_g"], p["ln2_b"],
        p["w1"], p["b1"], p["w2"], p["b2"], p["ln3_g"], p["ln3_b"],
    ]

    in_specs = [
        pl.BlockSpec((TB, Sq, D), lambda i: (i, 0, 0)),   # x batch tile (streamed)
        pl.BlockSpec((TB, Sk, D), lambda i: (i, 0, 0)),   # ctx batch tile (streamed)
    ] + [pl.BlockSpec(w.shape, lambda i: (0, 0)) for w in weights]  # weights resident

    return pl.pallas_call(
        functools.partial(_decoder_block_kernel, num_heads=num_heads, eps=eps),
        out_shape=jax.ShapeDtypeStruct((B, Sq, D), x.dtype),
        grid=grid,
        in_specs=in_specs,
        out_specs=pl.BlockSpec((TB, Sq, D), lambda i: (i, 0, 0)),
        compiler_params=pltpu.CompilerParams(
            dimension_semantics=("parallel",),
            vmem_limit_bytes=_vmem_limit_bytes(TB, Sq, Sk, D, weights)),
    )(x, ctx, *weights)


# ----------------------------- model composition ---------------------------- #

def sinusoidal_pe(seq_len, dim):
    # TODO(synk): interleaved sin/cos assumed; verify against reference
    # PositionalEncoding layout ([sin|cos] concat variant exists).
    pos = np.arange(seq_len, dtype=np.float64)[:, None]
    i = np.arange(dim // 2, dtype=np.float64)[None, :]
    angle = pos / np.power(10000.0, 2.0 * i / dim)
    pe = np.zeros((seq_len, dim), dtype=np.float32)
    pe[:, 0::2] = np.sin(angle)
    pe[:, 1::2] = np.cos(angle)
    return jnp.asarray(pe)


def spatial_encoder_forward(x, ctx, params, num_heads):
    """x: (B, Q, D), ctx: (B, L, D) -> (B, Q, D)   (layer_type='decoder')"""
    B, Q, D = x.shape
    pe = sinusoidal_pe(Q, D).astype(x.dtype)
    x_embed = x + pe[None, :, :]   # PE add in plain XLA (too small for a pallas_call)
    for layer_p in params["layers"]:
        x_embed = decoder_block(x_embed, ctx, layer_p, num_heads)
    return x_embed


# ----------------------------- parameter init ------------------------------- #

def init_params(key, embed_dim, num_heads, num_layer, mlp_ratio=4,
                dtype=jnp.float32):
    """Weights for the Pallas kernel.

    The attention scale 1/sqrt(Dh) is folded into the Q-projection weights and
    biases (sa_wqkv Q-columns, ca_wq) — when importing PyTorch weights the same
    folding must be applied.  Biases / LN params are stored as (1, N) rows.
    dtype=bf16 halves resident-weight VMEM and HBM traffic at production D.
    """
    D = embed_dim
    scale = 1.0 / float(np.sqrt(D // num_heads))

    def lin(k, fan_in, fan_out):
        return (0.02 * jax.random.normal(k, (fan_in, fan_out), jnp.float32),
                jnp.zeros((1, fan_out), jnp.float32))

    def ln_pair():
        return jnp.ones((1, D), jnp.float32), jnp.zeros((1, D), jnp.float32)

    layers = []
    for _ in range(num_layer):
        keys = jax.random.split(key, 8)
        key = keys[0]

        sa_wqkv, sa_bqkv = lin(keys[1], D, 3 * D)
        col_scale = jnp.concatenate([jnp.full((D,), scale, jnp.float32),
                                     jnp.ones((2 * D,), jnp.float32)])
        sa_wqkv = sa_wqkv * col_scale[None, :]
        sa_bqkv = sa_bqkv * col_scale[None, :]
        sa_wo, sa_bo = lin(keys[2], D, D)

        ca_wq, ca_bq = lin(keys[3], D, D)
        ca_wq, ca_bq = ca_wq * scale, ca_bq * scale
        ca_wkv, ca_bkv = lin(keys[4], D, 2 * D)
        ca_wo, ca_bo = lin(keys[5], D, D)

        w1, b1 = lin(keys[6], D, mlp_ratio * D)
        w2, b2 = lin(keys[7], mlp_ratio * D, D)

        ln1_g, ln1_b = ln_pair()
        ln2_g, ln2_b = ln_pair()
        ln3_g, ln3_b = ln_pair()

        layer = dict(
            sa_wqkv=sa_wqkv, sa_bqkv=sa_bqkv, sa_wo=sa_wo, sa_bo=sa_bo,
            ln1_g=ln1_g, ln1_b=ln1_b,
            ca_wq=ca_wq, ca_bq=ca_bq, ca_wkv=ca_wkv, ca_bkv=ca_bkv,
            ca_wo=ca_wo, ca_bo=ca_bo,
            ln2_g=ln2_g, ln2_b=ln2_b,
            w1=w1, b1=b1, w2=w2, b2=b2,
            ln3_g=ln3_g, ln3_b=ln3_b,
        )
        layers.append({k: v.astype(dtype) for k, v in layer.items()})
    return dict(layers=layers)


# ---------------------------------- main ------------------------------------ #

if __name__ == "__main__":
    B, Q, L, D, H, NL = 2, 8, 8, 32, 4, 2

    key = jax.random.PRNGKey(0)
    kx, kc, kp = jax.random.split(key, 3)
    x = jax.random.normal(kx, (B, Q, D), jnp.float32)
    ctx = jax.random.normal(kc, (B, L, D), jnp.float32)
    params = init_params(kp, D, H, NL)

    fwd = jax.jit(functools.partial(spatial_encoder_forward, num_heads=H))
    y = fwd(x, ctx, params)
    jax.block_until_ready(y)
    assert y.shape == (B, Q, D)
    assert bool(jnp.all(jnp.isfinite(y)))
    print("KERNEL_OK")
</pallas_src>

<mosaic_0001>
module attributes {stable_mosaic.version = 11 : i64} {
  func.func @_decoder_block_kernel(%arg0: i32, %arg1: memref<2x8x32xf32, #tpu.memory_space<vmem>>, %arg2: memref<2x8x32xf32, #tpu.memory_space<vmem>>, %arg3: memref<32x96xf32, #tpu.memory_space<vmem>>, %arg4: memref<1x96xf32, #tpu.memory_space<vmem>>, %arg5: memref<32x32xf32, #tpu.memory_space<vmem>>, %arg6: memref<1x32xf32, #tpu.memory_space<vmem>>, %arg7: memref<1x32xf32, #tpu.memory_space<vmem>>, %arg8: memref<1x32xf32, #tpu.memory_space<vmem>>, %arg9: memref<32x32xf32, #tpu.memory_space<vmem>>, %arg10: memref<1x32xf32, #tpu.memory_space<vmem>>, %arg11: memref<32x64xf32, #tpu.memory_space<vmem>>, %arg12: memref<1x64xf32, #tpu.memory_space<vmem>>, %arg13: memref<32x32xf32, #tpu.memory_space<vmem>>, %arg14: memref<1x32xf32, #tpu.memory_space<vmem>>, %arg15: memref<1x32xf32, #tpu.memory_space<vmem>>, %arg16: memref<1x32xf32, #tpu.memory_space<vmem>>, %arg17: memref<32x128xf32, #tpu.memory_space<vmem>>, %arg18: memref<1x128xf32, #tpu.memory_space<vmem>>, %arg19: memref<128x32xf32, #tpu.memory_space<vmem>>, %arg20: memref<1x32xf32, #tpu.memory_space<vmem>>, %arg21: memref<1x32xf32, #tpu.memory_space<vmem>>, %arg22: memref<1x32xf32, #tpu.memory_space<vmem>>, %arg23: memref<2x8x32xf32, #tpu.memory_space<vmem>>) attributes {dimension_semantics = [#tpu.dimension_semantics<parallel>], iteration_bounds = array<i64: 1>, scalar_prefetch = 0 : i64, scratch_operands = 0 : i64, tpu.core_type = #tpu.core_type<tc>, window_params = [{transform_indices = @transform_0, window_bounds = array<i64: 2, 8, 32>}, {transform_indices = @transform_1, window_bounds = array<i64: 2, 8, 32>}, {pipeline_mode = #tpu.pipeline_mode<synchronous>, transform_indices = @transform_2, window_bounds = array<i64: 32, 96>}, {pipeline_mode = #tpu.pipeline_mode<synchronous>, transform_indices = @transform_3, window_bounds = array<i64: 1, 96>}, {pipeline_mode = #tpu.pipeline_mode<synchronous>, transform_indices = @transform_4, window_bounds = array<i64: 32, 32>}, {pipeline_mode = #tpu.pipeline_mode<synchronous>, transform_indices = @transform_5, window_bounds = array<i64: 1, 32>}, {pipeline_mode = #tpu.pipeline_mode<synchronous>, transform_indices = @transform_6, window_bounds = array<i64: 1, 32>}, {pipeline_mode = #tpu.pipeline_mode<synchronous>, transform_indices = @transform_7, window_bounds = array<i64: 1, 32>}, {pipeline_mode = #tpu.pipeline_mode<synchronous>, transform_indices = @transform_8, window_bounds = array<i64: 32, 32>}, {pipeline_mode = #tpu.pipeline_mode<synchronous>, transform_indices = @transform_9, window_bounds = array<i64: 1, 32>}, {pipeline_mode = #tpu.pipeline_mode<synchronous>, transform_indices = @transform_10, window_bounds = array<i64: 32, 64>}, {pipeline_mode = #tpu.pipeline_mode<synchronous>, transform_indices = @transform_11, window_bounds = array<i64: 1, 64>}, {pipeline_mode = #tpu.pipeline_mode<synchronous>, transform_indices = @transform_12, window_bounds = array<i64: 32, 32>}, {pipeline_mode = #tpu.pipeline_mode<synchronous>, transform_indices = @transform_13, window_bounds = array<i64: 1, 32>}, {pipeline_mode = #tpu.pipeline_mode<synchronous>, transform_indices = @transform_14, window_bounds = array<i64: 1, 32>}, {pipeline_mode = #tpu.pipeline_mode<synchronous>, transform_indices = @transform_15, window_bounds = array<i64: 1, 32>}, {pipeline_mode = #tpu.pipeline_mode<synchronous>, transform_indices = @transform_16, window_bounds = array<i64: 32, 128>}, {pipeline_mode = #tpu.pipeline_mode<synchronous>, transform_indices = @transform_17, window_bounds = array<i64: 1, 128>}, {pipeline_mode = #tpu.pipeline_mode<synchronous>, transform_indices = @transform_18, window_bounds = array<i64: 128, 32>}, {pipeline_mode = #tpu.pipeline_mode<synchronous>, transform_indices = @transform_19, window_bounds = array<i64: 1, 32>}, {pipeline_mode = #tpu.pipeline_mode<synchronous>, transform_indices = @transform_20, window_bounds = array<i64: 1, 32>}, {pipeline_mode = #tpu.pipeline_mode<synchronous>, transform_indices = @transform_21, window_bounds = array<i64: 1, 32>}, {transform_indices = @transform_22, window_bounds = array<i64: 2, 8, 32>}]} {
    %c0 = arith.constant 0 : index
    %c0_0 = arith.constant 0 : index
    %c0_1 = arith.constant 0 : index
    %0 = vector.load %arg1[%c0, %c0_0, %c0_1] : memref<2x8x32xf32, #tpu.memory_space<vmem>>, vector<2x8x32xf32>
    %1 = vector.shape_cast %0 : vector<2x8x32xf32> to vector<16x32xf32>
    %c0_2 = arith.constant 0 : index
    %c0_3 = arith.constant 0 : index
    %c0_4 = arith.constant 0 : index
    %2 = vector.load %arg2[%c0_2, %c0_3, %c0_4] : memref<2x8x32xf32, #tpu.memory_space<vmem>>, vector<2x8x32xf32>
    %3 = vector.shape_cast %2 : vector<2x8x32xf32> to vector<16x32xf32>
    %c0_5 = arith.constant 0 : index
    %c0_6 = arith.constant 0 : index
    %4 = vector.load %arg3[%c0_5, %c0_6] : memref<32x96xf32, #tpu.memory_space<vmem>>, vector<32x96xf32>
    %cst = arith.constant dense<0.000000e+00> : vector<16x96xf32>
    %5 = tpu.matmul %1, %4, %cst {dimension_numbers = #tpu.dot_dimension_numbers<[1], [0], [0], [1], [0, 0, 1, 1], [], []>} : vector<16x32xf32>, vector<32x96xf32>, vector<16x96xf32> -> vector<16x96xf32>
    %c0_7 = arith.constant 0 : index
    %c0_8 = arith.constant 0 : index
    %6 = vector.load %arg4[%c0_7, %c0_8] : memref<1x96xf32, #tpu.memory_space<vmem>>, vector<1x96xf32>
    %7 = vector.broadcast %6 : vector<1x96xf32> to vector<16x96xf32>
    %8 = arith.addf %5, %7 : vector<16x96xf32>
    %9 = vector.extract_strided_slice %8 {offsets = [0, 0], sizes = [16, 32], strides = [1, 1]} : vector<16x96xf32> to vector<16x32xf32>
    %10 = vector.extract_strided_slice %8 {offsets = [0, 32], sizes = [16, 32], strides = [1, 1]} : vector<16x96xf32> to vector<16x32xf32>
    %11 = vector.extract_strided_slice %8 {offsets = [0, 64], sizes = [16, 32], strides = [1, 1]} : vector<16x96xf32> to vector<16x32xf32>
    %12 = vector.shape_cast %9 : vector<16x32xf32> to vector<2x8x32xf32>
    %13 = vector.shape_cast %10 : vector<16x32xf32> to vector<2x8x32xf32>
    %14 = vector.shape_cast %11 : vector<16x32xf32> to vector<2x8x32xf32>
    %c0_9 = arith.constant 0 : index
    %c0_10 = arith.constant 0 : index
    %15 = vector.load %arg5[%c0_9, %c0_10] : memref<32x32xf32, #tpu.memory_space<vmem>>, vector<32x32xf32>
    %cst_11 = arith.constant 0.000000e+00 : f32
    %16 = vector.broadcast %cst_11 : f32 to vector<16x32xf32>
    %17 = vector.extract_strided_slice %12 {offsets = [0, 0, 0], sizes = [2, 8, 8], strides = [1, 1, 1]} : vector<2x8x32xf32> to vector<2x8x8xf32>
    %18 = vector.extract_strided_slice %13 {offsets = [0, 0, 0], sizes = [2, 8, 8], strides = [1, 1, 1]} : vector<2x8x32xf32> to vector<2x8x8xf32>
    "tpu.trace_start"() <{level = 10 : i32, message = "bqd,bkd->bqk"}> : () -> ()
    %cst_12 = arith.constant dense<0.000000e+00> : vector<2x8x8xf32>
    %19 = tpu.matmul %17, %18, %cst_12 {dimension_numbers = #tpu.dot_dimension_numbers<[2], [2], [1], [1], [0, 0, 0, 1, 1, 1], [0], [0]>} : vector<2x8x8xf32>, vector<2x8x8xf32>, vector<2x8x8xf32> -> vector<2x8x8xf32>
    "tpu.trace_stop"() : () -> ()
    %cst_13 = arith.constant dense<0xFF800000> : vector<2x8xf32>
    %20 = vector.multi_reduction <maximumf>, %19, %cst_13 [2] : vector<2x8x8xf32> to vector<2x8xf32>
    %21 = vector.shape_cast %20 : vector<2x8xf32> to vector<2x8x1xf32>
    %22 = vector.broadcast %21 : vector<2x8x1xf32> to vector<2x8x8xf32>
    %23 = arith.subf %19, %22 : vector<2x8x8xf32>
    %24 = math.exp %23 : vector<2x8x8xf32>
    %cst_14 = arith.constant dense<0.000000e+00> : vector<2x8xf32>
    %25 = vector.multi_reduction <add>, %24, %cst_14 [2] : vector<2x8x8xf32> to vector<2x8xf32>
    %26 = vector.shape_cast %25 : vector<2x8xf32> to vector<2x8x1xf32>
    %27 = tpu.reciprocal %26 {approx = true} : vector<2x8x1xf32> -> vector<2x8x1xf32>
    %28 = vector.broadcast %27 : vector<2x8x1xf32> to vector<2x8x8xf32>
    %29 = arith.mulf %24, %28 : vector<2x8x8xf32>
    %30 = vector.extract_strided_slice %14 {offsets = [0, 0, 0], sizes = [2, 8, 8], strides = [1, 1, 1]} : vector<2x8x32xf32> to vector<2x8x8xf32>
    "tpu.trace_start"() <{level = 10 : i32, message = "bqk,bkd->bqd"}> : () -> ()
    %cst_15 = arith.constant dense<0.000000e+00> : vector<2x8x8xf32>
    %31 = tpu.matmul %29, %30, %cst_15 {dimension_numbers = #tpu.dot_dimension_numbers<[2], [1], [1], [2], [0, 0, 0, 1, 1, 2], [0], [0]>} : vector<2x8x8xf32>, vector<2x8x8xf32>, vector<2x8x8xf32> -> vector<2x8x8xf32>
    "tpu.trace_stop"() : () -> ()
    %32 = vector.shape_cast %31 : vector<2x8x8xf32> to vector<16x8xf32>
    %33 = vector.extract_strided_slice %15 {offsets = [0, 0], sizes = [8, 32], strides = [1, 1]} : vector<32x32xf32> to vector<8x32xf32>
    %cst_16 = arith.constant dense<0.000000e+00> : vector<16x32xf32>
    %34 = tpu.matmul %32, %33, %cst_16 {dimension_numbers = #tpu.dot_dimension_numbers<[1], [0], [0], [1], [0, 0, 1, 1], [], []>} : vector<16x8xf32>, vector<8x32xf32>, vector<16x32xf32> -> vector<16x32xf32>
    %35 = arith.addf %16, %34 : vector<16x32xf32>
    %36 = vector.extract_strided_slice %12 {offsets = [0, 0, 8], sizes = [2, 8, 8], strides = [1, 1, 1]} : vector<2x8x32xf32> to vector<2x8x8xf32>
    %37 = vector.extract_strided_slice %13 {offsets = [0, 0, 8], sizes = [2, 8, 8], strides = [1, 1, 1]} : vector<2x8x32xf32> to vector<2x8x8xf32>
    "tpu.trace_start"() <{level = 10 : i32, message = "bqd,bkd->bqk"}> : () -> ()
    %cst_17 = arith.constant dense<0.000000e+00> : vector<2x8x8xf32>
    %38 = tpu.matmul %36, %37, %cst_17 {dimension_numbers = #tpu.dot_dimension_numbers<[2], [2], [1], [1], [0, 0, 0, 1, 1, 1], [0], [0]>} : vector<2x8x8xf32>, vector<2x8x8xf32>, vector<2x8x8xf32> -> vector<2x8x8xf32>
    "tpu.trace_stop"() : () -> ()
    %cst_18 = arith.constant dense<0xFF800000> : vector<2x8xf32>
    %39 = vector.multi_reduction <maximumf>, %38, %cst_18 [2] : vector<2x8x8xf32> to vector<2x8xf32>
    %40 = vector.shape_cast %39 : vector<2x8xf32> to vector<2x8x1xf32>
    %41 = vector.broadcast %40 : vector<2x8x1xf32> to vector<2x8x8xf32>
    %42 = arith.subf %38, %41 : vector<2x8x8xf32>
    %43 = math.exp %42 : vector<2x8x8xf32>
    %cst_19 = arith.constant dense<0.000000e+00> : vector<2x8xf32>
    %44 = vector.multi_reduction <add>, %43, %cst_19 [2] : vector<2x8x8xf32> to vector<2x8xf32>
    %45 = vector.shape_cast %44 : vector<2x8xf32> to vector<2x8x1xf32>
    %46 = tpu.reciprocal %45 {approx = true} : vector<2x8x1xf32> -> vector<2x8x1xf32>
    %47 = vector.broadcast %46 : vector<2x8x1xf32> to vector<2x8x8xf32>
    %48 = arith.mulf %43, %47 : vector<2x8x8xf32>
    %49 = vector.extract_strided_slice %14 {offsets = [0, 0, 8], sizes = [2, 8, 8], strides = [1, 1, 1]} : vector<2x8x32xf32> to vector<2x8x8xf32>
    "tpu.trace_start"() <{level = 10 : i32, message = "bqk,bkd->bqd"}> : () -> ()
    %cst_20 = arith.constant dense<0.000000e+00> : vector<2x8x8xf32>
    %50 = tpu.matmul %48, %49, %cst_20 {dimension_numbers = #tpu.dot_dimension_numbers<[2], [1], [1], [2], [0, 0, 0, 1, 1, 2], [0], [0]>} : vector<2x8x8xf32>, vector<2x8x8xf32>, vector<2x8x8xf32> -> vector<2x8x8xf32>
    "tpu.trace_stop"() : () -> ()
    %51 = vector.shape_cast %50 : vector<2x8x8xf32> to vector<16x8xf32>
    %52 = vector.extract_strided_slice %15 {offsets = [8, 0], sizes = [8, 32], strides = [1, 1]} : vector<32x32xf32> to vector<8x32xf32>
    %cst_21 = arith.constant dense<0.000000e+00> : vector<16x32xf32>
    %53 = tpu.matmul %51, %52, %cst_21 {dimension_numbers = #tpu.dot_dimension_numbers<[1], [0], [0], [1], [0, 0, 1, 1], [], []>} : vector<16x8xf32>, vector<8x32xf32>, vector<16x32xf32> -> vector<16x32xf32>
    %54 = arith.addf %35, %53 : vector<16x32xf32>
    %55 = vector.extract_strided_slice %12 {offsets = [0, 0, 16], sizes = [2, 8, 8], strides = [1, 1, 1]} : vector<2x8x32xf32> to vector<2x8x8xf32>
    %56 = vector.extract_strided_slice %13 {offsets = [0, 0, 16], sizes = [2, 8, 8], strides = [1, 1, 1]} : vector<2x8x32xf32> to vector<2x8x8xf32>
    "tpu.trace_start"() <{level = 10 : i32, message = "bqd,bkd->bqk"}> : () -> ()
    %cst_22 = arith.constant dense<0.000000e+00> : vector<2x8x8xf32>
    %57 = tpu.matmul %55, %56, %cst_22 {dimension_numbers = #tpu.dot_dimension_numbers<[2], [2], [1], [1], [0, 0, 0, 1, 1, 1], [0], [0]>} : vector<2x8x8xf32>, vector<2x8x8xf32>, vector<2x8x8xf32> -> vector<2x8x8xf32>
    "tpu.trace_stop"() : () -> ()
    %cst_23 = arith.constant dense<0xFF800000> : vector<2x8xf32>
    %58 = vector.multi_reduction <maximumf>, %57, %cst_23 [2] : vector<2x8x8xf32> to vector<2x8xf32>
    %59 = vector.shape_cast %58 : vector<2x8xf32> to vector<2x8x1xf32>
    %60 = vector.broadcast %59 : vector<2x8x1xf32> to vector<2x8x8xf32>
    %61 = arith.subf %57, %60 : vector<2x8x8xf32>
    %62 = math.exp %61 : vector<2x8x8xf32>
    %cst_24 = arith.constant dense<0.000000e+00> : vector<2x8xf32>
    %63 = vector.multi_reduction <add>, %62, %cst_24 [2] : vector<2x8x8xf32> to vector<2x8xf32>
    %64 = vector.shape_cast %63 : vector<2x8xf32> to vector<2x8x1xf32>
    %65 = tpu.reciprocal %64 {approx = true} : vector<2x8x1xf32> -> vector<2x8x1xf32>
    %66 = vector.broadcast %65 : vector<2x8x1xf32> to vector<2x8x8xf32>
    %67 = arith.mulf %62, %66 : vector<2x8x8xf32>
    %68 = vector.extract_strided_slice %14 {offsets = [0, 0, 16], sizes = [2, 8, 8], strides = [1, 1, 1]} : vector<2x8x32xf32> to vector<2x8x8xf32>
    "tpu.trace_start"() <{level = 10 : i32, message = "bqk,bkd->bqd"}> : () -> ()
    %cst_25 = arith.constant dense<0.000000e+00> : vector<2x8x8xf32>
    %69 = tpu.matmul %67, %68, %cst_25 {dimension_numbers = #tpu.dot_dimension_numbers<[2], [1], [1], [2], [0, 0, 0, 1, 1, 2], [0], [0]>} : vector<2x8x8xf32>, vector<2x8x8xf32>, vector<2x8x8xf32> -> vector<2x8x8xf32>
    "tpu.trace_stop"() : () -> ()
    %70 = vector.shape_cast %69 : vector<2x8x8xf32> to vector<16x8xf32>
    %71 = vector.extract_strided_slice %15 {offsets = [16, 0], sizes = [8, 32], strides = [1, 1]} : vector<32x32xf32> to vector<8x32xf32>
    %cst_26 = arith.constant dense<0.000000e+00> : vector<16x32xf32>
    %72 = tpu.matmul %70, %71, %cst_26 {dimension_numbers = #tpu.dot_dimension_numbers<[1], [0], [0], [1], [0, 0, 1, 1], [], []>} : vector<16x8xf32>, vector<8x32xf32>, vector<16x32xf32> -> vector<16x32xf32>
    %73 = arith.addf %54, %72 : vector<16x32xf32>
    %74 = vector.extract_strided_slice %12 {offsets = [0, 0, 24], sizes = [2, 8, 8], strides = [1, 1, 1]} : vector<2x8x32xf32> to vector<2x8x8xf32>
    %75 = vector.extract_strided_slice %13 {offsets = [0, 0, 24], sizes = [2, 8, 8], strides = [1, 1, 1]} : vector<2x8x32xf32> to vector<2x8x8xf32>
    "tpu.trace_start"() <{level = 10 : i32, message = "bqd,bkd->bqk"}> : () -> ()
    %cst_27 = arith.constant dense<0.000000e+00> : vector<2x8x8xf32>
    %76 = tpu.matmul %74, %75, %cst_27 {dimension_numbers = #tpu.dot_dimension_numbers<[2], [2], [1], [1], [0, 0, 0, 1, 1, 1], [0], [0]>} : vector<2x8x8xf32>, vector<2x8x8xf32>, vector<2x8x8xf32> -> vector<2x8x8xf32>
    "tpu.trace_stop"() : () -> ()
    %cst_28 = arith.constant dense<0xFF800000> : vector<2x8xf32>
    %77 = vector.multi_reduction <maximumf>, %76, %cst_28 [2] : vector<2x8x8xf32> to vector<2x8xf32>
    %78 = vector.shape_cast %77 : vector<2x8xf32> to vector<2x8x1xf32>
    %79 = vector.broadcast %78 : vector<2x8x1xf32> to vector<2x8x8xf32>
    %80 = arith.subf %76, %79 : vector<2x8x8xf32>
    %81 = math.exp %80 : vector<2x8x8xf32>
    %cst_29 = arith.constant dense<0.000000e+00> : vector<2x8xf32>
    %82 = vector.multi_reduction <add>, %81, %cst_29 [2] : vector<2x8x8xf32> to vector<2x8xf32>
    %83 = vector.shape_cast %82 : vector<2x8xf32> to vector<2x8x1xf32>
    %84 = tpu.reciprocal %83 {approx = true} : vector<2x8x1xf32> -> vector<2x8x1xf32>
    %85 = vector.broadcast %84 : vector<2x8x1xf32> to vector<2x8x8xf32>
    %86 = arith.mulf %81, %85 : vector<2x8x8xf32>
    %87 = vector.extract_strided_slice %14 {offsets = [0, 0, 24], sizes = [2, 8, 8], strides = [1, 1, 1]} : vector<2x8x32xf32> to vector<2x8x8xf32>
    "tpu.trace_start"() <{level = 10 : i32, message = "bqk,bkd->bqd"}> : () -> ()
    %cst_30 = arith.constant dense<0.000000e+00> : vector<2x8x8xf32>
    %88 = tpu.matmul %86, %87, %cst_30 {dimension_numbers = #tpu.dot_dimension_numbers<[2], [1], [1], [2], [0, 0, 0, 1, 1, 2], [0], [0]>} : vector<2x8x8xf32>, vector<2x8x8xf32>, vector<2x8x8xf32> -> vector<2x8x8xf32>
    "tpu.trace_stop"() : () -> ()
    %89 = vector.shape_cast %88 : vector<2x8x8xf32> to vector<16x8xf32>
    %90 = vector.extract_strided_slice %15 {offsets = [24, 0], sizes = [8, 32], strides = [1, 1]} : vector<32x32xf32> to vector<8x32xf32>
    %cst_31 = arith.constant dense<0.000000e+00> : vector<16x32xf32>
    %91 = tpu.matmul %89, %90, %cst_31 {dimension_numbers = #tpu.dot_dimension_numbers<[1], [0], [0], [1], [0, 0, 1, 1], [], []>} : vector<16x8xf32>, vector<8x32xf32>, vector<16x32xf32> -> vector<16x32xf32>
    %92 = arith.addf %73, %91 : vector<16x32xf32>
    %c0_32 = arith.constant 0 : index
    %c0_33 = arith.constant 0 : index
    %93 = vector.load %arg6[%c0_32, %c0_33] : memref<1x32xf32, #tpu.memory_space<vmem>>, vector<1x32xf32>
    %94 = vector.broadcast %93 : vector<1x32xf32> to vector<16x32xf32>
    %95 = arith.addf %92, %94 : vector<16x32xf32>
    %96 = arith.addf %1, %95 : vector<16x32xf32>
    %cst_34 = arith.constant dense<0.000000e+00> : vector<16xf32>
    %97 = vector.multi_reduction <add>, %96, %cst_34 [1] : vector<16x32xf32> to vector<16xf32>
    %98 = vector.shape_cast %97 : vector<16xf32> to vector<16x1xf32>
    %cst_35 = arith.constant 3.200000e+01 : f32
    %99 = vector.broadcast %cst_35 : f32 to vector<16x1xf32>
    %100 = arith.divf %98, %99 : vector<16x1xf32>
    %101 = vector.broadcast %100 : vector<16x1xf32> to vector<16x32xf32>
    %102 = arith.subf %96, %101 : vector<16x32xf32>
    %103 = arith.mulf %102, %102 : vector<16x32xf32>
    %cst_36 = arith.constant dense<0.000000e+00> : vector<16xf32>
    %104 = vector.multi_reduction <add>, %103, %cst_36 [1] : vector<16x32xf32> to vector<16xf32>
    %105 = vector.shape_cast %104 : vector<16xf32> to vector<16x1xf32>
    %cst_37 = arith.constant 3.200000e+01 : f32
    %106 = vector.broadcast %cst_37 : f32 to vector<16x1xf32>
    %107 = arith.divf %105, %106 : vector<16x1xf32>
    %108 = vector.broadcast %100 : vector<16x1xf32> to vector<16x32xf32>
    %109 = arith.subf %96, %108 : vector<16x32xf32>
    %cst_38 = arith.constant 9.99999974E-6 : f32
    %110 = vector.broadcast %cst_38 : f32 to vector<16x1xf32>
    %111 = arith.addf %107, %110 : vector<16x1xf32>
    %112 = math.rsqrt %111 : vector<16x1xf32>
    %113 = vector.broadcast %112 : vector<16x1xf32> to vector<16x32xf32>
    %114 = arith.mulf %109, %113 : vector<16x32xf32>
    %c0_39 = arith.constant 0 : index
    %c0_40 = arith.constant 0 : index
    %115 = vector.load %arg7[%c0_39, %c0_40] : memref<1x32xf32, #tpu.memory_space<vmem>>, vector<1x32xf32>
    %116 = vector.broadcast %115 : vector<1x32xf32> to vector<16x32xf32>
    %117 = arith.mulf %114, %116 : vector<16x32xf32>
    %c0_41 = arith.constant 0 : index
    %c0_42 = arith.constant 0 : index
    %118 = vector.load %arg8[%c0_41, %c0_42] : memref<1x32xf32, #tpu.memory_space<vmem>>, vector<1x32xf32>
    %119 = vector.broadcast %118 : vector<1x32xf32> to vector<16x32xf32>
    %120 = arith.addf %117, %119 : vector<16x32xf32>
    %c0_43 = arith.constant 0 : index
    %c0_44 = arith.constant 0 : index
    %121 = vector.load %arg9[%c0_43, %c0_44] : memref<32x32xf32, #tpu.memory_space<vmem>>, vector<32x32xf32>
    %cst_45 = arith.constant dense<0.000000e+00> : vector<16x32xf32>
    %122 = tpu.matmul %120, %121, %cst_45 {dimension_numbers = #tpu.dot_dimension_numbers<[1], [0], [0], [1], [0, 0, 1, 1], [], []>} : vector<16x32xf32>, vector<32x32xf32>, vector<16x32xf32> -> vector<16x32xf32>
    %c0_46 = arith.constant 0 : index
    %c0_47 = arith.constant 0 : index
    %123 = vector.load %arg10[%c0_46, %c0_47] : memref<1x32xf32, #tpu.memory_space<vmem>>, vector<1x32xf32>
    %124 = vector.broadcast %123 : vector<1x32xf32> to vector<16x32xf32>
    %125 = arith.addf %122, %124 : vector<16x32xf32>
    %c0_48 = arith.constant 0 : index
    %c0_49 = arith.constant 0 : index
    %126 = vector.load %arg11[%c0_48, %c0_49] : memref<32x64xf32, #tpu.memory_space<vmem>>, vector<32x64xf32>
    %cst_50 = arith.constant dense<0.000000e+00> : vector<16x64xf32>
    %127 = tpu.matmul %3, %126, %cst_50 {dimension_numbers = #tpu.dot_dimension_numbers<[1], [0], [0], [1], [0, 0, 1, 1], [], []>} : vector<16x32xf32>, vector<32x64xf32>, vector<16x64xf32> -> vector<16x64xf32>
    %c0_51 = arith.constant 0 : index
    %c0_52 = arith.constant 0 : index
    %128 = vector.load %arg12[%c0_51, %c0_52] : memref<1x64xf32, #tpu.memory_space<vmem>>, vector<1x64xf32>
    %129 = vector.broadcast %128 : vector<1x64xf32> to vector<16x64xf32>
    %130 = arith.addf %127, %129 : vector<16x64xf32>
    %131 = vector.extract_strided_slice %130 {offsets = [0, 0], sizes = [16, 32], strides = [1, 1]} : vector<16x64xf32> to vector<16x32xf32>
    %132 = vector.extract_strided_slice %130 {offsets = [0, 32], sizes = [16, 32], strides = [1, 1]} : vector<16x64xf32> to vector<16x32xf32>
    %133 = vector.shape_cast %125 : vector<16x32xf32> to vector<2x8x32xf32>
    %134 = vector.shape_cast %131 : vector<16x32xf32> to vector<2x8x32xf32>
    %135 = vector.shape_cast %132 : vector<16x32xf32> to vector<2x8x32xf32>
    %c0_53 = arith.constant 0 : index
    %c0_54 = arith.constant 0 : index
    %136 = vector.load %arg13[%c0_53, %c0_54] : memref<32x32xf32, #tpu.memory_space<vmem>>, vector<32x32xf32>
    %cst_55 = arith.constant 0.000000e+00 : f32
    %137 = vector.broadcast %cst_55 : f32 to vector<16x32xf32>
    %138 = vector.extract_strided_slice %133 {offsets = [0, 0, 0], sizes = [2, 8, 8], strides = [1, 1, 1]} : vector<2x8x32xf32> to vector<2x8x8xf32>
    %139 = vector.extract_strided_slice %134 {offsets = [0, 0, 0], sizes = [2, 8, 8], strides = [1, 1, 1]} : vector<2x8x32xf32> to vector<2x8x8xf32>
    "tpu.trace_start"() <{level = 10 : i32, message = "bqd,bkd->bqk"}> : () -> ()
    %cst_56 = arith.constant dense<0.000000e+00> : vector<2x8x8xf32>
    %140 = tpu.matmul %138, %139, %cst_56 {dimension_numbers = #tpu.dot_dimension_numbers<[2], [2], [1], [1], [0, 0, 0, 1, 1, 1], [0], [0]>} : vector<2x8x8xf32>, vector<2x8x8xf32>, vector<2x8x8xf32> -> vector<2x8x8xf32>
    "tpu.trace_stop"() : () -> ()
    %cst_57 = arith.constant dense<0xFF800000> : vector<2x8xf32>
    %141 = vector.multi_reduction <maximumf>, %140, %cst_57 [2] : vector<2x8x8xf32> to vector<2x8xf32>
    %142 = vector.shape_cast %141 : vector<2x8xf32> to vector<2x8x1xf32>
    %143 = vector.broadcast %142 : vector<2x8x1xf32> to vector<2x8x8xf32>
    %144 = arith.subf %140, %143 : vector<2x8x8xf32>
    %145 = math.exp %144 : vector<2x8x8xf32>
    %cst_58 = arith.constant dense<0.000000e+00> : vector<2x8xf32>
    %146 = vector.multi_reduction <add>, %145, %cst_58 [2] : vector<2x8x8xf32> to vector<2x8xf32>
    %147 = vector.shape_cast %146 : vector<2x8xf32> to vector<2x8x1xf32>
    %148 = tpu.reciprocal %147 {approx = true} : vector<2x8x1xf32> -> vector<2x8x1xf32>
    %149 = vector.broadcast %148 : vector<2x8x1xf32> to vector<2x8x8xf32>
    %150 = arith.mulf %145, %149 : vector<2x8x8xf32>
    %151 = vector.extract_strided_slice %135 {offsets = [0, 0, 0], sizes = [2, 8, 8], strides = [1, 1, 1]} : vector<2x8x32xf32> to vector<2x8x8xf32>
    "tpu.trace_start"() <{level = 10 : i32, message = "bqk,bkd->bqd"}> : () -> ()
    %cst_59 = arith.constant dense<0.000000e+00> : vector<2x8x8xf32>
    %152 = tpu.matmul %150, %151, %cst_59 {dimension_numbers = #tpu.dot_dimension_numbers<[2], [1], [1], [2], [0, 0, 0, 1, 1, 2], [0], [0]>} : vector<2x8x8xf32>, vector<2x8x8xf32>, vector<2x8x8xf32> -> vector<2x8x8xf32>
    "tpu.trace_stop"() : () -> ()
    %153 = vector.shape_cast %152 : vector<2x8x8xf32> to vector<16x8xf32>
    %154 = vector.extract_strided_slice %136 {offsets = [0, 0], sizes = [8, 32], strides = [1, 1]} : vector<32x32xf32> to vector<8x32xf32>
    %cst_60 = arith.constant dense<0.000000e+00> : vector<16x32xf32>
    %155 = tpu.matmul %153, %154, %cst_60 {dimension_numbers = #tpu.dot_dimension_numbers<[1], [0], [0], [1], [0, 0, 1, 1], [], []>} : vector<16x8xf32>, vector<8x32xf32>, vector<16x32xf32> -> vector<16x32xf32>
    %156 = arith.addf %137, %155 : vector<16x32xf32>
    %157 = vector.extract_strided_slice %133 {offsets = [0, 0, 8], sizes = [2, 8, 8], strides = [1, 1, 1]} : vector<2x8x32xf32> to vector<2x8x8xf32>
    %158 = vector.extract_strided_slice %134 {offsets = [0, 0, 8], sizes = [2, 8, 8], strides = [1, 1, 1]} : vector<2x8x32xf32> to vector<2x8x8xf32>
    "tpu.trace_start"() <{level = 10 : i32, message = "bqd,bkd->bqk"}> : () -> ()
    %cst_61 = arith.constant dense<0.000000e+00> : vector<2x8x8xf32>
    %159 = tpu.matmul %157, %158, %cst_61 {dimension_numbers = #tpu.dot_dimension_numbers<[2], [2], [1], [1], [0, 0, 0, 1, 1, 1], [0], [0]>} : vector<2x8x8xf32>, vector<2x8x8xf32>, vector<2x8x8xf32> -> vector<2x8x8xf32>
    "tpu.trace_stop"() : () -> ()
    %cst_62 = arith.constant dense<0xFF800000> : vector<2x8xf32>
    %160 = vector.multi_reduction <maximumf>, %159, %cst_62 [2] : vector<2x8x8xf32> to vector<2x8xf32>
    %161 = vector.shape_cast %160 : vector<2x8xf32> to vector<2x8x1xf32>
    %162 = vector.broadcast %161 : vector<2x8x1xf32> to vector<2x8x8xf32>
    %163 = arith.subf %159, %162 : vector<2x8x8xf32>
    %164 = math.exp %163 : vector<2x8x8xf32>
    %cst_63 = arith.constant dense<0.000000e+00> : vector<2x8xf32>
    %165 = vector.multi_reduction <add>, %164, %cst_63 [2] : vector<2x8x8xf32> to vector<2x8xf32>
    %166 = vector.shape_cast %165 : vector<2x8xf32> to vector<2x8x1xf32>
    %167 = tpu.reciprocal %166 {approx = true} : vector<2x8x1xf32> -> vector<2x8x1xf32>
    %168 = vector.broadcast %167 : vector<2x8x1xf32> to vector<2x8x8xf32>
    %169 = arith.mulf %164, %168 : vector<2x8x8xf32>
    %170 = vector.extract_strided_slice %135 {offsets = [0, 0, 8], sizes = [2, 8, 8], strides = [1, 1, 1]} : vector<2x8x32xf32> to vector<2x8x8xf32>
    "tpu.trace_start"() <{level = 10 : i32, message = "bqk,bkd->bqd"}> : () -> ()
    %cst_64 = arith.constant dense<0.000000e+00> : vector<2x8x8xf32>
    %171 = tpu.matmul %169, %170, %cst_64 {dimension_numbers = #tpu.dot_dimension_numbers<[2], [1], [1], [2], [0, 0, 0, 1, 1, 2], [0], [0]>} : vector<2x8x8xf32>, vector<2x8x8xf32>, vector<2x8x8xf32> -> vector<2x8x8xf32>
    "tpu.trace_stop"() : () -> ()
    %172 = vector.shape_cast %171 : vector<2x8x8xf32> to vector<16x8xf32>
    %173 = vector.extract_strided_slice %136 {offsets = [8, 0], sizes = [8, 32], strides = [1, 1]} : vector<32x32xf32> to vector<8x32xf32>
    %cst_65 = arith.constant dense<0.000000e+00> : vector<16x32xf32>
    %174 = tpu.matmul %172, %173, %cst_65 {dimension_numbers = #tpu.dot_dimension_numbers<[1], [0], [0], [1], [0, 0, 1, 1], [], []>} : vector<16x8xf32>, vector<8x32xf32>, vector<16x32xf32> -> vector<16x32xf32>
    %175 = arith.addf %156, %174 : vector<16x32xf32>
    %176 = vector.extract_strided_slice %133 {offsets = [0, 0, 16], sizes = [2, 8, 8], strides = [1, 1, 1]} : vector<2x8x32xf32> to vector<2x8x8xf32>
    %177 = vector.extract_strided_slice %134 {offsets = [0, 0, 16], sizes = [2, 8, 8], strides = [1, 1, 1]} : vector<2x8x32xf32> to vector<2x8x8xf32>
    "tpu.trace_start"() <{level = 10 : i32, message = "bqd,bkd->bqk"}> : () -> ()
    %cst_66 = arith.constant dense<0.000000e+00> : vector<2x8x8xf32>
    %178 = tpu.matmul %176, %177, %cst_66 {dimension_numbers = #tpu.dot_dimension_numbers<[2], [2], [1], [1], [0, 0, 0, 1, 1, 1], [0], [0]>} : vector<2x8x8xf32>, vector<2x8x8xf32>, vector<2x8x8xf32> -> vector<2x8x8xf32>
    "tpu.trace_stop"() : () -> ()
    %cst_67 = arith.constant dense<0xFF800000> : vector<2x8xf32>
    %179 = vector.multi_reduction <maximumf>, %178, %cst_67 [2] : vector<2x8x8xf32> to vector<2x8xf32>
    %180 = vector.shape_cast %179 : vector<2x8xf32> to vector<2x8x1xf32>
    %181 = vector.broadcast %180 : vector<2x8x1xf32> to vector<2x8x8xf32>
    %182 = arith.subf %178, %181 : vector<2x8x8xf32>
    %183 = math.exp %182 : vector<2x8x8xf32>
    %cst_68 = arith.constant dense<0.000000e+00> : vector<2x8xf32>
    %184 = vector.multi_reduction <add>, %183, %cst_68 [2] : vector<2x8x8xf32> to vector<2x8xf32>
    %185 = vector.shape_cast %184 : vector<2x8xf32> to vector<2x8x1xf32>
    %186 = tpu.reciprocal %185 {approx = true} : vector<2x8x1xf32> -> vector<2x8x1xf32>
    %187 = vector.broadcast %186 : vector<2x8x1xf32> to vector<2x8x8xf32>
    %188 = arith.mulf %183, %187 : vector<2x8x8xf32>
    %189 = vector.extract_strided_slice %135 {offsets = [0, 0, 16], sizes = [2, 8, 8], strides = [1, 1, 1]} : vector<2x8x32xf32> to vector<2x8x8xf32>
    "tpu.trace_start"() <{level = 10 : i32, message = "bqk,bkd->bqd"}> : () -> ()
    %cst_69 = arith.constant dense<0.000000e+00> : vector<2x8x8xf32>
    %190 = tpu.matmul %188, %189, %cst_69 {dimension_numbers = #tpu.dot_dimension_numbers<[2], [1], [1], [2], [0, 0, 0, 1, 1, 2], [0], [0]>} : vector<2x8x8xf32>, vector<2x8x8xf32>, vector<2x8x8xf32> -> vector<2x8x8xf32>
    "tpu.trace_stop"() : () -> ()
    %191 = vector.shape_cast %190 : vector<2x8x8xf32> to vector<16x8xf32>
    %192 = vector.extract_strided_slice %136 {offsets = [16, 0], sizes = [8, 32], strides = [1, 1]} : vector<32x32xf32> to vector<8x32xf32>
    %cst_70 = arith.constant dense<0.000000e+00> : vector<16x32xf32>
    %193 = tpu.matmul %191, %192, %cst_70 {dimension_numbers = #tpu.dot_dimension_numbers<[1], [0], [0], [1], [0, 0, 1, 1], [], []>} : vector<16x8xf32>, vector<8x32xf32>, vector<16x32xf32> -> vector<16x32xf32>
    %194 = arith.addf %175, %193 : vector<16x32xf32>
    %195 = vector.extract_strided_slice %133 {offsets = [0, 0, 24], sizes = [2, 8, 8], strides = [1, 1, 1]} : vector<2x8x32xf32> to vector<2x8x8xf32>
    %196 = vector.extract_strided_slice %134 {offsets = [0, 0, 24], sizes = [2, 8, 8], strides = [1, 1, 1]} : vector<2x8x32xf32> to vector<2x8x8xf32>
    "tpu.trace_start"() <{level = 10 : i32, message = "bqd,bkd->bqk"}> : () -> ()
    %cst_71 = arith.constant dense<0.000000e+00> : vector<2x8x8xf32>
    %197 = tpu.matmul %195, %196, %cst_71 {dimension_numbers = #tpu.dot_dimension_numbers<[2], [2], [1], [1], [0, 0, 0, 1, 1, 1], [0], [0]>} : vector<2x8x8xf32>, vector<2x8x8xf32>, vector<2x8x8xf32> -> vector<2x8x8xf32>
    "tpu.trace_stop"() : () -> ()
    %cst_72 = arith.constant dense<0xFF800000> : vector<2x8xf32>
    %198 = vector.multi_reduction <maximumf>, %197, %cst_72 [2] : vector<2x8x8xf32> to vector<2x8xf32>
    %199 = vector.shape_cast %198 : vector<2x8xf32> to vector<2x8x1xf32>
    %200 = vector.broadcast %199 : vector<2x8x1xf32> to vector<2x8x8xf32>
    %201 = arith.subf %197, %200 : vector<2x8x8xf32>
    %202 = math.exp %201 : vector<2x8x8xf32>
    %cst_73 = arith.constant dense<0.000000e+00> : vector<2x8xf32>
    %203 = vector.multi_reduction <add>, %202, %cst_73 [2] : vector<2x8x8xf32> to vector<2x8xf32>
    %204 = vector.shape_cast %203 : vector<2x8xf32> to vector<2x8x1xf32>
    %205 = tpu.reciprocal %204 {approx = true} : vector<2x8x1xf32> -> vector<2x8x1xf32>
    %206 = vector.broadcast %205 : vector<2x8x1xf32> to vector<2x8x8xf32>
    %207 = arith.mulf %202, %206 : vector<2x8x8xf32>
    %208 = vector.extract_strided_slice %135 {offsets = [0, 0, 24], sizes = [2, 8, 8], strides = [1, 1, 1]} : vector<2x8x32xf32> to vector<2x8x8xf32>
    "tpu.trace_start"() <{level = 10 : i32, message = "bqk,bkd->bqd"}> : () -> ()
    %cst_74 = arith.constant dense<0.000000e+00> : vector<2x8x8xf32>
    %209 = tpu.matmul %207, %208, %cst_74 {dimension_numbers = #tpu.dot_dimension_numbers<[2], [1], [1], [2], [0, 0, 0, 1, 1, 2], [0], [0]>} : vector<2x8x8xf32>, vector<2x8x8xf32>, vector<2x8x8xf32> -> vector<2x8x8xf32>
    "tpu.trace_stop"() : () -> ()
    %210 = vector.shape_cast %209 : vector<2x8x8xf32> to vector<16x8xf32>
    %211 = vector.extract_strided_slice %136 {offsets = [24, 0], sizes = [8, 32], strides = [1, 1]} : vector<32x32xf32> to vector<8x32xf32>
    %cst_75 = arith.constant dense<0.000000e+00> : vector<16x32xf32>
    %212 = tpu.matmul %210, %211, %cst_75 {dimension_numbers = #tpu.dot_dimension_numbers<[1], [0], [0], [1], [0, 0, 1, 1], [], []>} : vector<16x8xf32>, vector<8x32xf32>, vector<16x32xf32> -> vector<16x32xf32>
    %213 = arith.addf %194, %212 : vector<16x32xf32>
    %c0_76 = arith.constant 0 : index
    %c0_77 = arith.constant 0 : index
    %214 = vector.load %arg14[%c0_76, %c0_77] : memref<1x32xf32, #tpu.memory_space<vmem>>, vector<1x32xf32>
    %215 = vector.broadcast %214 : vector<1x32xf32> to vector<16x32xf32>
    %216 = arith.addf %213, %215 : vector<16x32xf32>
    %217 = arith.addf %120, %216 : vector<16x32xf32>
    %cst_78 = arith.constant dense<0.000000e+00> : vector<16xf32>
    %218 = vector.multi_reduction <add>, %217, %cst_78 [1] : vector<16x32xf32> to vector<16xf32>
    %219 = vector.shape_cast %218 : vector<16xf32> to vector<16x1xf32>
    %cst_79 = arith.constant 3.200000e+01 : f32
    %220 = vector.broadcast %cst_79 : f32 to vector<16x1xf32>
    %221 = arith.divf %219, %220 : vector<16x1xf32>
    %222 = vector.broadcast %221 : vector<16x1xf32> to vector<16x32xf32>
    %223 = arith.subf %217, %222 : vector<16x32xf32>
    %224 = arith.mulf %223, %223 : vector<16x32xf32>
    %cst_80 = arith.constant dense<0.000000e+00> : vector<16xf32>
    %225 = vector.multi_reduction <add>, %224, %cst_80 [1] : vector<16x32xf32> to vector<16xf32>
    %226 = vector.shape_cast %225 : vector<16xf32> to vector<16x1xf32>
    %cst_81 = arith.constant 3.200000e+01 : f32
    %227 = vector.broadcast %cst_81 : f32 to vector<16x1xf32>
    %228 = arith.divf %226, %227 : vector<16x1xf32>
    %229 = vector.broadcast %221 : vector<16x1xf32> to vector<16x32xf32>
    %230 = arith.subf %217, %229 : vector<16x32xf32>
    %cst_82 = arith.constant 9.99999974E-6 : f32
    %231 = vector.broadcast %cst_82 : f32 to vector<16x1xf32>
    %232 = arith.addf %228, %231 : vector<16x1xf32>
    %233 = math.rsqrt %232 : vector<16x1xf32>
    %234 = vector.broadcast %233 : vector<16x1xf32> to vector<16x32xf32>
    %235 = arith.mulf %230, %234 : vector<16x32xf32>
    %c0_83 = arith.constant 0 : index
    %c0_84 = arith.constant 0 : index
    %236 = vector.load %arg15[%c0_83, %c0_84] : memref<1x32xf32, #tpu.memory_space<vmem>>, vector<1x32xf32>
    %237 = vector.broadcast %236 : vector<1x32xf32> to vector<16x32xf32>
    %238 = arith.mulf %235, %237 : vector<16x32xf32>
    %c0_85 = arith.constant 0 : index
    %c0_86 = arith.constant 0 : index
    %239 = vector.load %arg16[%c0_85, %c0_86] : memref<1x32xf32, #tpu.memory_space<vmem>>, vector<1x32xf32>
    %240 = vector.broadcast %239 : vector<1x32xf32> to vector<16x32xf32>
    %241 = arith.addf %238, %240 : vector<16x32xf32>
    %c0_87 = arith.constant 0 : index
    %c0_88 = arith.constant 0 : index
    %242 = vector.load %arg17[%c0_87, %c0_88] : memref<32x128xf32, #tpu.memory_space<vmem>>, vector<32x128xf32>
    %cst_89 = arith.constant dense<0.000000e+00> : vector<16x128xf32>
    %243 = tpu.matmul %241, %242, %cst_89 {dimension_numbers = #tpu.dot_dimension_numbers<[1], [0], [0], [1], [0, 0, 1, 1], [], []>} : vector<16x32xf32>, vector<32x128xf32>, vector<16x128xf32> -> vector<16x128xf32>
    %c0_90 = arith.constant 0 : index
    %c0_91 = arith.constant 0 : index
    %244 = vector.load %arg18[%c0_90, %c0_91] : memref<1x128xf32, #tpu.memory_space<vmem>>, vector<1x128xf32>
    %245 = vector.broadcast %244 : vector<1x128xf32> to vector<16x128xf32>
    %246 = arith.addf %243, %245 : vector<16x128xf32>
    %247 = arith.mulf %246, %246 : vector<16x128xf32>
    %248 = arith.mulf %246, %247 : vector<16x128xf32>
    %cst_92 = arith.constant 4.471500e-02 : f32
    %249 = vector.broadcast %cst_92 : f32 to vector<16x128xf32>
    %250 = arith.mulf %249, %248 : vector<16x128xf32>
    %251 = arith.addf %246, %250 : vector<16x128xf32>
    %cst_93 = arith.constant 0.797884583 : f32
    %252 = vector.broadcast %cst_93 : f32 to vector<16x128xf32>
    %253 = arith.mulf %252, %251 : vector<16x128xf32>
    %254 = math.tanh %253 : vector<16x128xf32>
    %cst_94 = arith.constant 1.000000e+00 : f32
    %255 = vector.broadcast %cst_94 : f32 to vector<16x128xf32>
    %256 = arith.addf %255, %254 : vector<16x128xf32>
    %cst_95 = arith.constant 5.000000e-01 : f32
    %257 = vector.broadcast %cst_95 : f32 to vector<16x128xf32>
    %258 = arith.mulf %257, %256 : vector<16x128xf32>
    %259 = arith.mulf %246, %258 : vector<16x128xf32>
    %c0_96 = arith.constant 0 : index
    %c0_97 = arith.constant 0 : index
    %260 = vector.load %arg19[%c0_96, %c0_97] : memref<128x32xf32, #tpu.memory_space<vmem>>, vector<128x32xf32>
    %cst_98 = arith.constant dense<0.000000e+00> : vector<16x32xf32>
    %261 = tpu.matmul %259, %260, %cst_98 {dimension_numbers = #tpu.dot_dimension_numbers<[1], [0], [0], [1], [0, 0, 1, 1], [], []>} : vector<16x128xf32>, vector<128x32xf32>, vector<16x32xf32> -> vector<16x32xf32>
    %c0_99 = arith.constant 0 : index
    %c0_100 = arith.constant 0 : index
    %262 = vector.load %arg20[%c0_99, %c0_100] : memref<1x32xf32, #tpu.memory_space<vmem>>, vector<1x32xf32>
    %263 = vector.broadcast %262 : vector<1x32xf32> to vector<16x32xf32>
    %264 = arith.addf %261, %263 : vector<16x32xf32>
    %265 = arith.addf %241, %264 : vector<16x32xf32>
    %cst_101 = arith.constant dense<0.000000e+00> : vector<16xf32>
    %266 = vector.multi_reduction <add>, %265, %cst_101 [1] : vector<16x32xf32> to vector<16xf32>
    %267 = vector.shape_cast %266 : vector<16xf32> to vector<16x1xf32>
    %cst_102 = arith.constant 3.200000e+01 : f32
    %268 = vector.broadcast %cst_102 : f32 to vector<16x1xf32>
    %269 = arith.divf %267, %268 : vector<16x1xf32>
    %270 = vector.broadcast %269 : vector<16x1xf32> to vector<16x32xf32>
    %271 = arith.subf %265, %270 : vector<16x32xf32>
    %272 = arith.mulf %271, %271 : vector<16x32xf32>
    %cst_103 = arith.constant dense<0.000000e+00> : vector<16xf32>
    %273 = vector.multi_reduction <add>, %272, %cst_103 [1] : vector<16x32xf32> to vector<16xf32>
    %274 = vector.shape_cast %273 : vector<16xf32> to vector<16x1xf32>
    %cst_104 = arith.constant 3.200000e+01 : f32
    %275 = vector.broadcast %cst_104 : f32 to vector<16x1xf32>
    %276 = arith.divf %274, %275 : vector<16x1xf32>
    %277 = vector.broadcast %269 : vector<16x1xf32> to vector<16x32xf32>
    %278 = arith.subf %265, %277 : vector<16x32xf32>
    %cst_105 = arith.constant 9.99999974E-6 : f32
    %279 = vector.broadcast %cst_105 : f32 to vector<16x1xf32>
    %280 = arith.addf %276, %279 : vector<16x1xf32>
    %281 = math.rsqrt %280 : vector<16x1xf32>
    %282 = vector.broadcast %281 : vector<16x1xf32> to vector<16x32xf32>
    %283 = arith.mulf %278, %282 : vector<16x32xf32>
    %c0_106 = arith.constant 0 : index
    %c0_107 = arith.constant 0 : index
    %284 = vector.load %arg21[%c0_106, %c0_107] : memref<1x32xf32, #tpu.memory_space<vmem>>, vector<1x32xf32>
    %285 = vector.broadcast %284 : vector<1x32xf32> to vector<16x32xf32>
    %286 = arith.mulf %283, %285 : vector<16x32xf32>
    %c0_108 = arith.constant 0 : index
    %c0_109 = arith.constant 0 : index
    %287 = vector.load %arg22[%c0_108, %c0_109] : memref<1x32xf32, #tpu.memory_space<vmem>>, vector<1x32xf32>
    %288 = vector.broadcast %287 : vector<1x32xf32> to vector<16x32xf32>
    %289 = arith.addf %286, %288 : vector<16x32xf32>
    %290 = vector.shape_cast %289 : vector<16x32xf32> to vector<2x8x32xf32>
    %c0_110 = arith.constant 0 : index
    %c0_111 = arith.constant 0 : index
    %c0_112 = arith.constant 0 : index
    %291 = vector.load %arg23[%c0_110, %c0_111, %c0_112] : memref<2x8x32xf32, #tpu.memory_space<vmem>>, vector<2x8x32xf32>
    tpu.vector_store %arg23[%c0_110, %c0_111, %c0_112], %290 {strides = array<i32>} : memref<2x8x32xf32, #tpu.memory_space<vmem>>, vector<2x8x32xf32>,
    return
  }
  func.func @transform_0(%arg0: i32) -> (i32, i32, i32) {
    %c0_i32 = arith.constant 0 : i32
    %c0_i32_0 = arith.constant 0 : i32
    %c0_i32_1 = arith.constant 0 : i32
    return %arg0, %c0_i32, %c0_i32_0 : i32, i32, i32
  }
  func.func @transform_1(%arg0: i32) -> (i32, i32, i32) {
    %c0_i32 = arith.constant 0 : i32
    %c0_i32_0 = arith.constant 0 : i32
    %c0_i32_1 = arith.constant 0 : i32
    return %arg0, %c0_i32, %c0_i32_0 : i32, i32, i32
  }
  func.func @transform_2(%arg0: i32) -> (i32, i32) {
    %c0_i32 = arith.constant 0 : i32
    %c0_i32_0 = arith.constant 0 : i32
    %c0_i32_1 = arith.constant 0 : i32
    return %c0_i32, %c0_i32_0 : i32, i32
  }
  func.func @transform_3(%arg0: i32) -> (i32, i32) {
    %c0_i32 = arith.constant 0 : i32
    %c0_i32_0 = arith.constant 0 : i32
    %c0_i32_1 = arith.constant 0 : i32
    return %c0_i32, %c0_i32_0 : i32, i32
  }
  func.func @transform_4(%arg0: i32) -> (i32, i32) {
    %c0_i32 = arith.constant 0 : i32
    %c0_i32_0 = arith.constant 0 : i32
    %c0_i32_1 = arith.constant 0 : i32
    return %c0_i32, %c0_i32_0 : i32, i32
  }
  func.func @transform_5(%arg0: i32) -> (i32, i32) {
    %c0_i32 = arith.constant 0 : i32
    %c0_i32_0 = arith.constant 0 : i32
    %c0_i32_1 = arith.constant 0 : i32
    return %c0_i32, %c0_i32_0 : i32, i32
  }
  func.func @transform_6(%arg0: i32) -> (i32, i32) {
    %c0_i32 = arith.constant 0 : i32
    %c0_i32_0 = arith.constant 0 : i32
    %c0_i32_1 = arith.constant 0 : i32
    return %c0_i32, %c0_i32_0 : i32, i32
  }
  func.func @transform_7(%arg0: i32) -> (i32, i32) {
    %c0_i32 = arith.constant 0 : i32
    %c0_i32_0 = arith.constant 0 : i32
    %c0_i32_1 = arith.constant 0 : i32
    return %c0_i32, %c0_i32_0 : i32, i32
  }
  func.func @transform_8(%arg0: i32) -> (i32, i32) {
    %c0_i32 = arith.constant 0 : i32
    %c0_i32_0 = arith.constant 0 : i32
    %c0_i32_1 = arith.constant 0 : i32
    return %c0_i32, %c0_i32_0 : i32, i32
  }
  func.func @transform_9(%arg0: i32) -> (i32, i32) {
    %c0_i32 = arith.constant 0 : i32
    %c0_i32_0 = arith.constant 0 : i32
    %c0_i32_1 = arith.constant 0 : i32
    return %c0_i32, %c0_i32_0 : i32, i32
  }
  func.func @transform_10(%arg0: i32) -> (i32, i32) {
    %c0_i32 = arith.constant 0 : i32
    %c0_i32_0 = arith.constant 0 : i32
    %c0_i32_1 = arith.constant 0 : i32
    return %c0_i32, %c0_i32_0 : i32, i32
  }
  func.func @transform_11(%arg0: i32) -> (i32, i32) {
    %c0_i32 = arith.constant 0 : i32
    %c0_i32_0 = arith.constant 0 : i32
    %c0_i32_1 = arith.constant 0 : i32
    return %c0_i32, %c0_i32_0 : i32, i32
  }
  func.func @transform_12(%arg0: i32) -> (i32, i32) {
    %c0_i32 = arith.constant 0 : i32
    %c0_i32_0 = arith.constant 0 : i32
    %c0_i32_1 = arith.constant 0 : i32
    return %c0_i32, %c0_i32_0 : i32, i32
  }
  func.func @transform_13(%arg0: i32) -> (i32, i32) {
    %c0_i32 = arith.constant 0 : i32
    %c0_i32_0 = arith.constant 0 : i32
    %c0_i32_1 = arith.constant 0 : i32
    return %c0_i32, %c0_i32_0 : i32, i32
  }
  func.func @transform_14(%arg0: i32) -> (i32, i32) {
    %c0_i32 = arith.constant 0 : i32
    %c0_i32_0 = arith.constant 0 : i32
    %c0_i32_1 = arith.constant 0 : i32
    return %c0_i32, %c0_i32_0 : i32, i32
  }
  func.func @transform_15(%arg0: i32) -> (i32, i32) {
    %c0_i32 = arith.constant 0 : i32
    %c0_i32_0 = arith.constant 0 : i32
    %c0_i32_1 = arith.constant 0 : i32
    return %c0_i32, %c0_i32_0 : i32, i32
  }
  func.func @transform_16(%arg0: i32) -> (i32, i32) {
    %c0_i32 = arith.constant 0 : i32
    %c0_i32_0 = arith.constant 0 : i32
    %c0_i32_1 = arith.constant 0 : i32
    return %c0_i32, %c0_i32_0 : i32, i32
  }
  func.func @transform_17(%arg0: i32) -> (i32, i32) {
    %c0_i32 = arith.constant 0 : i32
    %c0_i32_0 = arith.constant 0 : i32
    %c0_i32_1 = arith.constant 0 : i32
    return %c0_i32, %c0_i32_0 : i32, i32
  }
  func.func @transform_18(%arg0: i32) -> (i32, i32) {
    %c0_i32 = arith.constant 0 : i32
    %c0_i32_0 = arith.constant 0 : i32
    %c0_i32_1 = arith.constant 0 : i32
    return %c0_i32, %c0_i32_0 : i32, i32
  }
  func.func @transform_19(%arg0: i32) -> (i32, i32) {
    %c0_i32 = arith.constant 0 : i32
    %c0_i32_0 = arith.constant 0 : i32
    %c0_i32_1 = arith.constant 0 : i32
    return %c0_i32, %c0_i32_0 : i32, i32
  }
  func.func @transform_20(%arg0: i32) -> (i32, i32) {
    %c0_i32 = arith.constant 0 : i32
    %c0_i32_0 = arith.constant 0 : i32
    %c0_i32_1 = arith.constant 0 : i32
    return %c0_i32, %c0_i32_0 : i32, i32
  }
  func.func @transform_21(%arg0: i32) -> (i32, i32) {
    %c0_i32 = arith.constant 0 : i32
    %c0_i32_0 = arith.constant 0 : i32
    %c0_i32_1 = arith.constant 0 : i32
    return %c0_i32, %c0_i32_0 : i32, i32
  }
  func.func @transform_22(%arg0: i32) -> (i32, i32, i32) {
    %c0_i32 = arith.constant 0 : i32
    %c0_i32_0 = arith.constant 0 : i32
    %c0_i32_1 = arith.constant 0 : i32
    return %arg0, %c0_i32, %c0_i32_0 : i32, i32, i32
  }
}

module attributes {stable_mosaic.version = 11 : i64} {
  func.func @_decoder_block_kernel(%arg0: i32, %arg1: memref<2x8x32xf32, #tpu.memory_space<vmem>>, %arg2: memref<2x8x32xf32, #tpu.memory_space<vmem>>, %arg3: memref<32x96xf32, #tpu.memory_space<vmem>>, %arg4: memref<1x96xf32, #tpu.memory_space<vmem>>, %arg5: memref<32x32xf32, #tpu.memory_space<vmem>>, %arg6: memref<1x32xf32, #tpu.memory_space<vmem>>, %arg7: memref<1x32xf32, #tpu.memory_space<vmem>>, %arg8: memref<1x32xf32, #tpu.memory_space<vmem>>, %arg9: memref<32x32xf32, #tpu.memory_space<vmem>>, %arg10: memref<1x32xf32, #tpu.memory_space<vmem>>, %arg11: memref<32x64xf32, #tpu.memory_space<vmem>>, %arg12: memref<1x64xf32, #tpu.memory_space<vmem>>, %arg13: memref<32x32xf32, #tpu.memory_space<vmem>>, %arg14: memref<1x32xf32, #tpu.memory_space<vmem>>, %arg15: memref<1x32xf32, #tpu.memory_space<vmem>>, %arg16: memref<1x32xf32, #tpu.memory_space<vmem>>, %arg17: memref<32x128xf32, #tpu.memory_space<vmem>>, %arg18: memref<1x128xf32, #tpu.memory_space<vmem>>, %arg19: memref<128x32xf32, #tpu.memory_space<vmem>>, %arg20: memref<1x32xf32, #tpu.memory_space<vmem>>, %arg21: memref<1x32xf32, #tpu.memory_space<vmem>>, %arg22: memref<1x32xf32, #tpu.memory_space<vmem>>, %arg23: memref<2x8x32xf32, #tpu.memory_space<vmem>>) attributes {dimension_semantics = [#tpu.dimension_semantics<parallel>], iteration_bounds = array<i64: 1>, scalar_prefetch = 0 : i64, scratch_operands = 0 : i64, tpu.core_type = #tpu.core_type<tc>, window_params = [{transform_indices = @transform_0, window_bounds = array<i64: 2, 8, 32>}, {transform_indices = @transform_1, window_bounds = array<i64: 2, 8, 32>}, {pipeline_mode = #tpu.pipeline_mode<synchronous>, transform_indices = @transform_2, window_bounds = array<i64: 32, 96>}, {pipeline_mode = #tpu.pipeline_mode<synchronous>, transform_indices = @transform_3, window_bounds = array<i64: 1, 96>}, {pipeline_mode = #tpu.pipeline_mode<synchronous>, transform_indices = @transform_4, window_bounds = array<i64: 32, 32>}, {pipeline_mode = #tpu.pipeline_mode<synchronous>, transform_indices = @transform_5, window_bounds = array<i64: 1, 32>}, {pipeline_mode = #tpu.pipeline_mode<synchronous>, transform_indices = @transform_6, window_bounds = array<i64: 1, 32>}, {pipeline_mode = #tpu.pipeline_mode<synchronous>, transform_indices = @transform_7, window_bounds = array<i64: 1, 32>}, {pipeline_mode = #tpu.pipeline_mode<synchronous>, transform_indices = @transform_8, window_bounds = array<i64: 32, 32>}, {pipeline_mode = #tpu.pipeline_mode<synchronous>, transform_indices = @transform_9, window_bounds = array<i64: 1, 32>}, {pipeline_mode = #tpu.pipeline_mode<synchronous>, transform_indices = @transform_10, window_bounds = array<i64: 32, 64>}, {pipeline_mode = #tpu.pipeline_mode<synchronous>, transform_indices = @transform_11, window_bounds = array<i64: 1, 64>}, {pipeline_mode = #tpu.pipeline_mode<synchronous>, transform_indices = @transform_12, window_bounds = array<i64: 32, 32>}, {pipeline_mode = #tpu.pipeline_mode<synchronous>, transform_indices = @transform_13, window_bounds = array<i64: 1, 32>}, {pipeline_mode = #tpu.pipeline_mode<synchronous>, transform_indices = @transform_14, window_bounds = array<i64: 1, 32>}, {pipeline_mode = #tpu.pipeline_mode<synchronous>, transform_indices = @transform_15, window_bounds = array<i64: 1, 32>}, {pipeline_mode = #tpu.pipeline_mode<synchronous>, transform_indices = @transform_16, window_bounds = array<i64: 32, 128>}, {pipeline_mode = #tpu.pipeline_mode<synchronous>, transform_indices = @transform_17, window_bounds = array<i64: 1, 128>}, {pipeline_mode = #tpu.pipeline_mode<synchronous>, transform_indices = @transform_18, window_bounds = array<i64: 128, 32>}, {pipeline_mode = #tpu.pipeline_mode<synchronous>, transform_indices = @transform_19, window_bounds = array<i64: 1, 32>}, {pipeline_mode = #tpu.pipeline_mode<synchronous>, transform_indices = @transform_20, window_bounds = array<i64: 1, 32>}, {pipeline_mode = #tpu.pipeline_mode<synchronous>, transform_indices = @transform_21, window_bounds = array<i64: 1, 32>}, {transform_indices = @transform_22, window_bounds = array<i64: 2, 8, 32>}]} {
    %c0 = arith.constant 0 : index
    %c0_0 = arith.constant 0 : index
    %c0_1 = arith.constant 0 : index
    %0 = vector.load %arg1[%c0, %c0_0, %c0_1] : memref<2x8x32xf32, #tpu.memory_space<vmem>>, vector<2x8x32xf32>
    %1 = vector.shape_cast %0 : vector<2x8x32xf32> to vector<16x32xf32>
    %c0_2 = arith.constant 0 : index
    %c0_3 = arith.constant 0 : index
    %c0_4 = arith.constant 0 : index
    %2 = vector.load %arg2[%c0_2, %c0_3, %c0_4] : memref<2x8x32xf32, #tpu.memory_space<vmem>>, vector<2x8x32xf32>
    %3 = vector.shape_cast %2 : vector<2x8x32xf32> to vector<16x32xf32>
    %c0_5 = arith.constant 0 : index
    %c0_6 = arith.constant 0 : index
    %4 = vector.load %arg3[%c0_5, %c0_6] : memref<32x96xf32, #tpu.memory_space<vmem>>, vector<32x96xf32>
    %cst = arith.constant dense<0.000000e+00> : vector<16x96xf32>
    %5 = tpu.matmul %1, %4, %cst {dimension_numbers = #tpu.dot_dimension_numbers<[1], [0], [0], [1], [0, 0, 1, 1], [], []>} : vector<16x32xf32>, vector<32x96xf32>, vector<16x96xf32> -> vector<16x96xf32>
    %c0_7 = arith.constant 0 : index
    %c0_8 = arith.constant 0 : index
    %6 = vector.load %arg4[%c0_7, %c0_8] : memref<1x96xf32, #tpu.memory_space<vmem>>, vector<1x96xf32>
    %7 = vector.broadcast %6 : vector<1x96xf32> to vector<16x96xf32>
    %8 = arith.addf %5, %7 : vector<16x96xf32>
    %9 = vector.extract_strided_slice %8 {offsets = [0, 0], sizes = [16, 32], strides = [1, 1]} : vector<16x96xf32> to vector<16x32xf32>
    %10 = vector.extract_strided_slice %8 {offsets = [0, 32], sizes = [16, 32], strides = [1, 1]} : vector<16x96xf32> to vector<16x32xf32>
    %11 = vector.extract_strided_slice %8 {offsets = [0, 64], sizes = [16, 32], strides = [1, 1]} : vector<16x96xf32> to vector<16x32xf32>
    %12 = vector.shape_cast %9 : vector<16x32xf32> to vector<2x8x32xf32>
    %13 = vector.shape_cast %10 : vector<16x32xf32> to vector<2x8x32xf32>
    %14 = vector.shape_cast %11 : vector<16x32xf32> to vector<2x8x32xf32>
    %c0_9 = arith.constant 0 : index
    %c0_10 = arith.constant 0 : index
    %15 = vector.load %arg5[%c0_9, %c0_10] : memref<32x32xf32, #tpu.memory_space<vmem>>, vector<32x32xf32>
    %cst_11 = arith.constant 0.000000e+00 : f32
    %16 = vector.broadcast %cst_11 : f32 to vector<16x32xf32>
    %17 = vector.extract_strided_slice %12 {offsets = [0, 0, 0], sizes = [2, 8, 8], strides = [1, 1, 1]} : vector<2x8x32xf32> to vector<2x8x8xf32>
    %18 = vector.extract_strided_slice %13 {offsets = [0, 0, 0], sizes = [2, 8, 8], strides = [1, 1, 1]} : vector<2x8x32xf32> to vector<2x8x8xf32>
    "tpu.trace_start"() <{level = 10 : i32, message = "bqd,bkd->bqk"}> : () -> ()
    %cst_12 = arith.constant dense<0.000000e+00> : vector<2x8x8xf32>
    %19 = tpu.matmul %17, %18, %cst_12 {dimension_numbers = #tpu.dot_dimension_numbers<[2], [2], [1], [1], [0, 0, 0, 1, 1, 1], [0], [0]>} : vector<2x8x8xf32>, vector<2x8x8xf32>, vector<2x8x8xf32> -> vector<2x8x8xf32>
    "tpu.trace_stop"() : () -> ()
    %cst_13 = arith.constant dense<0xFF800000> : vector<2x8xf32>
    %20 = vector.multi_reduction <maximumf>, %19, %cst_13 [2] : vector<2x8x8xf32> to vector<2x8xf32>
    %21 = vector.shape_cast %20 : vector<2x8xf32> to vector<2x8x1xf32>
    %22 = vector.broadcast %21 : vector<2x8x1xf32> to vector<2x8x8xf32>
    %23 = arith.subf %19, %22 : vector<2x8x8xf32>
    %24 = math.exp %23 : vector<2x8x8xf32>
    %cst_14 = arith.constant dense<0.000000e+00> : vector<2x8xf32>
    %25 = vector.multi_reduction <add>, %24, %cst_14 [2] : vector<2x8x8xf32> to vector<2x8xf32>
    %26 = vector.shape_cast %25 : vector<2x8xf32> to vector<2x8x1xf32>
    %27 = tpu.reciprocal %26 {approx = true} : vector<2x8x1xf32> -> vector<2x8x1xf32>
    %28 = vector.broadcast %27 : vector<2x8x1xf32> to vector<2x8x8xf32>
    %29 = arith.mulf %24, %28 : vector<2x8x8xf32>
    %30 = vector.extract_strided_slice %14 {offsets = [0, 0, 0], sizes = [2, 8, 8], strides = [1, 1, 1]} : vector<2x8x32xf32> to vector<2x8x8xf32>
    "tpu.trace_start"() <{level = 10 : i32, message = "bqk,bkd->bqd"}> : () -> ()
    %cst_15 = arith.constant dense<0.000000e+00> : vector<2x8x8xf32>
    %31 = tpu.matmul %29, %30, %cst_15 {dimension_numbers = #tpu.dot_dimension_numbers<[2], [1], [1], [2], [0, 0, 0, 1, 1, 2], [0], [0]>} : vector<2x8x8xf32>, vector<2x8x8xf32>, vector<2x8x8xf32> -> vector<2x8x8xf32>
    "tpu.trace_stop"() : () -> ()
    %32 = vector.shape_cast %31 : vector<2x8x8xf32> to vector<16x8xf32>
    %33 = vector.extract_strided_slice %15 {offsets = [0, 0], sizes = [8, 32], strides = [1, 1]} : vector<32x32xf32> to vector<8x32xf32>
    %cst_16 = arith.constant dense<0.000000e+00> : vector<16x32xf32>
    %34 = tpu.matmul %32, %33, %cst_16 {dimension_numbers = #tpu.dot_dimension_numbers<[1], [0], [0], [1], [0, 0, 1, 1], [], []>} : vector<16x8xf32>, vector<8x32xf32>, vector<16x32xf32> -> vector<16x32xf32>
    %35 = arith.addf %16, %34 : vector<16x32xf32>
    %36 = vector.extract_strided_slice %12 {offsets = [0, 0, 8], sizes = [2, 8, 8], strides = [1, 1, 1]} : vector<2x8x32xf32> to vector<2x8x8xf32>
    %37 = vector.extract_strided_slice %13 {offsets = [0, 0, 8], sizes = [2, 8, 8], strides = [1, 1, 1]} : vector<2x8x32xf32> to vector<2x8x8xf32>
    "tpu.trace_start"() <{level = 10 : i32, message = "bqd,bkd->bqk"}> : () -> ()
    %cst_17 = arith.constant dense<0.000000e+00> : vector<2x8x8xf32>
    %38 = tpu.matmul %36, %37, %cst_17 {dimension_numbers = #tpu.dot_dimension_numbers<[2], [2], [1], [1], [0, 0, 0, 1, 1, 1], [0], [0]>} : vector<2x8x8xf32>, vector<2x8x8xf32>, vector<2x8x8xf32> -> vector<2x8x8xf32>
    "tpu.trace_stop"() : () -> ()
    %cst_18 = arith.constant dense<0xFF800000> : vector<2x8xf32>
    %39 = vector.multi_reduction <maximumf>, %38, %cst_18 [2] : vector<2x8x8xf32> to vector<2x8xf32>
    %40 = vector.shape_cast %39 : vector<2x8xf32> to vector<2x8x1xf32>
    %41 = vector.broadcast %40 : vector<2x8x1xf32> to vector<2x8x8xf32>
    %42 = arith.subf %38, %41 : vector<2x8x8xf32>
    %43 = math.exp %42 : vector<2x8x8xf32>
    %cst_19 = arith.constant dense<0.000000e+00> : vector<2x8xf32>
    %44 = vector.multi_reduction <add>, %43, %cst_19 [2] : vector<2x8x8xf32> to vector<2x8xf32>
    %45 = vector.shape_cast %44 : vector<2x8xf32> to vector<2x8x1xf32>
    %46 = tpu.reciprocal %45 {approx = true} : vector<2x8x1xf32> -> vector<2x8x1xf32>
    %47 = vector.broadcast %46 : vector<2x8x1xf32> to vector<2x8x8xf32>
    %48 = arith.mulf %43, %47 : vector<2x8x8xf32>
    %49 = vector.extract_strided_slice %14 {offsets = [0, 0, 8], sizes = [2, 8, 8], strides = [1, 1, 1]} : vector<2x8x32xf32> to vector<2x8x8xf32>
    "tpu.trace_start"() <{level = 10 : i32, message = "bqk,bkd->bqd"}> : () -> ()
    %cst_20 = arith.constant dense<0.000000e+00> : vector<2x8x8xf32>
    %50 = tpu.matmul %48, %49, %cst_20 {dimension_numbers = #tpu.dot_dimension_numbers<[2], [1], [1], [2], [0, 0, 0, 1, 1, 2], [0], [0]>} : vector<2x8x8xf32>, vector<2x8x8xf32>, vector<2x8x8xf32> -> vector<2x8x8xf32>
    "tpu.trace_stop"() : () -> ()
    %51 = vector.shape_cast %50 : vector<2x8x8xf32> to vector<16x8xf32>
    %52 = vector.extract_strided_slice %15 {offsets = [8, 0], sizes = [8, 32], strides = [1, 1]} : vector<32x32xf32> to vector<8x32xf32>
    %cst_21 = arith.constant dense<0.000000e+00> : vector<16x32xf32>
    %53 = tpu.matmul %51, %52, %cst_21 {dimension_numbers = #tpu.dot_dimension_numbers<[1], [0], [0], [1], [0, 0, 1, 1], [], []>} : vector<16x8xf32>, vector<8x32xf32>, vector<16x32xf32> -> vector<16x32xf32>
    %54 = arith.addf %35, %53 : vector<16x32xf32>
    %55 = vector.extract_strided_slice %12 {offsets = [0, 0, 16], sizes = [2, 8, 8], strides = [1, 1, 1]} : vector<2x8x32xf32> to vector<2x8x8xf32>
    %56 = vector.extract_strided_slice %13 {offsets = [0, 0, 16], sizes = [2, 8, 8], strides = [1, 1, 1]} : vector<2x8x32xf32> to vector<2x8x8xf32>
    "tpu.trace_start"() <{level = 10 : i32, message = "bqd,bkd->bqk"}> : () -> ()
    %cst_22 = arith.constant dense<0.000000e+00> : vector<2x8x8xf32>
    %57 = tpu.matmul %55, %56, %cst_22 {dimension_numbers = #tpu.dot_dimension_numbers<[2], [2], [1], [1], [0, 0, 0, 1, 1, 1], [0], [0]>} : vector<2x8x8xf32>, vector<2x8x8xf32>, vector<2x8x8xf32> -> vector<2x8x8xf32>
    "tpu.trace_stop"() : () -> ()
    %cst_23 = arith.constant dense<0xFF800000> : vector<2x8xf32>
    %58 = vector.multi_reduction <maximumf>, %57, %cst_23 [2] : vector<2x8x8xf32> to vector<2x8xf32>
    %59 = vector.shape_cast %58 : vector<2x8xf32> to vector<2x8x1xf32>
    %60 = vector.broadcast %59 : vector<2x8x1xf32> to vector<2x8x8xf32>
    %61 = arith.subf %57, %60 : vector<2x8x8xf32>
    %62 = math.exp %61 : vector<2x8x8xf32>
    %cst_24 = arith.constant dense<0.000000e+00> : vector<2x8xf32>
    %63 = vector.multi_reduction <add>, %62, %cst_24 [2] : vector<2x8x8xf32> to vector<2x8xf32>
    %64 = vector.shape_cast %63 : vector<2x8xf32> to vector<2x8x1xf32>
    %65 = tpu.reciprocal %64 {approx = true} : vector<2x8x1xf32> -> vector<2x8x1xf32>
    %66 = vector.broadcast %65 : vector<2x8x1xf32> to vector<2x8x8xf32>
    %67 = arith.mulf %62, %66 : vector<2x8x8xf32>
    %68 = vector.extract_strided_slice %14 {offsets = [0, 0, 16], sizes = [2, 8, 8], strides = [1, 1, 1]} : vector<2x8x32xf32> to vector<2x8x8xf32>
    "tpu.trace_start"() <{level = 10 : i32, message = "bqk,bkd->bqd"}> : () -> ()
    %cst_25 = arith.constant dense<0.000000e+00> : vector<2x8x8xf32>
    %69 = tpu.matmul %67, %68, %cst_25 {dimension_numbers = #tpu.dot_dimension_numbers<[2], [1], [1], [2], [0, 0, 0, 1, 1, 2], [0], [0]>} : vector<2x8x8xf32>, vector<2x8x8xf32>, vector<2x8x8xf32> -> vector<2x8x8xf32>
    "tpu.trace_stop"() : () -> ()
    %70 = vector.shape_cast %69 : vector<2x8x8xf32> to vector<16x8xf32>
    %71 = vector.extract_strided_slice %15 {offsets = [16, 0], sizes = [8, 32], strides = [1, 1]} : vector<32x32xf32> to vector<8x32xf32>
    %cst_26 = arith.constant dense<0.000000e+00> : vector<16x32xf32>
    %72 = tpu.matmul %70, %71, %cst_26 {dimension_numbers = #tpu.dot_dimension_numbers<[1], [0], [0], [1], [0, 0, 1, 1], [], []>} : vector<16x8xf32>, vector<8x32xf32>, vector<16x32xf32> -> vector<16x32xf32>
    %73 = arith.addf %54, %72 : vector<16x32xf32>
    %74 = vector.extract_strided_slice %12 {offsets = [0, 0, 24], sizes = [2, 8, 8], strides = [1, 1, 1]} : vector<2x8x32xf32> to vector<2x8x8xf32>
    %75 = vector.extract_strided_slice %13 {offsets = [0, 0, 24], sizes = [2, 8, 8], strides = [1, 1, 1]} : vector<2x8x32xf32> to vector<2x8x8xf32>
    "tpu.trace_start"() <{level = 10 : i32, message = "bqd,bkd->bqk"}> : () -> ()
    %cst_27 = arith.constant dense<0.000000e+00> : vector<2x8x8xf32>
    %76 = tpu.matmul %74, %75, %cst_27 {dimension_numbers = #tpu.dot_dimension_numbers<[2], [2], [1], [1], [0, 0, 0, 1, 1, 1], [0], [0]>} : vector<2x8x8xf32>, vector<2x8x8xf32>, vector<2x8x8xf32> -> vector<2x8x8xf32>
    "tpu.trace_stop"() : () -> ()
    %cst_28 = arith.constant dense<0xFF800000> : vector<2x8xf32>
    %77 = vector.multi_reduction <maximumf>, %76, %cst_28 [2] : vector<2x8x8xf32> to vector<2x8xf32>
    %78 = vector.shape_cast %77 : vector<2x8xf32> to vector<2x8x1xf32>
    %79 = vector.broadcast %78 : vector<2x8x1xf32> to vector<2x8x8xf32>
    %80 = arith.subf %76, %79 : vector<2x8x8xf32>
    %81 = math.exp %80 : vector<2x8x8xf32>
    %cst_29 = arith.constant dense<0.000000e+00> : vector<2x8xf32>
    %82 = vector.multi_reduction <add>, %81, %cst_29 [2] : vector<2x8x8xf32> to vector<2x8xf32>
    %83 = vector.shape_cast %82 : vector<2x8xf32> to vector<2x8x1xf32>
    %84 = tpu.reciprocal %83 {approx = true} : vector<2x8x1xf32> -> vector<2x8x1xf32>
    %85 = vector.broadcast %84 : vector<2x8x1xf32> to vector<2x8x8xf32>
    %86 = arith.mulf %81, %85 : vector<2x8x8xf32>
    %87 = vector.extract_strided_slice %14 {offsets = [0, 0, 24], sizes = [2, 8, 8], strides = [1, 1, 1]} : vector<2x8x32xf32> to vector<2x8x8xf32>
    "tpu.trace_start"() <{level = 10 : i32, message = "bqk,bkd->bqd"}> : () -> ()
    %cst_30 = arith.constant dense<0.000000e+00> : vector<2x8x8xf32>
    %88 = tpu.matmul %86, %87, %cst_30 {dimension_numbers = #tpu.dot_dimension_numbers<[2], [1], [1], [2], [0, 0, 0, 1, 1, 2], [0], [0]>} : vector<2x8x8xf32>, vector<2x8x8xf32>, vector<2x8x8xf32> -> vector<2x8x8xf32>
    "tpu.trace_stop"() : () -> ()
    %89 = vector.shape_cast %88 : vector<2x8x8xf32> to vector<16x8xf32>
    %90 = vector.extract_strided_slice %15 {offsets = [24, 0], sizes = [8, 32], strides = [1, 1]} : vector<32x32xf32> to vector<8x32xf32>
    %cst_31 = arith.constant dense<0.000000e+00> : vector<16x32xf32>
    %91 = tpu.matmul %89, %90, %cst_31 {dimension_numbers = #tpu.dot_dimension_numbers<[1], [0], [0], [1], [0, 0, 1, 1], [], []>} : vector<16x8xf32>, vector<8x32xf32>, vector<16x32xf32> -> vector<16x32xf32>
    %92 = arith.addf %73, %91 : vector<16x32xf32>
    %c0_32 = arith.constant 0 : index
    %c0_33 = arith.constant 0 : index
    %93 = vector.load %arg6[%c0_32, %c0_33] : memref<1x32xf32, #tpu.memory_space<vmem>>, vector<1x32xf32>
    %94 = vector.broadcast %93 : vector<1x32xf32> to vector<16x32xf32>
    %95 = arith.addf %92, %94 : vector<16x32xf32>
    %96 = arith.addf %1, %95 : vector<16x32xf32>
    %cst_34 = arith.constant dense<0.000000e+00> : vector<16xf32>
    %97 = vector.multi_reduction <add>, %96, %cst_34 [1] : vector<16x32xf32> to vector<16xf32>
    %98 = vector.shape_cast %97 : vector<16xf32> to vector<16x1xf32>
    %cst_35 = arith.constant 3.200000e+01 : f32
    %99 = vector.broadcast %cst_35 : f32 to vector<16x1xf32>
    %100 = arith.divf %98, %99 : vector<16x1xf32>
    %101 = vector.broadcast %100 : vector<16x1xf32> to vector<16x32xf32>
    %102 = arith.subf %96, %101 : vector<16x32xf32>
    %103 = arith.mulf %102, %102 : vector<16x32xf32>
    %cst_36 = arith.constant dense<0.000000e+00> : vector<16xf32>
    %104 = vector.multi_reduction <add>, %103, %cst_36 [1] : vector<16x32xf32> to vector<16xf32>
    %105 = vector.shape_cast %104 : vector<16xf32> to vector<16x1xf32>
    %cst_37 = arith.constant 3.200000e+01 : f32
    %106 = vector.broadcast %cst_37 : f32 to vector<16x1xf32>
    %107 = arith.divf %105, %106 : vector<16x1xf32>
    %108 = vector.broadcast %100 : vector<16x1xf32> to vector<16x32xf32>
    %109 = arith.subf %96, %108 : vector<16x32xf32>
    %cst_38 = arith.constant 9.99999974E-6 : f32
    %110 = vector.broadcast %cst_38 : f32 to vector<16x1xf32>
    %111 = arith.addf %107, %110 : vector<16x1xf32>
    %112 = math.rsqrt %111 : vector<16x1xf32>
    %113 = vector.broadcast %112 : vector<16x1xf32> to vector<16x32xf32>
    %114 = arith.mulf %109, %113 : vector<16x32xf32>
    %c0_39 = arith.constant 0 : index
    %c0_40 = arith.constant 0 : index
    %115 = vector.load %arg7[%c0_39, %c0_40] : memref<1x32xf32, #tpu.memory_space<vmem>>, vector<1x32xf32>
    %116 = vector.broadcast %115 : vector<1x32xf32> to vector<16x32xf32>
    %117 = arith.mulf %114, %116 : vector<16x32xf32>
    %c0_41 = arith.constant 0 : index
    %c0_42 = arith.constant 0 : index
    %118 = vector.load %arg8[%c0_41, %c0_42] : memref<1x32xf32, #tpu.memory_space<vmem>>, vector<1x32xf32>
    %119 = vector.broadcast %118 : vector<1x32xf32> to vector<16x32xf32>
    %120 = arith.addf %117, %119 : vector<16x32xf32>
    %c0_43 = arith.constant 0 : index
    %c0_44 = arith.constant 0 : index
    %121 = vector.load %arg9[%c0_43, %c0_44] : memref<32x32xf32, #tpu.memory_space<vmem>>, vector<32x32xf32>
    %cst_45 = arith.constant dense<0.000000e+00> : vector<16x32xf32>
    %122 = tpu.matmul %120, %121, %cst_45 {dimension_numbers = #tpu.dot_dimension_numbers<[1], [0], [0], [1], [0, 0, 1, 1], [], []>} : vector<16x32xf32>, vector<32x32xf32>, vector<16x32xf32> -> vector<16x32xf32>
    %c0_46 = arith.constant 0 : index
    %c0_47 = arith.constant 0 : index
    %123 = vector.load %arg10[%c0_46, %c0_47] : memref<1x32xf32, #tpu.memory_space<vmem>>, vector<1x32xf32>
    %124 = vector.broadcast %123 : vector<1x32xf32> to vector<16x32xf32>
    %125 = arith.addf %122, %124 : vector<16x32xf32>
    %c0_48 = arith.constant 0 : index
    %c0_49 = arith.constant 0 : index
    %126 = vector.load %arg11[%c0_48, %c0_49] : memref<32x64xf32, #tpu.memory_space<vmem>>, vector<32x64xf32>
    %cst_50 = arith.constant dense<0.000000e+00> : vector<16x64xf32>
    %127 = tpu.matmul %3, %126, %cst_50 {dimension_numbers = #tpu.dot_dimension_numbers<[1], [0], [0], [1], [0, 0, 1, 1], [], []>} : vector<16x32xf32>, vector<32x64xf32>, vector<16x64xf32> -> vector<16x64xf32>
    %c0_51 = arith.constant 0 : index
    %c0_52 = arith.constant 0 : index
    %128 = vector.load %arg12[%c0_51, %c0_52] : memref<1x64xf32, #tpu.memory_space<vmem>>, vector<1x64xf32>
    %129 = vector.broadcast %128 : vector<1x64xf32> to vector<16x64xf32>
    %130 = arith.addf %127, %129 : vector<16x64xf32>
    %131 = vector.extract_strided_slice %130 {offsets = [0, 0], sizes = [16, 32], strides = [1, 1]} : vector<16x64xf32> to vector<16x32xf32>
    %132 = vector.extract_strided_slice %130 {offsets = [0, 32], sizes = [16, 32], strides = [1, 1]} : vector<16x64xf32> to vector<16x32xf32>
    %133 = vector.shape_cast %125 : vector<16x32xf32> to vector<2x8x32xf32>
    %134 = vector.shape_cast %131 : vector<16x32xf32> to vector<2x8x32xf32>
    %135 = vector.shape_cast %132 : vector<16x32xf32> to vector<2x8x32xf32>
    %c0_53 = arith.constant 0 : index
    %c0_54 = arith.constant 0 : index
    %136 = vector.load %arg13[%c0_53, %c0_54] : memref<32x32xf32, #tpu.memory_space<vmem>>, vector<32x32xf32>
    %cst_55 = arith.constant 0.000000e+00 : f32
    %137 = vector.broadcast %cst_55 : f32 to vector<16x32xf32>
    %138 = vector.extract_strided_slice %133 {offsets = [0, 0, 0], sizes = [2, 8, 8], strides = [1, 1, 1]} : vector<2x8x32xf32> to vector<2x8x8xf32>
    %139 = vector.extract_strided_slice %134 {offsets = [0, 0, 0], sizes = [2, 8, 8], strides = [1, 1, 1]} : vector<2x8x32xf32> to vector<2x8x8xf32>
    "tpu.trace_start"() <{level = 10 : i32, message = "bqd,bkd->bqk"}> : () -> ()
    %cst_56 = arith.constant dense<0.000000e+00> : vector<2x8x8xf32>
    %140 = tpu.matmul %138, %139, %cst_56 {dimension_numbers = #tpu.dot_dimension_numbers<[2], [2], [1], [1], [0, 0, 0, 1, 1, 1], [0], [0]>} : vector<2x8x8xf32>, vector<2x8x8xf32>, vector<2x8x8xf32> -> vector<2x8x8xf32>
    "tpu.trace_stop"() : () -> ()
    %cst_57 = arith.constant dense<0xFF800000> : vector<2x8xf32>
    %141 = vector.multi_reduction <maximumf>, %140, %cst_57 [2] : vector<2x8x8xf32> to vector<2x8xf32>
    %142 = vector.shape_cast %141 : vector<2x8xf32> to vector<2x8x1xf32>
    %143 = vector.broadcast %142 : vector<2x8x1xf32> to vector<2x8x8xf32>
    %144 = arith.subf %140, %143 : vector<2x8x8xf32>
    %145 = math.exp %144 : vector<2x8x8xf32>
    %cst_58 = arith.constant dense<0.000000e+00> : vector<2x8xf32>
    %146 = vector.multi_reduction <add>, %145, %cst_58 [2] : vector<2x8x8xf32> to vector<2x8xf32>
    %147 = vector.shape_cast %146 : vector<2x8xf32> to vector<2x8x1xf32>
    %148 = tpu.reciprocal %147 {approx = true} : vector<2x8x1xf32> -> vector<2x8x1xf32>
    %149 = vector.broadcast %148 : vector<2x8x1xf32> to vector<2x8x8xf32>
    %150 = arith.mulf %145, %149 : vector<2x8x8xf32>
    %151 = vector.extract_strided_slice %135 {offsets = [0, 0, 0], sizes = [2, 8, 8], strides = [1, 1, 1]} : vector<2x8x32xf32> to vector<2x8x8xf32>
    "tpu.trace_start"() <{level = 10 : i32, message = "bqk,bkd->bqd"}> : () -> ()
    %cst_59 = arith.constant dense<0.000000e+00> : vector<2x8x8xf32>
    %152 = tpu.matmul %150, %151, %cst_59 {dimension_numbers = #tpu.dot_dimension_numbers<[2], [1], [1], [2], [0, 0, 0, 1, 1, 2], [0], [0]>} : vector<2x8x8xf32>, vector<2x8x8xf32>, vector<2x8x8xf32> -> vector<2x8x8xf32>
    "tpu.trace_stop"() : () -> ()
    %153 = vector.shape_cast %152 : vector<2x8x8xf32> to vector<16x8xf32>
    %154 = vector.extract_strided_slice %136 {offsets = [0, 0], sizes = [8, 32], strides = [1, 1]} : vector<32x32xf32> to vector<8x32xf32>
    %cst_60 = arith.constant dense<0.000000e+00> : vector<16x32xf32>
    %155 = tpu.matmul %153, %154, %cst_60 {dimension_numbers = #tpu.dot_dimension_numbers<[1], [0], [0], [1], [0, 0, 1, 1], [], []>} : vector<16x8xf32>, vector<8x32xf32>, vector<16x32xf32> -> vector<16x32xf32>
    %156 = arith.addf %137, %155 : vector<16x32xf32>
    %157 = vector.extract_strided_slice %133 {offsets = [0, 0, 8], sizes = [2, 8, 8], strides = [1, 1, 1]} : vector<2x8x32xf32> to vector<2x8x8xf32>
    %158 = vector.extract_strided_slice %134 {offsets = [0, 0, 8], sizes = [2, 8, 8], strides = [1, 1, 1]} : vector<2x8x32xf32> to vector<2x8x8xf32>
    "tpu.trace_start"() <{level = 10 : i32, message = "bqd,bkd->bqk"}> : () -> ()
    %cst_61 = arith.constant dense<0.000000e+00> : vector<2x8x8xf32>
    %159 = tpu.matmul %157, %158, %cst_61 {dimension_numbers = #tpu.dot_dimension_numbers<[2], [2], [1], [1], [0, 0, 0, 1, 1, 1], [0], [0]>} : vector<2x8x8xf32>, vector<2x8x8xf32>, vector<2x8x8xf32> -> vector<2x8x8xf32>
    "tpu.trace_stop"() : () -> ()
    %cst_62 = arith.constant dense<0xFF800000> : vector<2x8xf32>
    %160 = vector.multi_reduction <maximumf>, %159, %cst_62 [2] : vector<2x8x8xf32> to vector<2x8xf32>
    %161 = vector.shape_cast %160 : vector<2x8xf32> to vector<2x8x1xf32>
    %162 = vector.broadcast %161 : vector<2x8x1xf32> to vector<2x8x8xf32>
    %163 = arith.subf %159, %162 : vector<2x8x8xf32>
    %164 = math.exp %163 : vector<2x8x8xf32>
    %cst_63 = arith.constant dense<0.000000e+00> : vector<2x8xf32>
    %165 = vector.multi_reduction <add>, %164, %cst_63 [2] : vector<2x8x8xf32> to vector<2x8xf32>
    %166 = vector.shape_cast %165 : vector<2x8xf32> to vector<2x8x1xf32>
    %167 = tpu.reciprocal %166 {approx = true} : vector<2x8x1xf32> -> vector<2x8x1xf32>
    %168 = vector.broadcast %167 : vector<2x8x1xf32> to vector<2x8x8xf32>
    %169 = arith.mulf %164, %168 : vector<2x8x8xf32>
    %170 = vector.extract_strided_slice %135 {offsets = [0, 0, 8], sizes = [2, 8, 8], strides = [1, 1, 1]} : vector<2x8x32xf32> to vector<2x8x8xf32>
    "tpu.trace_start"() <{level = 10 : i32, message = "bqk,bkd->bqd"}> : () -> ()
    %cst_64 = arith.constant dense<0.000000e+00> : vector<2x8x8xf32>
    %171 = tpu.matmul %169, %170, %cst_64 {dimension_numbers = #tpu.dot_dimension_numbers<[2], [1], [1], [2], [0, 0, 0, 1, 1, 2], [0], [0]>} : vector<2x8x8xf32>, vector<2x8x8xf32>, vector<2x8x8xf32> -> vector<2x8x8xf32>
    "tpu.trace_stop"() : () -> ()
    %172 = vector.shape_cast %171 : vector<2x8x8xf32> to vector<16x8xf32>
    %173 = vector.extract_strided_slice %136 {offsets = [8, 0], sizes = [8, 32], strides = [1, 1]} : vector<32x32xf32> to vector<8x32xf32>
    %cst_65 = arith.constant dense<0.000000e+00> : vector<16x32xf32>
    %174 = tpu.matmul %172, %173, %cst_65 {dimension_numbers = #tpu.dot_dimension_numbers<[1], [0], [0], [1], [0, 0, 1, 1], [], []>} : vector<16x8xf32>, vector<8x32xf32>, vector<16x32xf32> -> vector<16x32xf32>
    %175 = arith.addf %156, %174 : vector<16x32xf32>
    %176 = vector.extract_strided_slice %133 {offsets = [0, 0, 16], sizes = [2, 8, 8], strides = [1, 1, 1]} : vector<2x8x32xf32> to vector<2x8x8xf32>
    %177 = vector.extract_strided_slice %134 {offsets = [0, 0, 16], sizes = [2, 8, 8], strides = [1, 1, 1]} : vector<2x8x32xf32> to vector<2x8x8xf32>
    "tpu.trace_start"() <{level = 10 : i32, message = "bqd,bkd->bqk"}> : () -> ()
    %cst_66 = arith.constant dense<0.000000e+00> : vector<2x8x8xf32>
    %178 = tpu.matmul %176, %177, %cst_66 {dimension_numbers = #tpu.dot_dimension_numbers<[2], [2], [1], [1], [0, 0, 0, 1, 1, 1], [0], [0]>} : vector<2x8x8xf32>, vector<2x8x8xf32>, vector<2x8x8xf32> -> vector<2x8x8xf32>
    "tpu.trace_stop"() : () -> ()
    %cst_67 = arith.constant dense<0xFF800000> : vector<2x8xf32>
    %179 = vector.multi_reduction <maximumf>, %178, %cst_67 [2] : vector<2x8x8xf32> to vector<2x8xf32>
    %180 = vector.shape_cast %179 : vector<2x8xf32> to vector<2x8x1xf32>
    %181 = vector.broadcast %180 : vector<2x8x1xf32> to vector<2x8x8xf32>
    %182 = arith.subf %178, %181 : vector<2x8x8xf32>
    %183 = math.exp %182 : vector<2x8x8xf32>
    %cst_68 = arith.constant dense<0.000000e+00> : vector<2x8xf32>
    %184 = vector.multi_reduction <add>, %183, %cst_68 [2] : vector<2x8x8xf32> to vector<2x8xf32>
    %185 = vector.shape_cast %184 : vector<2x8xf32> to vector<2x8x1xf32>
    %186 = tpu.reciprocal %185 {approx = true} : vector<2x8x1xf32> -> vector<2x8x1xf32>
    %187 = vector.broadcast %186 : vector<2x8x1xf32> to vector<2x8x8xf32>
    %188 = arith.mulf %183, %187 : vector<2x8x8xf32>
    %189 = vector.extract_strided_slice %135 {offsets = [0, 0, 16], sizes = [2, 8, 8], strides = [1, 1, 1]} : vector<2x8x32xf32> to vector<2x8x8xf32>
    "tpu.trace_start"() <{level = 10 : i32, message = "bqk,bkd->bqd"}> : () -> ()
    %cst_69 = arith.constant dense<0.000000e+00> : vector<2x8x8xf32>
    %190 = tpu.matmul %188, %189, %cst_69 {dimension_numbers = #tpu.dot_dimension_numbers<[2], [1], [1], [2], [0, 0, 0, 1, 1, 2], [0], [0]>} : vector<2x8x8xf32>, vector<2x8x8xf32>, vector<2x8x8xf32> -> vector<2x8x8xf32>
    "tpu.trace_stop"() : () -> ()
    %191 = vector.shape_cast %190 : vector<2x8x8xf32> to vector<16x8xf32>
    %192 = vector.extract_strided_slice %136 {offsets = [16, 0], sizes = [8, 32], strides = [1, 1]} : vector<32x32xf32> to vector<8x32xf32>
    %cst_70 = arith.constant dense<0.000000e+00> : vector<16x32xf32>
    %193 = tpu.matmul %191, %192, %cst_70 {dimension_numbers = #tpu.dot_dimension_numbers<[1], [0], [0], [1], [0, 0, 1, 1], [], []>} : vector<16x8xf32>, vector<8x32xf32>, vector<16x32xf32> -> vector<16x32xf32>
    %194 = arith.addf %175, %193 : vector<16x32xf32>
    %195 = vector.extract_strided_slice %133 {offsets = [0, 0, 24], sizes = [2, 8, 8], strides = [1, 1, 1]} : vector<2x8x32xf32> to vector<2x8x8xf32>
    %196 = vector.extract_strided_slice %134 {offsets = [0, 0, 24], sizes = [2, 8, 8], strides = [1, 1, 1]} : vector<2x8x32xf32> to vector<2x8x8xf32>
    "tpu.trace_start"() <{level = 10 : i32, message = "bqd,bkd->bqk"}> : () -> ()
    %cst_71 = arith.constant dense<0.000000e+00> : vector<2x8x8xf32>
    %197 = tpu.matmul %195, %196, %cst_71 {dimension_numbers = #tpu.dot_dimension_numbers<[2], [2], [1], [1], [0, 0, 0, 1, 1, 1], [0], [0]>} : vector<2x8x8xf32>, vector<2x8x8xf32>, vector<2x8x8xf32> -> vector<2x8x8xf32>
    "tpu.trace_stop"() : () -> ()
    %cst_72 = arith.constant dense<0xFF800000> : vector<2x8xf32>
    %198 = vector.multi_reduction <maximumf>, %197, %cst_72 [2] : vector<2x8x8xf32> to vector<2x8xf32>
    %199 = vector.shape_cast %198 : vector<2x8xf32> to vector<2x8x1xf32>
    %200 = vector.broadcast %199 : vector<2x8x1xf32> to vector<2x8x8xf32>
    %201 = arith.subf %197, %200 : vector<2x8x8xf32>
    %202 = math.exp %201 : vector<2x8x8xf32>
    %cst_73 = arith.constant dense<0.000000e+00> : vector<2x8xf32>
    %203 = vector.multi_reduction <add>, %202, %cst_73 [2] : vector<2x8x8xf32> to vector<2x8xf32>
    %204 = vector.shape_cast %203 : vector<2x8xf32> to vector<2x8x1xf32>
    %205 = tpu.reciprocal %204 {approx = true} : vector<2x8x1xf32> -> vector<2x8x1xf32>
    %206 = vector.broadcast %205 : vector<2x8x1xf32> to vector<2x8x8xf32>
    %207 = arith.mulf %202, %206 : vector<2x8x8xf32>
    %208 = vector.extract_strided_slice %135 {offsets = [0, 0, 24], sizes = [2, 8, 8], strides = [1, 1, 1]} : vector<2x8x32xf32> to vector<2x8x8xf32>
    "tpu.trace_start"() <{level = 10 : i32, message = "bqk,bkd->bqd"}> : () -> ()
    %cst_74 = arith.constant dense<0.000000e+00> : vector<2x8x8xf32>
    %209 = tpu.matmul %207, %208, %cst_74 {dimension_numbers = #tpu.dot_dimension_numbers<[2], [1], [1], [2], [0, 0, 0, 1, 1, 2], [0], [0]>} : vector<2x8x8xf32>, vector<2x8x8xf32>, vector<2x8x8xf32> -> vector<2x8x8xf32>
    "tpu.trace_stop"() : () -> ()
    %210 = vector.shape_cast %209 : vector<2x8x8xf32> to vector<16x8xf32>
    %211 = vector.extract_strided_slice %136 {offsets = [24, 0], sizes = [8, 32], strides = [1, 1]} : vector<32x32xf32> to vector<8x32xf32>
    %cst_75 = arith.constant dense<0.000000e+00> : vector<16x32xf32>
    %212 = tpu.matmul %210, %211, %cst_75 {dimension_numbers = #tpu.dot_dimension_numbers<[1], [0], [0], [1], [0, 0, 1, 1], [], []>} : vector<16x8xf32>, vector<8x32xf32>, vector<16x32xf32> -> vector<16x32xf32>
    %213 = arith.addf %194, %212 : vector<16x32xf32>
    %c0_76 = arith.constant 0 : index
    %c0_77 = arith.constant 0 : index
    %214 = vector.load %arg14[%c0_76, %c0_77] : memref<1x32xf32, #tpu.memory_space<vmem>>, vector<1x32xf32>
    %215 = vector.broadcast %214 : vector<1x32xf32> to vector<16x32xf32>
    %216 = arith.addf %213, %215 : vector<16x32xf32>
    %217 = arith.addf %120, %216 : vector<16x32xf32>
    %cst_78 = arith.constant dense<0.000000e+00> : vector<16xf32>
    %218 = vector.multi_reduction <add>, %217, %cst_78 [1] : vector<16x32xf32> to vector<16xf32>
    %219 = vector.shape_cast %218 : vector<16xf32> to vector<16x1xf32>
    %cst_79 = arith.constant 3.200000e+01 : f32
    %220 = vector.broadcast %cst_79 : f32 to vector<16x1xf32>
    %221 = arith.divf %219, %220 : vector<16x1xf32>
    %222 = vector.broadcast %221 : vector<16x1xf32> to vector<16x32xf32>
    %223 = arith.subf %217, %222 : vector<16x32xf32>
    %224 = arith.mulf %223, %223 : vector<16x32xf32>
    %cst_80 = arith.constant dense<0.000000e+00> : vector<16xf32>
    %225 = vector.multi_reduction <add>, %224, %cst_80 [1] : vector<16x32xf32> to vector<16xf32>
    %226 = vector.shape_cast %225 : vector<16xf32> to vector<16x1xf32>
    %cst_81 = arith.constant 3.200000e+01 : f32
    %227 = vector.broadcast %cst_81 : f32 to vector<16x1xf32>
    %228 = arith.divf %226, %227 : vector<16x1xf32>
    %229 = vector.broadcast %221 : vector<16x1xf32> to vector<16x32xf32>
    %230 = arith.subf %217, %229 : vector<16x32xf32>
    %cst_82 = arith.constant 9.99999974E-6 : f32
    %231 = vector.broadcast %cst_82 : f32 to vector<16x1xf32>
    %232 = arith.addf %228, %231 : vector<16x1xf32>
    %233 = math.rsqrt %232 : vector<16x1xf32>
    %234 = vector.broadcast %233 : vector<16x1xf32> to vector<16x32xf32>
    %235 = arith.mulf %230, %234 : vector<16x32xf32>
    %c0_83 = arith.constant 0 : index
    %c0_84 = arith.constant 0 : index
    %236 = vector.load %arg15[%c0_83, %c0_84] : memref<1x32xf32, #tpu.memory_space<vmem>>, vector<1x32xf32>
    %237 = vector.broadcast %236 : vector<1x32xf32> to vector<16x32xf32>
    %238 = arith.mulf %235, %237 : vector<16x32xf32>
    %c0_85 = arith.constant 0 : index
    %c0_86 = arith.constant 0 : index
    %239 = vector.load %arg16[%c0_85, %c0_86] : memref<1x32xf32, #tpu.memory_space<vmem>>, vector<1x32xf32>
    %240 = vector.broadcast %239 : vector<1x32xf32> to vector<16x32xf32>
    %241 = arith.addf %238, %240 : vector<16x32xf32>
    %c0_87 = arith.constant 0 : index
    %c0_88 = arith.constant 0 : index
    %242 = vector.load %arg17[%c0_87, %c0_88] : memref<32x128xf32, #tpu.memory_space<vmem>>, vector<32x128xf32>
    %cst_89 = arith.constant dense<0.000000e+00> : vector<16x128xf32>
    %243 = tpu.matmul %241, %242, %cst_89 {dimension_numbers = #tpu.dot_dimension_numbers<[1], [0], [0], [1], [0, 0, 1, 1], [], []>} : vector<16x32xf32>, vector<32x128xf32>, vector<16x128xf32> -> vector<16x128xf32>
    %c0_90 = arith.constant 0 : index
    %c0_91 = arith.constant 0 : index
    %244 = vector.load %arg18[%c0_90, %c0_91] : memref<1x128xf32, #tpu.memory_space<vmem>>, vector<1x128xf32>
    %245 = vector.broadcast %244 : vector<1x128xf32> to vector<16x128xf32>
    %246 = arith.addf %243, %245 : vector<16x128xf32>
    %247 = arith.mulf %246, %246 : vector<16x128xf32>
    %248 = arith.mulf %246, %247 : vector<16x128xf32>
    %cst_92 = arith.constant 4.471500e-02 : f32
    %249 = vector.broadcast %cst_92 : f32 to vector<16x128xf32>
    %250 = arith.mulf %249, %248 : vector<16x128xf32>
    %251 = arith.addf %246, %250 : vector<16x128xf32>
    %cst_93 = arith.constant 0.797884583 : f32
    %252 = vector.broadcast %cst_93 : f32 to vector<16x128xf32>
    %253 = arith.mulf %252, %251 : vector<16x128xf32>
    %254 = math.tanh %253 : vector<16x128xf32>
    %cst_94 = arith.constant 1.000000e+00 : f32
    %255 = vector.broadcast %cst_94 : f32 to vector<16x128xf32>
    %256 = arith.addf %255, %254 : vector<16x128xf32>
    %cst_95 = arith.constant 5.000000e-01 : f32
    %257 = vector.broadcast %cst_95 : f32 to vector<16x128xf32>
    %258 = arith.mulf %257, %256 : vector<16x128xf32>
    %259 = arith.mulf %246, %258 : vector<16x128xf32>
    %c0_96 = arith.constant 0 : index
    %c0_97 = arith.constant 0 : index
    %260 = vector.load %arg19[%c0_96, %c0_97] : memref<128x32xf32, #tpu.memory_space<vmem>>, vector<128x32xf32>
    %cst_98 = arith.constant dense<0.000000e+00> : vector<16x32xf32>
    %261 = tpu.matmul %259, %260, %cst_98 {dimension_numbers = #tpu.dot_dimension_numbers<[1], [0], [0], [1], [0, 0, 1, 1], [], []>} : vector<16x128xf32>, vector<128x32xf32>, vector<16x32xf32> -> vector<16x32xf32>
    %c0_99 = arith.constant 0 : index
    %c0_100 = arith.constant 0 : index
    %262 = vector.load %arg20[%c0_99, %c0_100] : memref<1x32xf32, #tpu.memory_space<vmem>>, vector<1x32xf32>
    %263 = vector.broadcast %262 : vector<1x32xf32> to vector<16x32xf32>
    %264 = arith.addf %261, %263 : vector<16x32xf32>
    %265 = arith.addf %241, %264 : vector<16x32xf32>
    %cst_101 = arith.constant dense<0.000000e+00> : vector<16xf32>
    %266 = vector.multi_reduction <add>, %265, %cst_101 [1] : vector<16x32xf32> to vector<16xf32>
    %267 = vector.shape_cast %266 : vector<16xf32> to vector<16x1xf32>
    %cst_102 = arith.constant 3.200000e+01 : f32
    %268 = vector.broadcast %cst_102 : f32 to vector<16x1xf32>
    %269 = arith.divf %267, %268 : vector<16x1xf32>
    %270 = vector.broadcast %269 : vector<16x1xf32> to vector<16x32xf32>
    %271 = arith.subf %265, %270 : vector<16x32xf32>
    %272 = arith.mulf %271, %271 : vector<16x32xf32>
    %cst_103 = arith.constant dense<0.000000e+00> : vector<16xf32>
    %273 = vector.multi_reduction <add>, %272, %cst_103 [1] : vector<16x32xf32> to vector<16xf32>
    %274 = vector.shape_cast %273 : vector<16xf32> to vector<16x1xf32>
    %cst_104 = arith.constant 3.200000e+01 : f32
    %275 = vector.broadcast %cst_104 : f32 to vector<16x1xf32>
    %276 = arith.divf %274, %275 : vector<16x1xf32>
    %277 = vector.broadcast %269 : vector<16x1xf32> to vector<16x32xf32>
    %278 = arith.subf %265, %277 : vector<16x32xf32>
    %cst_105 = arith.constant 9.99999974E-6 : f32
    %279 = vector.broadcast %cst_105 : f32 to vector<16x1xf32>
    %280 = arith.addf %276, %279 : vector<16x1xf32>
    %281 = math.rsqrt %280 : vector<16x1xf32>
    %282 = vector.broadcast %281 : vector<16x1xf32> to vector<16x32xf32>
    %283 = arith.mulf %278, %282 : vector<16x32xf32>
    %c0_106 = arith.constant 0 : index
    %c0_107 = arith.constant 0 : index
    %284 = vector.load %arg21[%c0_106, %c0_107] : memref<1x32xf32, #tpu.memory_space<vmem>>, vector<1x32xf32>
    %285 = vector.broadcast %284 : vector<1x32xf32> to vector<16x32xf32>
    %286 = arith.mulf %283, %285 : vector<16x32xf32>
    %c0_108 = arith.constant 0 : index
    %c0_109 = arith.constant 0 : index
    %287 = vector.load %arg22[%c0_108, %c0_109] : memref<1x32xf32, #tpu.memory_space<vmem>>, vector<1x32xf32>
    %288 = vector.broadcast %287 : vector<1x32xf32> to vector<16x32xf32>
    %289 = arith.addf %286, %288 : vector<16x32xf32>
    %290 = vector.shape_cast %289 : vector<16x32xf32> to vector<2x8x32xf32>
    %c0_110 = arith.constant 0 : index
    %c0_111 = arith.constant 0 : index
    %c0_112 = arith.constant 0 : index
    %291 = vector.load %arg23[%c0_110, %c0_111, %c0_112] : memref<2x8x32xf32, #tpu.memory_space<vmem>>, vector<2x8x32xf32>
    tpu.vector_store %arg23[%c0_110, %c0_111, %c0_112], %290 {strides = array<i32>} : memref<2x8x32xf32, #tpu.memory_space<vmem>>, vector<2x8x32xf32>,
    return
  }
  func.func @transform_0(%arg0: i32) -> (i32, i32, i32) {
    %c0_i32 = arith.constant 0 : i32
    %c0_i32_0 = arith.constant 0 : i32
    %c0_i32_1 = arith.constant 0 : i32
    return %arg0, %c0_i32, %c0_i32_0 : i32, i32, i32
  }
  func.func @transform_1(%arg0: i32) -> (i32, i32, i32) {
    %c0_i32 = arith.constant 0 : i32
    %c0_i32_0 = arith.constant 0 : i32
    %c0_i32_1 = arith.constant 0 : i32
    return %arg0, %c0_i32, %c0_i32_0 : i32, i32, i32
  }
  func.func @transform_2(%arg0: i32) -> (i32, i32) {
    %c0_i32 = arith.constant 0 : i32
    %c0_i32_0 = arith.constant 0 : i32
    %c0_i32_1 = arith.constant 0 : i32
    return %c0_i32, %c0_i32_0 : i32, i32
  }
  func.func @transform_3(%arg0: i32) -> (i32, i32) {
    %c0_i32 = arith.constant 0 : i32
    %c0_i32_0 = arith.constant 0 : i32
    %c0_i32_1 = arith.constant 0 : i32
    return %c0_i32, %c0_i32_0 : i32, i32
  }
  func.func @transform_4(%arg0: i32) -> (i32, i32) {
    %c0_i32 = arith.constant 0 : i32
    %c0_i32_0 = arith.constant 0 : i32
    %c0_i32_1 = arith.constant 0 : i32
    return %c0_i32, %c0_i32_0 : i32, i32
  }
  func.func @transform_5(%arg0: i32) -> (i32, i32) {
    %c0_i32 = arith.constant 0 : i32
    %c0_i32_0 = arith.constant 0 : i32
    %c0_i32_1 = arith.constant 0 : i32
    return %c0_i32, %c0_i32_0 : i32, i32
  }
  func.func @transform_6(%arg0: i32) -> (i32, i32) {
    %c0_i32 = arith.constant 0 : i32
    %c0_i32_0 = arith.constant 0 : i32
    %c0_i32_1 = arith.constant 0 : i32
    return %c0_i32, %c0_i32_0 : i32, i32
  }
  func.func @transform_7(%arg0: i32) -> (i32, i32) {
    %c0_i32 = arith.constant 0 : i32
    %c0_i32_0 = arith.constant 0 : i32
    %c0_i32_1 = arith.constant 0 : i32
    return %c0_i32, %c0_i32_0 : i32, i32
  }
  func.func @transform_8(%arg0: i32) -> (i32, i32) {
    %c0_i32 = arith.constant 0 : i32
    %c0_i32_0 = arith.constant 0 : i32
    %c0_i32_1 = arith.constant 0 : i32
    return %c0_i32, %c0_i32_0 : i32, i32
  }
  func.func @transform_9(%arg0: i32) -> (i32, i32) {
    %c0_i32 = arith.constant 0 : i32
    %c0_i32_0 = arith.constant 0 : i32
    %c0_i32_1 = arith.constant 0 : i32
    return %c0_i32, %c0_i32_0 : i32, i32
  }
  func.func @transform_10(%arg0: i32) -> (i32, i32) {
    %c0_i32 = arith.constant 0 : i32
    %c0_i32_0 = arith.constant 0 : i32
    %c0_i32_1 = arith.constant 0 : i32
    return %c0_i32, %c0_i32_0 : i32, i32
  }
  func.func @transform_11(%arg0: i32) -> (i32, i32) {
    %c0_i32 = arith.constant 0 : i32
    %c0_i32_0 = arith.constant 0 : i32
    %c0_i32_1 = arith.constant 0 : i32
    return %c0_i32, %c0_i32_0 : i32, i32
  }
  func.func @transform_12(%arg0: i32) -> (i32, i32) {
    %c0_i32 = arith.constant 0 : i32
    %c0_i32_0 = arith.constant 0 : i32
    %c0_i32_1 = arith.constant 0 : i32
    return %c0_i32, %c0_i32_0 : i32, i32
  }
  func.func @transform_13(%arg0: i32) -> (i32, i32) {
    %c0_i32 = arith.constant 0 : i32
    %c0_i32_0 = arith.constant 0 : i32
    %c0_i32_1 = arith.constant 0 : i32
    return %c0_i32, %c0_i32_0 : i32, i32
  }
  func.func @transform_14(%arg0: i32) -> (i32, i32) {
    %c0_i32 = arith.constant 0 : i32
    %c0_i32_0 = arith.constant 0 : i32
    %c0_i32_1 = arith.constant 0 : i32
    return %c0_i32, %c0_i32_0 : i32, i32
  }
  func.func @transform_15(%arg0: i32) -> (i32, i32) {
    %c0_i32 = arith.constant 0 : i32
    %c0_i32_0 = arith.constant 0 : i32
    %c0_i32_1 = arith.constant 0 : i32
    return %c0_i32, %c0_i32_0 : i32, i32
  }
  func.func @transform_16(%arg0: i32) -> (i32, i32) {
    %c0_i32 = arith.constant 0 : i32
    %c0_i32_0 = arith.constant 0 : i32
    %c0_i32_1 = arith.constant 0 : i32
    return %c0_i32, %c0_i32_0 : i32, i32
  }
  func.func @transform_17(%arg0: i32) -> (i32, i32) {
    %c0_i32 = arith.constant 0 : i32
    %c0_i32_0 = arith.constant 0 : i32
    %c0_i32_1 = arith.constant 0 : i32
    return %c0_i32, %c0_i32_0 : i32, i32
  }
  func.func @transform_18(%arg0: i32) -> (i32, i32) {
    %c0_i32 = arith.constant 0 : i32
    %c0_i32_0 = arith.constant 0 : i32
    %c0_i32_1 = arith.constant 0 : i32
    return %c0_i32, %c0_i32_0 : i32, i32
  }
  func.func @transform_19(%arg0: i32) -> (i32, i32) {
    %c0_i32 = arith.constant 0 : i32
    %c0_i32_0 = arith.constant 0 : i32
    %c0_i32_1 = arith.constant 0 : i32
    return %c0_i32, %c0_i32_0 : i32, i32
  }
  func.func @transform_20(%arg0: i32) -> (i32, i32) {
    %c0_i32 = arith.constant 0 : i32
    %c0_i32_0 = arith.constant 0 : i32
    %c0_i32_1 = arith.constant 0 : i32
    return %c0_i32, %c0_i32_0 : i32, i32
  }
  func.func @transform_21(%arg0: i32) -> (i32, i32) {
    %c0_i32 = arith.constant 0 : i32
    %c0_i32_0 = arith.constant 0 : i32
    %c0_i32_1 = arith.constant 0 : i32
    return %c0_i32, %c0_i32_0 : i32, i32
  }
  func.func @transform_22(%arg0: i32) -> (i32, i32, i32) {
    %c0_i32 = arith.constant 0 : i32
    %c0_i32_0 = arith.constant 0 : i32
    %c0_i32_1 = arith.constant 0 : i32
    return %arg0, %c0_i32, %c0_i32_0 : i32, i32, i32
  }
}

</mosaic_0001>

<bundles_post_ra>
// kernel: spatial_encoder_forward.3
= control target key start
LH: loop header
LB: loop body
LE: loop exit
PB: predicated region body
PF: predicated region fallthrough
CT: control target
= control target key end

     0   :  { %s5385_s0 = inlined_call_operand.vmem [shape: f32[2,8,32], index: 0, kind: input, shape index: {}]   ;;  %s5386_s1 = inlined_call_operand.vmem [shape: f32[2,8,32], index: 1, kind: input, shape index: {}]   ;;  %s5387_s2 = inlined_call_operand.vmem [shape: f32[32,96], index: 2, kind: input, shape index: {}]   ;;  %s5388_s3 = inlined_call_operand.vmem [shape: f32[1,96], index: 3, kind: input, shape index: {}]   ;;  %s5389_s4 = inlined_call_operand.vmem [shape: f32[32,32], index: 4, kind: input, shape index: {}]   ;;  %s5390_s5 = inlined_call_operand.vmem [shape: f32[1,32], index: 5, kind: input, shape index: {}]   ;;  %s5391_s6 = inlined_call_operand.vmem [shape: f32[1,32], index: 6, kind: input, shape index: {}]   ;;  %s5392_s7 = inlined_call_operand.vmem [shape: f32[1,32], index: 7, kind: input, shape index: {}]   ;;  %s5393_s8 = inlined_call_operand.vmem [shape: f32[32,32], index: 8, kind: input, shape index: {}]   ;;  %s5394_s9 = inlined_call_operand.vmem [shape: f32[1,32], index: 9, kind: input, shape index: {}]   ;;  %s5395_s10 = inlined_call_operand.vmem [shape: f32[32,64], index: 10, kind: input, shape index: {}]   ;;  %s5396_s11 = inlined_call_operand.vmem [shape: f32[1,64], index: 11, kind: input, shape index: {}]   ;;  %s5397_s12 = inlined_call_operand.vmem [shape: f32[32,32], index: 12, kind: input, shape index: {}]   ;;  %s5398_s13 = inlined_call_operand.vmem [shape: f32[1,32], index: 13, kind: input, shape index: {}]   ;;  %s5399_s14 = inlined_call_operand.vmem [shape: f32[1,32], index: 14, kind: input, shape index: {}]   ;;  %s5400_s15 = inlined_call_operand.vmem [shape: f32[1,32], index: 15, kind: input, shape index: {}]   ;;  %s5401_s16 = inlined_call_operand.vmem [shape: f32[32,128], index: 16, kind: input, shape index: {}]   ;;  %s5402_s17 = inlined_call_operand.vmem [shape: f32[1,128], index: 17, kind: input, shape index: {}]   ;;  %s5403_s18 = inlined_call_operand.vmem [shape: f32[128,32], index: 18, kind: input, shape index: {}]   ;;  %s5404_s19 = inlined_call_operand.vmem [shape: f32[1,32], index: 19, kind: input, shape index: {}]   ;;  %s5405_s20 = inlined_call_operand.vmem [shape: f32[1,32], index: 20, kind: input, shape index: {}]   ;;  %s5406_s21 = inlined_call_operand.vmem [shape: f32[1,32], index: 21, kind: input, shape index: {}]   ;;  %s5407_s22 = inlined_call_operand.hbm [shape: f32[2,8,32], index: 22, kind: output, shape index: {}]  }
   0x1   :  { %5412 = sst [smem:[#allocation5_spill]] %s5385_s0 }
   0x2   :  { %5413 = sst [smem:[#allocation6_spill]] %s5386_s1 }
   0x3   :  { %5414 = sst [smem:[#allocation7_spill]] %s5387_s2 }
   0x4   :  { %5415 = sst [smem:[#allocation8_spill]] %s5388_s3 }
   0x5   :  { %5416 = sst [smem:[#allocation9_spill]] %s5389_s4 }
   0x6   :  { %5417 = sst [smem:[#allocation10_spill]] %s5390_s5 }
   0x7   :  { %5418 = sst [smem:[#allocation11_spill]] %s5391_s6 }
   0x8   :  { %s5419_s29 = sld [smem:[#allocation7_spill]]  ;;  %vm87_vm0 = vcmask 261120   ;;  %s5420_s25 = sld [smem:[#allocation5_spill]] }
   0xe   :  { %v76_v0 = vld [vmem:[%s5419_s29] sm:$0xff]  ;;  %v77_v1 = vld [vmem:[%s5419_s29 + $0x8] sm:$0xff]  ;;  %v78_v2 = vld [vmem:[%s5419_s29 + $0x10] sm:$0xff] }
   0xf   :  { %v4529_v3 = vpack.c.bf16 %v77_v1, %v76_v0  ;;  %v79_v4 = vld [vmem:[%s5419_s29 + $0x18] sm:$0xff]  ;;  %v4871_v5 = vld [vmem:[%s5420_s25] sm:$0xff] }
  0x10   :  { %v4533_v6 = vpack.c.bf16 %v79_v4, %v78_v2  ;;  %4258 = vmatprep.mubr.msk.f32.mxu1 %vm87_vm0, %v4871_v5 }
  0x11   :  { %27 = vsyncpa [#allocation3], 0  ;;  %4530 = vmatprep.subr.bf16.mxu1 %v4529_v3  ;;  %v4878_v7 = vld [vmem:[%s5420_s25 + $0x8] sm:$0xff]  ;;  %v4725_v8 = vmov 0.0   ;;  %vm4726_vm1 = vmmov 0   ;;  %s5421_s28 = sld [smem:[#allocation8_spill]] }
  0x12   :  { %4532 = vmatpush3.bf16.msra.mxu1 %v4529_v3  ;;  %4271 = vmatprep.subr.mxu0 %v4725_v8  ;;  %s4727_s29 = smov 96   ;;  %s4728_s30 = smov 64   ;;  %vm176_vm2 = vcmask 64512  }
  0x13   :  { %4534 = vmatprep.subr.bf16.mxu1 %v4533_v6  ;;  %4273 = vmatprep.mubr.msk.f32.mxu0 %vm4726_vm1, %v4725_v8  ;;  %s4729_s4 = smov 120   ;;  %s4730_s0 = smov 88  }
  0x14   :  { %s4731_s23 = smov 80   ;;  %s4732_s1 = smov 56  }
  0x15   :  { %s4733_s5 = smov 112   ;;  %s4734_s24 = smov 48  }
  0x16   :  { %4536 = vmatpush3.bf16.msra.mxu1 %v4533_v6  ;;  %s4735_s6 = smov 72   ;;  %s4736_s25 = smov 104  }
  0x17   :  { %4261 = vmatprep.subr.mxu1 %v4725_v8  ;;  %v4035_v9 = vld [vmem:[%s5421_s28] ss:$0 sm:$0xff]  ;;  %s5422_s27 = sld [smem:[#allocation9_spill]]  ;;  %s5423_s28 = sld [smem:[#allocation10_spill]] }
  0x19   :  { %4259 = vmatmul.mubr.msk.f32.vlgmr.msra.gmra.mrb[0].mxu1 %vm87_vm0, %v4878_v7 }
  0x1a   :  { %4263 = vmatprep.mubr.msk.f32.mxu1 %vm4726_vm1, %v4725_v8 }
  0xec   :  { %v4260_v10 = vpop.f32.mrb[0].mxu1 }
  0xed   :  { %v160_v11 = vpop.f32.mrb[1].mxu1  ;;  %v4895_v13 = vadd.f32 %v4260_v10, %v4035_v9 }
  0xee   :  { %v4891_v12 = vadd.f32 %v4035_v9, %v160_v11 }
  0xf0   :  { %174 = vrot.lane.b32.xlu0 %v4891_v12, %s4727_s29 }
  0xf4   :  { %252 = vrot.lane.b32.xlu0 %v4895_v13, %s4727_s29 }
  0xf8   :  { %426 = vrot.lane.b32.xlu0 %v4895_v13, %s4728_s30 }
  0xfc   :  { %580 = vrot.lane.b32.xlu0 %v4895_v13, %s4729_s4 }
 0x162   :  { %v175_v14 = vpop.permute.xlu0 %174 }
 0x163   :  { %4262 = vmatpush3.xpose.msk.msra.mxu1 %vm176_vm2, %v175_v14 }
 0x164   :  { %4266 = vmatprep.subr.mxu1 %v4725_v8 }
 0x166   :  { %4264 = vmatmul.mubr.msk.f32.vlgmr.msra.gmra.mrb[2].mxu1 %vm176_vm2, %v4891_v12  ;;  %v253_v15 = vpop.permute.xlu0 %252 }
 0x167   :  { %4267 = vmatpush3.xpose.msk.msra.mxu1 %vm176_vm2, %v253_v15  ;;  %4268 = vmatprep.mubr.msk.f32.mxu1 %vm4726_vm1, %v4725_v8 }
 0x168   :  { %4276 = vmatprep.subr.mxu1 %v4725_v8 }
 0x16a   :  { %4269 = vmatmul.mubr.msk.f32.vlgmr.msra.gmra.mrb[4].mxu1 %vm176_vm2, %v4895_v13  ;;  %v427_v16 = vpop.permute.xlu0 %426 }
 0x16b   :  { %4277 = vmatpush3.msra.mxu1 %v427_v16  ;;  %4278 = vmatprep.mubr.msk.f32.mxu1 %vm4726_vm1, %v4725_v8 }
 0x16c   :  { %4286 = vmatprep.subr.mxu1 %v4725_v8 }
 0x16e   :  { %v581_v23 = vpop.permute.xlu0 %580 }
 0x239   :  { %v247_v17 = vpop.f32.mrb[2].mxu1 }
 0x23a   :  { %v4265_v18 = vpop.f32.mrb[3].mxu1  ;;  %v328_v19 = vsel %vm176_vm2, %v247_v17, -inf }
 0x23b   :  { %329 = vmax.xlane.f32.xlu0 %v328_v19  ;;  %v169_v18 = vld [vmem:[%s5422_s27] sm:$0xff] }
 0x23d   :  { %v324_v20 = vpop.f32.mrb[4].mxu1 }
 0x23e   :  { %v4270_v21 = vpop.f32.mrb[5].mxu1  ;;  %v331_v22 = vsel %vm176_vm2, %v324_v20, -inf }
 0x23f   :  { %332 = vmax.xlane.f32.xlu1 %v331_v22 }
 0x251   :  { %350 = vrot.lane.b32.xlu0 %v4891_v12, %s4728_s30 }
 0x255   :  { %502 = vrot.lane.b32.xlu0 %v4891_v12, %s4729_s4 }
 0x2c8   :  { %v330_v24 = vpop.xlane.xlu0 %329 }
 0x2c9   :  { %v334_v31 = vsub.f32 %v247_v17, %v330_v24  ;;  %v170_v17 = vld [vmem:[%s5422_s27 + $0x8] sm:$0xff] }
 0x2cb   :  { %v336_v32 = vmul.f32 1.442695, %v334_v31 }
 0x2cc   :  { %v333_v25 = vpop.xlane.xlu1 %332  ;;  %v351_v26 = vpop.permute.xlu0 %350 }
 0x2cd   :  { %v335_v27 = vsub.f32 %v324_v20, %v333_v25  ;;  %4272 = vmatpush3.msra.mxu0 %v351_v26 }
 0x2ce   :  { %4281 = vmatprep.subr.mxu0 %v4725_v8 }
 0x2cf   :  { %v338_v28 = vmul.f32 1.442695, %v335_v27 }
 0x2d0   :  { %v503_v43 = vpop.permute.xlu0 %502 }
 0x2d1   :  { %4621 = vpow2.f32 %v338_v28 }
 0x2d2   :  { %4623 = vpow2.f32 %v336_v32 }
 0x2db   :  { %v4622_v29 = vpop.eup %4621 }
 0x2dc   :  { %v343_v30 = vsel %vm176_vm2, %v4622_v29, 0.0  ;;  %v4624_v33 = vpop.eup %4623 }
 0x2dd   :  { %344 = vadd.xlane.f32.xlu1 %v343_v30  ;;  %v340_v34 = vsel %vm176_vm2, %v4624_v33, 0.0 }
 0x2ee   :  { %582 = vrot.lane.b32.xlu1 %v4895_v13, %s4730_s0 }
 0x312   :  { %341 = vadd.xlane.f32.xlu1 %v340_v34 }
 0x323   :  { %504 = vrot.lane.b32.xlu1 %v4891_v12, %s4730_s0 }
 0x327   :  { %996 = vrot.lane.b32.xlu1 %v4891_v12, %s4731_s23 }
 0x36a   :  { %v345_v35 = vpop.xlane.xlu1 %344 }
 0x36b   :  { %4625 = vrcp.f32 %v345_v35 }
 0x36e   :  { %v583_v38 = vpop.permute.xlu1 %582 }
 0x375   :  { %v4626_v36 = vpop.eup %4625 }
 0x376   :  { %v349_v37 = vmul.f32 %v4626_v36, %v4622_v29 }
 0x378   :  { %4279 = vmatmul.mubr.msk.f32.vlgmr.msra.gmra.mrb[6].mxu1 %vm176_vm2, %v349_v37 }
 0x379   :  { %4287 = vmatpush3.xpose.msk.msra.mxu1 %vm176_vm2, %v583_v38  ;;  %4288 = vmatprep.mubr.msk.f32.mxu1 %vm4726_vm1, %v4725_v8 }
 0x37a   :  { %4296 = vmatprep.subr.mxu1 %v4725_v8 }
 0x37c   :  { %4289 = vmatmul.mubr.msk.f32.vlgmr.msra.gmra.mrb[8].mxu1 %vm176_vm2, %v581_v23 }
 0x37d   :  { %4298 = vmatprep.mubr.msk.f32.mxu1 %vm4726_vm1, %v4725_v8 }
 0x39f   :  { %v342_v39 = vpop.xlane.xlu1 %341 }
 0x3a0   :  { %4627 = vrcp.f32 %v342_v39 }
 0x3a3   :  { %v505_v42 = vpop.permute.xlu1 %504 }
 0x3a7   :  { %v997_v4 = vpop.permute.xlu1 %996 }
 0x3aa   :  { %v4628_v40 = vpop.eup %4627 }
 0x3ab   :  { %v348_v41 = vmul.f32 %v4628_v40, %v4624_v33  ;;  %v171_v40 = vld [vmem:[%s5422_s27 + $0x10] sm:$0xff] }
 0x3ad   :  { %4274 = vmatmul.mubr.msk.f32.vlgmr.msra.gmra.mrb[0].mxu0 %vm176_vm2, %v348_v41 }
 0x3ae   :  { %4282 = vmatpush3.xpose.msk.msra.mxu0 %vm176_vm2, %v505_v42  ;;  %4283 = vmatprep.mubr.msk.f32.mxu0 %vm4726_vm1, %v4725_v8 }
 0x3af   :  { %4291 = vmatprep.subr.mxu0 %v4725_v8 }
 0x3b1   :  { %4284 = vmatmul.mubr.msk.f32.vlgmr.msra.gmra.mrb[2].mxu0 %vm176_vm2, %v503_v43 }
 0x3b2   :  { %4293 = vmatprep.mubr.msk.f32.mxu0 %vm4726_vm1, %v4725_v8 }
 0x44b   :  { %v4945_v44 = vpop.f32.mrb[6].mxu1 }
 0x44c   :  { %v4280_v45 = vpop.f32.mrb[7].mxu1 }
 0x44f   :  { %v654_v46 = vpop.f32.mrb[8].mxu1 }
 0x450   :  { %v4290_v47 = vpop.f32.mrb[9].mxu1  ;;  %v661_v48 = vsel %vm176_vm2, %v654_v46, -inf }
 0x451   :  { %662 = vmax.xlane.f32.xlu0 %v661_v48 }
 0x467   :  { %756 = vrot.lane.b32.xlu0 %v4895_v13, %s4732_s1 }
 0x46b   :  { %994 = vrot.lane.b32.xlu0 %v4891_v12, %s4733_s5 }
 0x46f   :  { %1074 = vrot.lane.b32.xlu0 %v4895_v13, %s4731_s23 }
 0x480   :  { %v4953_v49 = vpop.f32.mrb[0].mxu0 }
 0x481   :  { %v4275_v50 = vpop.f32.mrb[1].mxu0 }
 0x484   :  { %v576_v51 = vpop.f32.mrb[2].mxu0 }
 0x485   :  { %v4285_v52 = vpop.f32.mrb[3].mxu0  ;;  %v658_v53 = vsel %vm176_vm2, %v576_v51, -inf }
 0x48e   :  { %659 = vmax.xlane.f32.xlu0 %v658_v53 }
 0x4a4   :  { %680 = vrot.lane.b32.xlu0 %v4891_v12, %s4732_s1 }
 0x4a8   :  { %1172 = vrot.lane.b32.xlu0 %v4891_v12, %s4734_s24 }
 0x4ac   :  { %1409 = vrot.lane.b32.xlu0 %v4891_v12, %s4735_s6 }
 0x4b0   :  { %1487 = vrot.lane.b32.xlu0 %v4895_v13, %s4735_s6 }
 0x4b4   :  { %1407 = vrot.lane.b32.xlu0 %v4891_v12, %s4736_s25 }
 0x4b8   :  { %1485 = vrot.lane.b32.xlu0 %v4895_v13, %s4736_s25 }
 0x4de   :  { %v663_v54 = vpop.xlane.xlu0 %662 }
 0x4df   :  { %v665_v55 = vsub.f32 %v654_v46, %v663_v54 }
 0x4e1   :  { %v668_v56 = vmul.f32 1.442695, %v665_v55 }
 0x4e2   :  { %v757_v57 = vpop.permute.xlu0 %756 }
 0x4e3   :  { %4629 = vpow2.f32 %v668_v56  ;;  %4297 = vmatpush3.msra.mxu1 %v757_v57 }
 0x4e4   :  { %4311 = vmatprep.subr.mxu1 %v4725_v8 }
 0x4e6   :  { %v995_v60 = vpop.permute.xlu0 %994 }
 0x4ea   :  { %v1075_v61 = vpop.permute.xlu0 %1074 }
 0x4ed   :  { %v4630_v58 = vpop.eup %4629 }
 0x4ee   :  { %v673_v59 = vsel %vm176_vm2, %v4630_v58, 0.0 }
 0x4ef   :  { %674 = vadd.xlane.f32.xlu1 %v673_v59 }
 0x500   :  { %1072 = vrot.lane.b32.xlu1 %v4895_v13, %s4733_s5 }
 0x51b   :  { %v660_v62 = vpop.xlane.xlu0 %659 }
 0x51c   :  { %v664_v63 = vsub.f32 %v576_v51, %v660_v62 }
 0x51e   :  { %v666_v0 = vmul.f32 1.442695, %v664_v63 }
 0x51f   :  { %v681_v1 = vpop.permute.xlu0 %680 }
 0x520   :  { %4631 = vpow2.f32 %v666_v0  ;;  %4292 = vmatpush3.msra.mxu0 %v681_v1 }
 0x521   :  { %4301 = vmatprep.subr.mxu0 %v170_v17 }
 0x523   :  { %v1173_v29 = vpop.permute.xlu0 %1172 }
 0x52a   :  { %v4632_v2 = vpop.eup %4631 }
 0x52b   :  { %v670_v3 = vsel %vm176_vm2, %v4632_v2, 0.0 }
 0x52c   :  { %671 = vadd.xlane.f32.xlu1 %v670_v3 }
 0x57c   :  { %v675_v6 = vpop.xlane.xlu1 %674 }
 0x57d   :  { %4633 = vrcp.f32 %v675_v6 }
 0x580   :  { %v1073_v11 = vpop.permute.xlu1 %1072 }
 0x587   :  { %v4634_v9 = vpop.eup %4633 }
 0x588   :  { %v679_v10 = vmul.f32 %v4634_v9, %v4630_v58 }
 0x58a   :  { %4299 = vmatmul.mubr.msk.f32.vlgmr.msra.gmra.mrb[10].mxu1 %vm176_vm2, %v679_v10 }
 0x58b   :  { %4312 = vmatpush3.xpose.msk.msra.mxu1 %vm176_vm2, %v997_v4  ;;  %4313 = vmatprep.mubr.msk.f32.mxu1 %vm4726_vm1, %v4725_v8 }
 0x58c   :  { %4316 = vmatprep.subr.mxu1 %v4725_v8 }
 0x58e   :  { %4314 = vmatmul.mubr.msk.f32.vlgmr.msra.gmra.mrb[12].mxu1 %vm176_vm2, %v995_v60 }
 0x58f   :  { %4317 = vmatpush3.xpose.msk.msra.mxu1 %vm176_vm2, %v1075_v61  ;;  %4318 = vmatprep.mubr.msk.f32.mxu1 %vm4726_vm1, %v4725_v8 }
 0x590   :  { %4326 = vmatprep.subr.mxu1 %v4725_v8 }
 0x592   :  { %4319 = vmatmul.mubr.msk.f32.vlgmr.msra.gmra.mrb[14].mxu1 %vm176_vm2, %v1073_v11 }
 0x593   :  { %4328 = vmatprep.mubr.msk.f32.mxu1 %vm4726_vm1, %v4725_v8 }
 0x5b9   :  { %v672_v14 = vpop.xlane.xlu1 %671 }
 0x5ba   :  { %4635 = vrcp.f32 %v672_v14 }
 0x5c4   :  { %v4636_v15 = vpop.eup %4635 }
 0x5c5   :  { %v678_v16 = vmul.f32 %v4636_v15, %v4632_v2 }
 0x5c7   :  { %4294 = vmatmul.mubr.msk.f32.vlgmr.msra.gmra.mrb[4].mxu0 %vm176_vm2, %v678_v16 }
 0x5c8   :  { %4302 = vmatpush3.msra.mxu0 %v170_v17 }
 0x5c9   :  { %4306 = vmatprep.subr.mxu0 %v169_v18 }
 0x65d   :  { %v828_v19 = vpop.f32.mrb[10].mxu1 }
 0x65e   :  { %v4300_v20 = vpop.f32.mrb[11].mxu1 }
 0x661   :  { %v1068_v21 = vpop.f32.mrb[12].mxu1 }
 0x662   :  { %v4315_v22 = vpop.f32.mrb[13].mxu1  ;;  %v1150_v23 = vsel %vm176_vm2, %v1068_v21, -inf }
 0x663   :  { %1151 = vmax.xlane.f32.xlu1 %v1150_v23 }
 0x665   :  { %v1146_v24 = vpop.f32.mrb[14].mxu1 }
 0x666   :  { %v4320_v25 = vpop.f32.mrb[15].mxu1  ;;  %v1153_v26 = vsel %vm176_vm2, %v1146_v24, -inf }
 0x667   :  { %1154 = vmax.xlane.f32.xlu1 %v1153_v26 }
 0x69a   :  { %v752_v27 = vpop.f32.mrb[4].mxu0 }
 0x69b   :  { %v4295_v28 = vpop.f32.mrb[5].mxu0  ;;  %4303 = vmatprep.mubr.msk.f32.mxu0 %vm176_vm2, %v752_v27 }
 0x69c   :  { %4304 = vmatmul.mubr.msk.f32.vlgmr.msra.gmra.mrb[6].mxu0 %vm176_vm2, %v828_v19 }
 0x69d   :  { %4308 = vmatprep.mubr.msk.f32.mxu0 %vm176_vm2, %v4953_v49  ;;  %4307 = vmatpush3.msra.mxu0 %v169_v18 }
 0x69e   :  { %4321 = vmatprep.subr.mxu0 %v4725_v8 }
 0x6a4   :  { %4309 = vmatmul.mubr.msk.f32.vlgmr.msra.gmra.mrb[6].mxu0 %vm176_vm2, %v4945_v44  ;;  %v1410_v44 = vpop.permute.xlu0 %1409 }
 0x6a5   :  { %4322 = vmatpush3.msra.mxu0 %v1173_v29  ;;  %4323 = vmatprep.mubr.msk.f32.mxu0 %vm4726_vm1, %v4725_v8 }
 0x6a6   :  { %4331 = vmatprep.subr.mxu0 %v171_v40 }
 0x6a8   :  { %v1488_v48 = vpop.permute.xlu0 %1487 }
 0x6ac   :  { %v1408_v50 = vpop.permute.xlu0 %1407 }
 0x6b0   :  { %v1486_v55 = vpop.permute.xlu0 %1485 }
 0x6f0   :  { %v1152_v30 = vpop.xlane.xlu1 %1151 }
 0x6f1   :  { %v1156_v31 = vsub.f32 %v1068_v21, %v1152_v30 }
 0x6f3   :  { %v1158_v32 = vmul.f32 1.442695, %v1156_v31 }
 0x6f4   :  { %v1155_v33 = vpop.xlane.xlu1 %1154 }
 0x6f5   :  { %4637 = vpow2.f32 %v1158_v32  ;;  %v1157_v34 = vsub.f32 %v1146_v24, %v1155_v33  ;;  %v4070_v24 = vld [vmem:[%s5423_s28] ss:$0 sm:$0xff] }
 0x6f7   :  { %v1160_v35 = vmul.f32 1.442695, %v1157_v34 }
 0x6f9   :  { %4639 = vpow2.f32 %v1160_v35 }
 0x6ff   :  { %v4638_v36 = vpop.eup %4637 }
 0x700   :  { %v1162_v37 = vsel %vm176_vm2, %v4638_v36, 0.0 }
 0x701   :  { %1163 = vadd.xlane.f32.xlu1 %v1162_v37 }
 0x703   :  { %v4640_v38 = vpop.eup %4639 }
 0x704   :  { %v1165_v39 = vsel %vm176_vm2, %v4640_v38, 0.0 }
 0x705   :  { %1166 = vadd.xlane.f32.xlu1 %v1165_v39 }
 0x716   :  { %1248 = vrot.lane.b32.xlu1 %v4895_v13, %s4734_s24  ;;  %s4737_s24 = smov 40  }
 0x78e   :  { %v1164_v41 = vpop.xlane.xlu1 %1163 }
 0x78f   :  { %4641 = vrcp.f32 %v1164_v41 }
 0x792   :  { %v1167_v42 = vpop.xlane.xlu1 %1166 }
 0x793   :  { %4643 = vrcp.f32 %v1167_v42  ;;  %v1877_v42 = vld [vmem:[%s5393_s8 + $0x8] sm:$0xff] }
 0x796   :  { %v1249_v43 = vpop.permute.xlu1 %1248 }
 0x797   :  { %4327 = vmatpush3.msra.mxu1 %v1249_v43 }
 0x798   :  { %4336 = vmatprep.subr.mxu1 %v4725_v8 }
 0x799   :  { %v4642_v45 = vpop.eup %4641 }
 0x79a   :  { %v1170_v46 = vmul.f32 %v4642_v45, %v4638_v36  ;;  %v1879_v45 = vld [vmem:[%s5393_s8 + $0x18] sm:$0xff] }
 0x79c   :  { %4324 = vmatmul.mubr.msk.f32.vlgmr.msra.gmra.mrb[8].mxu0 %vm176_vm2, %v1170_v46 }
 0x79d   :  { %v4644_v47 = vpop.eup %4643  ;;  %4332 = vmatpush3.msra.mxu0 %v171_v40 }
 0x79e   :  { %v1171_v49 = vmul.f32 %v4644_v47, %v4640_v38  ;;  %4341 = vmatprep.subr.mxu0 %v4725_v8  ;;  %v1968_v47 = vld [vmem:[%s5395_s10] sm:$0xff] }
 0x7a0   :  { %4329 = vmatmul.mubr.msk.f32.vlgmr.msra.gmra.mrb[16].mxu1 %vm176_vm2, %v1171_v49 }
 0x7a1   :  { %4337 = vmatpush3.xpose.msk.msra.mxu1 %vm176_vm2, %v1410_v44  ;;  %4338 = vmatprep.mubr.msk.f32.mxu1 %vm4726_vm1, %v4725_v8  ;;  %v1878_v44 = vld [vmem:[%s5393_s8 + $0x10] sm:$0xff] }
 0x7a2   :  { %4346 = vmatprep.subr.mxu1 %v4725_v8  ;;  %v4541_v46 = vpack.c.bf16 %v1879_v45, %v1878_v44 }
 0x7a4   :  { %4339 = vmatmul.mubr.msk.f32.vlgmr.msra.gmra.mrb[18].mxu1 %vm176_vm2, %v1408_v50 }
 0x7a5   :  { %4348 = vmatprep.mubr.msk.f32.mxu1 %vm4726_vm1, %v4725_v8 }
 0x86f   :  { %v1244_v51 = vpop.f32.mrb[8].mxu0 }
 0x870   :  { %v4325_v52 = vpop.f32.mrb[9].mxu0  ;;  %4333 = vmatprep.mubr.msk.f32.mxu0 %vm176_vm2, %v1244_v51 }
 0x873   :  { %v1320_v53 = vpop.f32.mrb[16].mxu1 }
 0x874   :  { %v4330_v54 = vpop.f32.mrb[17].mxu1  ;;  %4334 = vmatmul.mubr.msk.f32.vlgmr.msra.gmra.mrb[6].mxu0 %vm176_vm2, %v1320_v53 }
 0x875   :  { %4342 = vmatpush3.xpose.msk.msra.mxu0 %vm176_vm2, %v1488_v48  ;;  %4343 = vmatprep.mubr.msk.f32.mxu0 %vm4726_vm1, %v4725_v8  ;;  %v1969_v48 = vld [vmem:[%s5395_s10 + $0x8] sm:$0xff] }
 0x876   :  { %4351 = vmatprep.subr.mxu0 %v4725_v8  ;;  %v4545_v49 = vpack.c.bf16 %v1969_v48, %v1968_v47 }
 0x877   :  { %v1481_v56 = vpop.f32.mrb[18].mxu1 }
 0x878   :  { %v4340_v57 = vpop.f32.mrb[19].mxu1  ;;  %4344 = vmatmul.mubr.msk.f32.vlgmr.msra.gmra.mrb[10].mxu0 %vm176_vm2, %v1486_v55  ;;  %v1563_v58 = vsel %vm176_vm2, %v1481_v56, -inf }
 0x879   :  { %1564 = vmax.xlane.f32.xlu1 %v1563_v58  ;;  %4353 = vmatprep.mubr.msk.f32.mxu0 %vm4726_vm1, %v4725_v8 }
 0x906   :  { %v1565_v59 = vpop.xlane.xlu1 %1564 }
 0x907   :  { %v1569_v60 = vsub.f32 %v1481_v56, %v1565_v59 }
 0x909   :  { %v1571_v61 = vmul.f32 1.442695, %v1569_v60 }
 0x90b   :  { %4645 = vpow2.f32 %v1571_v61 }
 0x915   :  { %v4646_v1 = vpop.eup %4645 }
 0x916   :  { %v1575_v2 = vsel %vm176_vm2, %v4646_v1, 0.0 }
 0x94b   :  { %v1559_v62 = vpop.f32.mrb[10].mxu0 }
 0x94c   :  { %v4345_v63 = vpop.f32.mrb[11].mxu0  ;;  %v1566_v0 = vsel %vm176_vm2, %v1559_v62, -inf }
 0x94d   :  { %1567 = vmax.xlane.f32.xlu0 %v1566_v0  ;;  %v1970_v0 = vld [vmem:[%s5395_s10 + $0x10] sm:$0xff] }
 0x951   :  { %1576 = vadd.xlane.f32.xlu0 %v1575_v2 }
 0x967   :  { %1585 = vrot.lane.b32.xlu0 %v4891_v12, %s4737_s24  ;;  %v172_v12 = vld [vmem:[%s5422_s27 + $0x18] sm:$0xff]  ;;  %s5424_s27 = sld [smem:[#allocation11_spill]] }
 0x96d   :  { %v4071_v57 = vld [vmem:[%s5424_s27] ss:$0 sm:$0xff]  ;;  %s5425_s27 = sld [smem:[#allocation6_spill]] }
 0x9da   :  { %v1568_v3 = vpop.xlane.xlu0 %1567 }
 0x9db   :  { %v1570_v4 = vsub.f32 %v1559_v62, %v1568_v3  ;;  %v4072_v62 = vld [vmem:[%s5392_s7] ss:$0 sm:$0xff] }
 0x9dd   :  { %v1573_v6 = vmul.f32 1.442695, %v1570_v4 }
 0x9de   :  { %v1577_v9 = vpop.xlane.xlu0 %1576 }
 0x9df   :  { %4647 = vpow2.f32 %v1573_v6  ;;  %v74_v6 = vld [vmem:[%s5425_s27] sm:$0xff] }
 0x9e0   :  { %4649 = vrcp.f32 %v1577_v9  ;;  %v75_v9 = vld [vmem:[%s5425_s27 + $0x8] sm:$0xff] }
 0x9e2   :  { %v1586_v10 = vpop.permute.xlu0 %1585 }
 0x9e3   :  { %4347 = vmatpush3.msra.mxu1 %v1586_v10 }
 0x9e9   :  { %v4648_v11 = vpop.eup %4647 }
 0x9ea   :  { %v4650_v14 = vpop.eup %4649  ;;  %v1578_v15 = vsel %vm176_vm2, %v4648_v11, 0.0 }
 0x9eb   :  { %v1583_v16 = vmul.f32 %v4650_v14, %v4646_v1  ;;  %1579 = vadd.xlane.f32.xlu1 %v1578_v15  ;;  %v1971_v1 = vld [vmem:[%s5395_s10 + $0x18] sm:$0xff]  ;;  %v4076_v14 = vld [vmem:[%s5396_s11] ss:$0 sm:$0xff] }
 0x9ec   :  { %v4549_v4 = vpack.c.bf16 %v1971_v1, %v1970_v0 }
 0x9ed   :  { %4349 = vmatmul.mubr.msk.f32.vlgmr.msra.gmra.mrb[20].mxu1 %vm176_vm2, %v1583_v16 }
 0x9fc   :  { %1661 = vrot.lane.b32.xlu1 %v4895_v13, %s4737_s24  ;;  %s4738_s24 = smov [#allocation2]  }
 0xa78   :  { %v1580_v17 = vpop.xlane.xlu1 %1579 }
 0xa79   :  { %4651 = vrcp.f32 %v1580_v17 }
 0xa7c   :  { %v1662_v18 = vpop.permute.xlu1 %1661 }
 0xa7d   :  { %4352 = vmatpush3.msra.mxu0 %v1662_v18 }
 0xa7e   :  { %4356 = vmatprep.subr.mxu0 %v172_v12 }
 0xa83   :  { %v4652_v19 = vpop.eup %4651 }
 0xa84   :  { %v1584_v20 = vmul.f32 %v4652_v19, %v4648_v11 }
 0xa86   :  { %4354 = vmatmul.mubr.msk.f32.vlgmr.msra.gmra.mrb[12].mxu0 %vm176_vm2, %v1584_v20 }
 0xa87   :  { %4357 = vmatpush3.msra.mxu0 %v172_v12  ;;  %v4073_v12 = vld [vmem:[%s5394_s9] ss:$0 sm:$0xff] }
 0xa88   :  { %4393 = vmatprep.subr.mxu0 %v4725_v8 }
 0xac0   :  { %v1657_v21 = vpop.f32.mrb[20].mxu1 }
 0xac1   :  { %v4350_v22 = vpop.f32.mrb[21].mxu1  ;;  %4358 = vmatprep.mubr.msk.f32.mxu0 %vm176_vm2, %v1657_v21 }
 0xb59   :  { %v1733_v13 = vpop.f32.mrb[12].mxu0 }
 0xb5a   :  { %v4355_v23 = vpop.f32.mrb[13].mxu0  ;;  %4359 = vmatmul.mubr.msk.f32.vlgmr.msra.gmra.mrb[6].mxu0 %vm176_vm2, %v1733_v13 }
 0xb5b   :  { %4395 = vmatprep.mubr.msk.f32.mxu0 %vm4726_vm1, %v4725_v8 }
 0xc2d   :  { %v4360_v25 = vpop.f32.mrb[6].mxu0 }
 0xc2e   :  { %v1828_v26 = vadd.f32 %v4360_v25, %v4070_v24  ;;  %v1809_v27 = vpop.f32.mrb[7].mxu0 }
 0xc2f   :  { %v1827_v28 = vadd.f32 %v4070_v24, %v1809_v27 }
 0xc30   :  { %v1830_v29 = vadd.f32 %v1828_v26, %v4878_v7 }
 0xc31   :  { %v1829_v30 = vadd.f32 %v1827_v28, %v4871_v5  ;;  %v1876_v5 = vld [vmem:[%s5393_s8] sm:$0xff] }
 0xc32   :  { %v1834_v31 = vsel %vm87_vm0, %v1830_v29, 0.0  ;;  %v4537_v43 = vpack.c.bf16 %v1877_v42, %v1876_v5 }
 0xc33   :  { %1835 = vadd.xlane.f32.xlu0 %v1834_v31  ;;  %v1831_v32 = vsel %vm87_vm0, %v1829_v30, 0.0 }
 0xc34   :  { %1832 = vadd.xlane.f32.xlu1 %v1831_v32  ;;  %4538 = vmatprep.subr.bf16.mxu1 %v4537_v43 }
 0xc35   :  { %4540 = vmatpush3.bf16.msra.mxu1 %v4537_v43 }
 0xc36   :  { %4542 = vmatprep.subr.bf16.mxu1 %v4541_v46 }
 0xc39   :  { %4544 = vmatpush3.bf16.msra.mxu1 %v4541_v46 }
 0xc3a   :  { %4546 = vmatprep.subr.bf16.mxu1 %v4545_v49 }
 0xcc0   :  { %v1836_v33 = vpop.xlane.xlu0 %1835 }
 0xcc1   :  { %v1839_v34 = vmul.f32 0.03125, %v1836_v33  ;;  %v1833_v35 = vpop.xlane.xlu1 %1832 }
 0xcc2   :  { %v1838_v36 = vmul.f32 0.03125, %v1833_v35 }
 0xcc3   :  { %v1841_v37 = vsub.f32 %v1830_v29, %v1839_v34 }
 0xcc4   :  { %v1840_v38 = vsub.f32 %v1829_v30, %v1838_v36 }
 0xcc5   :  { %v1843_v39 = vmul.f32 %v1841_v37, %v1841_v37 }
 0xcc6   :  { %v1842_v40 = vmul.f32 %v1840_v38, %v1840_v38 }
 0xcc7   :  { %v1847_v41 = vsel %vm87_vm0, %v1843_v39, 0.0 }
 0xcc8   :  { %1848 = vadd.xlane.f32.xlu1 %v1847_v41  ;;  %v1844_v7 = vsel %vm87_vm0, %v1842_v40, 0.0 }
 0xcc9   :  { %1845 = vadd.xlane.f32.xlu0 %v1844_v7 }
 0xd55   :  { %v1849_v50 = vpop.xlane.xlu1 %1848 }
 0xd56   :  { %v1851_v51 = vmul.f32 0.03125, %v1849_v50  ;;  %v1846_v52 = vpop.xlane.xlu0 %1845 }
 0xd57   :  { %v1850_v53 = vmul.f32 0.03125, %v1846_v52 }
 0xd58   :  { %v1853_v54 = vadd.f32 1e-05, %v1851_v51 }
 0xd59   :  { %v1852_v55 = vadd.f32 1e-05, %v1850_v53 }
 0xd5a   :  { %4653 = vrsqrt.f32 %v1853_v54 }
 0xd5b   :  { %4655 = vrsqrt.f32 %v1852_v55 }
 0xd64   :  { %v4654_v56 = vpop.eup %4653 }
 0xd65   :  { %v4656_v58 = vpop.eup %4655  ;;  %v1857_v59 = vmul.f32 %v4654_v56, %v1841_v37 }
 0xd66   :  { %v1856_v60 = vmul.f32 %v4656_v58, %v1840_v38 }
 0xd67   :  { %v1866_v61 = vmul.f32 %v4071_v57, %v1857_v59 }
 0xd68   :  { %v1865_v63 = vmul.f32 %v4071_v57, %v1856_v60 }
 0xd69   :  { %v5087_v3 = vadd.f32 %v4072_v62, %v1866_v61 }
 0xd6a   :  { %v5085_v2 = vadd.f32 %v4072_v62, %v1865_v63 }
 0xd6c   :  { %4369 = vmatprep.mubr.msk.f32.mxu1 %vm87_vm0, %v5085_v2 }
 0xd6d   :  { %4370 = vmatmul.mubr.msk.f32.vlgmr.msra.gmra.mrb[22].mxu1 %vm87_vm0, %v5087_v3 }
 0xd6e   :  { %4548 = vmatpush3.bf16.msra.mxu1 %v4545_v49  ;;  %4380 = vmatprep.mubr.msk.f32.mxu1 %vm87_vm0, %v74_v6 }
 0xd6f   :  { %4550 = vmatprep.subr.bf16.mxu1 %v4549_v4 }
 0xd72   :  { %4552 = vmatpush3.bf16.msra.mxu1 %v4549_v4 }
 0xd73   :  { %4383 = vmatprep.subr.mxu1 %v4725_v8 }
 0xd75   :  { %4381 = vmatmul.mubr.msk.f32.vlgmr.msra.gmra.mrb[24].mxu1 %vm87_vm0, %v75_v9 }
 0xd76   :  { %4385 = vmatprep.mubr.msk.f32.mxu1 %vm4726_vm1, %v4725_v8 }
 0xe40   :  { %v4371_v10 = vpop.f32.mrb[22].mxu1 }
 0xe41   :  { %v1959_v11 = vpop.f32.mrb[23].mxu1  ;;  %v5127_v20 = vadd.f32 %v4371_v10, %v4073_v12 }
 0xe42   :  { %v5118_v19 = vadd.f32 %v4073_v12, %v1959_v11 }
 0xe48   :  { %v4382_v15 = vpop.f32.mrb[24].mxu1 }
 0xe49   :  { %v5107_v16 = vadd.f32 %v4382_v15, %v4076_v14  ;;  %v2051_v17 = vpop.f32.mrb[25].mxu1 }
 0xe4a   :  { %v5112_v18 = vadd.f32 %v4076_v14, %v2051_v17 }
 0xe4b   :  { %2470 = vrot.lane.b32.xlu1 %v5107_v16, %s4729_s4 }
 0xe4c   :  { %4384 = vmatpush3.xpose.msk.msra.mxu1 %vm176_vm2, %v5112_v18 }
 0xe4d   :  { %4388 = vmatprep.subr.mxu1 %v4725_v8 }
 0xe4f   :  { %4386 = vmatmul.mubr.msk.f32.vlgmr.msra.gmra.mrb[26].mxu1 %vm176_vm2, %v5118_v19 }
 0xe50   :  { %4389 = vmatpush3.xpose.msk.msra.mxu1 %vm176_vm2, %v5107_v16  ;;  %4390 = vmatprep.mubr.msk.f32.mxu1 %vm4726_vm1, %v4725_v8 }
 0xe51   :  { %4398 = vmatprep.subr.mxu1 %v4725_v8 }
 0xe53   :  { %4391 = vmatmul.mubr.msk.f32.vlgmr.msra.gmra.mrb[28].mxu1 %vm176_vm2, %v5127_v20 }
 0xe54   :  { %4400 = vmatprep.mubr.msk.f32.mxu1 %vm4726_vm1, %v4725_v8 }
 0xebd   :  { %v2471_v38 = vpop.permute.xlu1 %2470 }
 0xf22   :  { %v2136_v21 = vpop.f32.mrb[26].mxu1 }
 0xf23   :  { %v4387_v22 = vpop.f32.mrb[27].mxu1  ;;  %v2216_v25 = vsel %vm176_vm2, %v2136_v21, -inf }
 0xf26   :  { %v2212_v13 = vpop.f32.mrb[28].mxu1 }
 0xf27   :  { %v4392_v23 = vpop.f32.mrb[29].mxu1  ;;  %v2219_v24 = vsel %vm176_vm2, %v2212_v13, -inf }
 0xf28   :  { %2220 = vmax.xlane.f32.xlu0 %v2219_v24 }
 0xf3e   :  { %2314 = vrot.lane.b32.xlu0 %v5107_v16, %s4727_s29 }
 0xf5d   :  { %2217 = vmax.xlane.f32.xlu0 %v2216_v25 }
 0xf73   :  { %2238 = vrot.lane.b32.xlu0 %v5112_v18, %s4727_s29 }
 0xf77   :  { %2390 = vrot.lane.b32.xlu0 %v5118_v19, %s4729_s4 }
 0xfb5   :  { %v2221_v26 = vpop.xlane.xlu0 %2220 }
 0xfb6   :  { %v2223_v27 = vsub.f32 %v2212_v13, %v2221_v26 }
 0xfb8   :  { %v2226_v28 = vmul.f32 1.442695, %v2223_v27 }
 0xfb9   :  { %v2315_v29 = vpop.permute.xlu0 %2314 }
 0xfba   :  { %4657 = vpow2.f32 %v2226_v28  ;;  %4399 = vmatpush3.msra.mxu1 %v2315_v29  ;;  %v2061_v29 = vld [vmem:[%s5397_s12 + $0x8] sm:$0xff] }
 0xfbb   :  { %4408 = vmatprep.subr.mxu1 %v4725_v8 }
 0xfc4   :  { %v4658_v30 = vpop.eup %4657 }
 0xfc5   :  { %v2231_v31 = vsel %vm176_vm2, %v4658_v30, 0.0 }
 0xfc6   :  { %2232 = vadd.xlane.f32.xlu1 %v2231_v31 }
 0xfd7   :  { %2468 = vrot.lane.b32.xlu1 %v5127_v20, %s4729_s4 }
 0xfea   :  { %v2218_v32 = vpop.xlane.xlu0 %2217 }
 0xfeb   :  { %v2222_v33 = vsub.f32 %v2136_v21, %v2218_v32 }
 0xfed   :  { %v2224_v34 = vmul.f32 1.442695, %v2222_v33 }
 0xfee   :  { %v2239_v35 = vpop.permute.xlu0 %2238 }
 0xfef   :  { %4659 = vpow2.f32 %v2224_v34  ;;  %4394 = vmatpush3.msra.mxu0 %v2239_v35 }
 0xff0   :  { %4403 = vmatprep.subr.mxu0 %v4725_v8 }
 0xff2   :  { %v2391_v45 = vpop.permute.xlu0 %2390 }
 0xff9   :  { %v4660_v36 = vpop.eup %4659 }
 0xffa   :  { %v2228_v37 = vsel %vm176_vm2, %v4660_v36, 0.0 }
 0xffb   :  { %2229 = vadd.xlane.f32.xlu1 %v2228_v37 }
0x100c   :  { %2392 = vrot.lane.b32.xlu1 %v5112_v18, %s4729_s4 }
0x1053   :  { %v2233_v39 = vpop.xlane.xlu1 %2232 }
0x1054   :  { %4661 = vrcp.f32 %v2233_v39 }
0x1057   :  { %v2469_v7 = vpop.permute.xlu1 %2468 }
0x105e   :  { %v4662_v40 = vpop.eup %4661 }
0x105f   :  { %v2237_v41 = vmul.f32 %v4662_v40, %v4658_v30  ;;  %v2060_v30 = vld [vmem:[%s5397_s12] sm:$0xff] }
0x1061   :  { %4401 = vmatmul.mubr.msk.f32.vlgmr.msra.gmra.mrb[30].mxu1 %vm176_vm2, %v2237_v41 }
0x1062   :  { %4409 = vmatpush3.xpose.msk.msra.mxu1 %vm176_vm2, %v2471_v38  ;;  %4410 = vmatprep.mubr.msk.f32.mxu1 %vm4726_vm1, %v4725_v8 }
0x1063   :  { %4418 = vmatprep.subr.mxu1 %v4725_v8 }
0x1065   :  { %4411 = vmatmul.mubr.msk.f32.vlgmr.msra.gmra.mrb[32].mxu1 %vm176_vm2, %v2469_v7 }
0x1066   :  { %4420 = vmatprep.mubr.msk.f32.mxu1 %vm4726_vm1, %v4725_v8 }
0x1088   :  { %v2230_v5 = vpop.xlane.xlu1 %2229 }
0x1089   :  { %4663 = vrcp.f32 %v2230_v5  ;;  %v2062_v5 = vld [vmem:[%s5397_s12 + $0x10] sm:$0xff] }
0x108c   :  { %v2393_v44 = vpop.permute.xlu1 %2392 }
0x1093   :  { %v4664_v42 = vpop.eup %4663 }
0x1094   :  { %v2236_v43 = vmul.f32 %v4664_v42, %v4660_v36 }
0x1096   :  { %4396 = vmatmul.mubr.msk.f32.vlgmr.msra.gmra.mrb[14].mxu0 %vm176_vm2, %v2236_v43 }
0x1097   :  { %4404 = vmatpush3.xpose.msk.msra.mxu0 %vm176_vm2, %v2393_v44  ;;  %4405 = vmatprep.mubr.msk.f32.mxu0 %vm4726_vm1, %v4725_v8 }
0x1098   :  { %4413 = vmatprep.subr.mxu0 %v4725_v8 }
0x109a   :  { %4406 = vmatmul.mubr.msk.f32.vlgmr.msra.gmra.mrb[16].mxu0 %vm176_vm2, %v2391_v45 }
0x109b   :  { %4415 = vmatprep.mubr.msk.f32.mxu0 %vm4726_vm1, %v4725_v8 }
0x1134   :  { %v5166_v46 = vpop.f32.mrb[30].mxu1 }
0x1135   :  { %v4402_v47 = vpop.f32.mrb[31].mxu1 }
0x1138   :  { %v2542_v48 = vpop.f32.mrb[32].mxu1 }
0x1139   :  { %v4412_v49 = vpop.f32.mrb[33].mxu1  ;;  %v2549_v50 = vsel %vm176_vm2, %v2542_v48, -inf }
0x113a   :  { %2550 = vmax.xlane.f32.xlu1 %v2549_v50 }
0x114b   :  { %2884 = vrot.lane.b32.xlu1 %v5112_v18, %s4733_s5 }
0x114f   :  { %2882 = vrot.lane.b32.xlu1 %v5118_v19, %s4733_s5 }
0x1153   :  { %2960 = vrot.lane.b32.xlu1 %v5127_v20, %s4733_s5 }
0x1169   :  { %v5175_v51 = vpop.f32.mrb[14].mxu0 }
0x116a   :  { %v4397_v52 = vpop.f32.mrb[15].mxu0 }
0x116d   :  { %v2464_v53 = vpop.f32.mrb[16].mxu0 }
0x116e   :  { %v4407_v54 = vpop.f32.mrb[17].mxu0  ;;  %v2546_v60 = vsel %vm176_vm2, %v2464_v53, -inf }
0x11c7   :  { %v2551_v55 = vpop.xlane.xlu1 %2550 }
0x11c8   :  { %v2553_v56 = vsub.f32 %v2542_v48, %v2551_v55 }
0x11ca   :  { %v2556_v57 = vmul.f32 1.442695, %v2553_v56 }
0x11cb   :  { %v2885_v63 = vpop.permute.xlu1 %2884 }
0x11cc   :  { %4665 = vpow2.f32 %v2556_v57 }
0x11cf   :  { %v2883_v4 = vpop.permute.xlu1 %2882 }
0x11d3   :  { %v2961_v9 = vpop.permute.xlu1 %2960 }
0x11d6   :  { %v4666_v58 = vpop.eup %4665 }
0x11d7   :  { %v2561_v59 = vsel %vm176_vm2, %v4666_v58, 0.0 }
0x11d8   :  { %2562 = vadd.xlane.f32.xlu0 %v2561_v59 }
0x11ee   :  { %2644 = vrot.lane.b32.xlu0 %v5107_v16, %s4730_s0 }
0x11f2   :  { %2962 = vrot.lane.b32.xlu0 %v5107_v16, %s4733_s5 }
0x1211   :  { %2547 = vmax.xlane.f32.xlu0 %v2546_v60 }
0x1227   :  { %2568 = vrot.lane.b32.xlu0 %v5112_v18, %s4730_s0 }
0x122b   :  { %3060 = vrot.lane.b32.xlu0 %v5112_v18, %s4731_s23 }
0x122f   :  { %3297 = vrot.lane.b32.xlu0 %v5112_v18, %s4736_s25 }
0x1233   :  { %3375 = vrot.lane.b32.xlu0 %v5107_v16, %s4736_s25 }
0x1237   :  { %3295 = vrot.lane.b32.xlu0 %v5118_v19, %s4736_s25 }
0x123b   :  { %3373 = vrot.lane.b32.xlu0 %v5127_v20, %s4736_s25 }
0x1265   :  { %v2563_v61 = vpop.xlane.xlu0 %2562 }
0x1266   :  { %4667 = vrcp.f32 %v2563_v61 }
0x1269   :  { %v2645_v62 = vpop.permute.xlu0 %2644 }
0x126a   :  { %4419 = vmatpush3.msra.mxu1 %v2645_v62 }
0x126b   :  { %4433 = vmatprep.subr.mxu1 %v4725_v8 }
0x126d   :  { %v2963_v6 = vpop.permute.xlu0 %2962 }
0x1270   :  { %v4668_v0 = vpop.eup %4667 }
0x1271   :  { %v2567_v1 = vmul.f32 %v4668_v0, %v4666_v58 }
0x1273   :  { %4421 = vmatmul.mubr.msk.f32.vlgmr.msra.gmra.mrb[34].mxu1 %vm176_vm2, %v2567_v1 }
0x1274   :  { %4434 = vmatpush3.xpose.msk.msra.mxu1 %vm176_vm2, %v2885_v63  ;;  %4435 = vmatprep.mubr.msk.f32.mxu1 %vm4726_vm1, %v4725_v8 }
0x1275   :  { %4438 = vmatprep.subr.mxu1 %v4725_v8 }
0x1277   :  { %4436 = vmatmul.mubr.msk.f32.vlgmr.msra.gmra.mrb[36].mxu1 %vm176_vm2, %v2883_v4 }
0x1278   :  { %4439 = vmatpush3.xpose.msk.msra.mxu1 %vm176_vm2, %v2963_v6  ;;  %4440 = vmatprep.mubr.msk.f32.mxu1 %vm4726_vm1, %v4725_v8 }
0x1279   :  { %4448 = vmatprep.subr.mxu1 %v4725_v8 }
0x127b   :  { %4441 = vmatmul.mubr.msk.f32.vlgmr.msra.gmra.mrb[38].mxu1 %vm176_vm2, %v2961_v9 }
0x127c   :  { %4450 = vmatprep.mubr.msk.f32.mxu1 %vm4726_vm1, %v4725_v8 }
0x129e   :  { %v2548_v10 = vpop.xlane.xlu0 %2547 }
0x129f   :  { %v2552_v11 = vsub.f32 %v2464_v53, %v2548_v10 }
0x12a1   :  { %v2554_v14 = vmul.f32 1.442695, %v2552_v11 }
0x12a2   :  { %v2569_v15 = vpop.permute.xlu0 %2568 }
0x12a3   :  { %4669 = vpow2.f32 %v2554_v14  ;;  %4414 = vmatpush3.msra.mxu0 %v2569_v15 }
0x12a4   :  { %4423 = vmatprep.subr.mxu0 %v2061_v29 }
0x12a6   :  { %v3061_v42 = vpop.permute.xlu0 %3060 }
0x12aa   :  { %v3298_v47 = vpop.permute.xlu0 %3297 }
0x12ad   :  { %v4670_v17 = vpop.eup %4669 }
0x12ae   :  { %v2558_v12 = vsel %vm176_vm2, %v4670_v17, 0.0 }
0x12af   :  { %2559 = vadd.xlane.f32.xlu1 %v2558_v12 }
0x133c   :  { %v2560_v19 = vpop.xlane.xlu1 %2559 }
0x133d   :  { %4671 = vrcp.f32 %v2560_v19 }
0x1346   :  { %v2716_v20 = vpop.f32.mrb[34].mxu1 }
0x1347   :  { %v4672_v21 = vpop.eup %4671  ;;  %v4422_v22 = vpop.f32.mrb[35].mxu1 }
0x1348   :  { %v2566_v13 = vmul.f32 %v4672_v21, %v4670_v17  ;;  %v2063_v21 = vld [vmem:[%s5397_s12 + $0x18] sm:$0xff]  ;;  %s4024_s12 = sshll.u32 %s4738_s24, 4  ;;  %s4025_s12 = int_to_ptr.vmem [resolvable:$true] %s4024_s12 }
0x1349   :  { %p4706_p1 = scmp.lt.s32.totalorder %s4025_s12, %s4025_s12 }
0x134a   :  { %4416 = vmatmul.mubr.msk.f32.vlgmr.msra.gmra.mrb[18].mxu0 %vm176_vm2, %v2566_v13  ;;  %v2956_v23 = vpop.f32.mrb[36].mxu1 }
0x134b   :  { %v4437_v24 = vpop.f32.mrb[37].mxu1  ;;  %v3038_v25 = vsel %vm176_vm2, %v2956_v23, -inf  ;;  %4424 = vmatpush3.msra.mxu0 %v2061_v29 }
0x134c   :  { %3039 = vmax.xlane.f32.xlu1 %v3038_v25  ;;  %4428 = vmatprep.subr.mxu0 %v2060_v30 }
0x134e   :  { %v3034_v26 = vpop.f32.mrb[38].mxu1 }
0x134f   :  { %v4442_v27 = vpop.f32.mrb[39].mxu1  ;;  %v3041_v28 = vsel %vm176_vm2, %v3034_v26, -inf }
0x1350   :  { %3042 = vmax.xlane.f32.xlu1 %v3041_v28  ;;  %v4111_v27 = vld [vmem:[%s5398_s13] ss:$0 sm:$0xff]  ;;  %s4701_s13 = scalar_lea.vmem %s4025_s12, 256 }
0x1351   :  { %p4702_p0 = scmp.ne.s32.totalorder %s4025_s12, %s4701_s13  ;;  %p4707_p2 = scmp.lt.s32.totalorder %s4701_s13, %s4701_s13 }
0x1353   :  { %p4708_p3 = por %p4707_p2, %p4706_p1 }
0x1355   :  { %p4709_p4 = pnand %p4708_p3, %p4702_p0 }
0x13d9   :  { %v3040_v31 = vpop.xlane.xlu1 %3039 }
0x13da   :  { %v3044_v32 = vsub.f32 %v2956_v23, %v3040_v31 }
0x13dc   :  { %v3046_v33 = vmul.f32 1.442695, %v3044_v32 }
0x13dd   :  { %v3043_v34 = vpop.xlane.xlu1 %3042 }
0x13de   :  { %4673 = vpow2.f32 %v3046_v33  ;;  %v3045_v35 = vsub.f32 %v3034_v26, %v3043_v34 }
0x13e0   :  { %v3048_v36 = vmul.f32 1.442695, %v3045_v35 }
0x13e2   :  { %4675 = vpow2.f32 %v3048_v36 }
0x13e8   :  { %v4674_v37 = vpop.eup %4673 }
0x13e9   :  { %v3050_v38 = vsel %vm176_vm2, %v4674_v37, 0.0 }
0x13ea   :  { %3051 = vadd.xlane.f32.xlu1 %v3050_v38 }
0x13ec   :  { %v4676_v39 = vpop.eup %4675 }
0x13ed   :  { %v3053_v40 = vsel %vm176_vm2, %v4676_v39, 0.0 }
0x13ee   :  { %3054 = vadd.xlane.f32.xlu1 %v3053_v40 }
0x13ff   :  { %3136 = vrot.lane.b32.xlu1 %v5107_v16, %s4731_s23 }
0x141d   :  { %v2640_v41 = vpop.f32.mrb[18].mxu0 }
0x141e   :  { %v4417_v7 = vpop.f32.mrb[19].mxu0  ;;  %4425 = vmatprep.mubr.msk.f32.mxu0 %vm176_vm2, %v2640_v41 }
0x141f   :  { %4426 = vmatmul.mubr.msk.f32.vlgmr.msra.gmra.mrb[20].mxu0 %vm176_vm2, %v2716_v20 }
0x1420   :  { %4430 = vmatprep.mubr.msk.f32.mxu0 %vm176_vm2, %v5175_v51  ;;  %4429 = vmatpush3.msra.mxu0 %v2060_v30 }
0x1421   :  { %4443 = vmatprep.subr.mxu0 %v4725_v8 }
0x1427   :  { %4431 = vmatmul.mubr.msk.f32.vlgmr.msra.gmra.mrb[20].mxu0 %vm176_vm2, %v5166_v46  ;;  %v3376_v46 = vpop.permute.xlu0 %3375 }
0x1428   :  { %4444 = vmatpush3.msra.mxu0 %v3061_v42  ;;  %4445 = vmatprep.mubr.msk.f32.mxu0 %vm4726_vm1, %v4725_v8 }
0x1429   :  { %4453 = vmatprep.subr.mxu0 %v2062_v5 }
0x142b   :  { %v3296_v52 = vpop.permute.xlu0 %3295 }
0x142f   :  { %v3374_v57 = vpop.permute.xlu0 %3373 }
0x1477   :  { %v3052_v43 = vpop.xlane.xlu1 %3051 }
0x1478   :  { %4677 = vrcp.f32 %v3052_v43  ;;  %v3764_v43 = vld [vmem:[%s5401_s16 + $0x8] sm:$0xff] }
0x147b   :  { %v3055_v44 = vpop.xlane.xlu1 %3054 }
0x147c   :  { %4679 = vrcp.f32 %v3055_v44 }
0x147f   :  { %v3137_v45 = vpop.permute.xlu1 %3136 }
0x1480   :  { %4449 = vmatpush3.msra.mxu1 %v3137_v45  ;;  %v3765_v45 = vld [vmem:[%s5401_s16 + $0x10] sm:$0xff] }
0x1481   :  { %4458 = vmatprep.subr.mxu1 %v4725_v8 }
0x1482   :  { %v4678_v48 = vpop.eup %4677 }
0x1483   :  { %v3058_v49 = vmul.f32 %v4678_v48, %v4674_v37 }
0x1485   :  { %4446 = vmatmul.mubr.msk.f32.vlgmr.msra.gmra.mrb[22].mxu0 %vm176_vm2, %v3058_v49 }
0x1486   :  { %v4680_v50 = vpop.eup %4679  ;;  %4454 = vmatpush3.msra.mxu0 %v2062_v5 }
0x1487   :  { %v3059_v51 = vmul.f32 %v4680_v50, %v4676_v39  ;;  %4463 = vmatprep.subr.mxu0 %v4725_v8 }
0x1489   :  { %4451 = vmatmul.mubr.msk.f32.vlgmr.msra.gmra.mrb[40].mxu1 %vm176_vm2, %v3059_v51 }
0x148a   :  { %4459 = vmatpush3.xpose.msk.msra.mxu1 %vm176_vm2, %v3298_v47  ;;  %4460 = vmatprep.mubr.msk.f32.mxu1 %vm4726_vm1, %v4725_v8  ;;  %v3766_v47 = vld [vmem:[%s5401_s16 + $0x18] sm:$0xff] }
0x148b   :  { %4468 = vmatprep.subr.mxu1 %v4725_v8  ;;  %v4557_v48 = vpack.c.bf16 %v3766_v47, %v3765_v45 }
0x148d   :  { %4461 = vmatmul.mubr.msk.f32.vlgmr.msra.gmra.mrb[42].mxu1 %vm176_vm2, %v3296_v52 }
0x148e   :  { %4470 = vmatprep.mubr.msk.f32.mxu1 %vm4726_vm1, %v4725_v8 }
0x1558   :  { %v3132_v53 = vpop.f32.mrb[22].mxu0 }
0x1559   :  { %v4447_v54 = vpop.f32.mrb[23].mxu0  ;;  %4455 = vmatprep.mubr.msk.f32.mxu0 %vm176_vm2, %v3132_v53 }
0x155c   :  { %v3208_v55 = vpop.f32.mrb[40].mxu1 }
0x155d   :  { %v4452_v56 = vpop.f32.mrb[41].mxu1  ;;  %4456 = vmatmul.mubr.msk.f32.vlgmr.msra.gmra.mrb[20].mxu0 %vm176_vm2, %v3208_v55  ;;  %v4112_v55 = vld [vmem:[%s5399_s14] ss:$0 sm:$0xff] }
0x155e   :  { %4464 = vmatpush3.xpose.msk.msra.mxu0 %vm176_vm2, %v3376_v46  ;;  %4465 = vmatprep.mubr.msk.f32.mxu0 %vm4726_vm1, %v4725_v8 }
0x155f   :  { %4473 = vmatprep.subr.mxu0 %v4725_v8 }
0x1560   :  { %v3369_v58 = vpop.f32.mrb[42].mxu1 }
0x1561   :  { %v4462_v59 = vpop.f32.mrb[43].mxu1  ;;  %4466 = vmatmul.mubr.msk.f32.vlgmr.msra.gmra.mrb[24].mxu0 %vm176_vm2, %v3374_v57  ;;  %v3451_v60 = vsel %vm176_vm2, %v3369_v58, -inf }
0x1562   :  { %3452 = vmax.xlane.f32.xlu1 %v3451_v60  ;;  %4475 = vmatprep.mubr.msk.f32.mxu0 %vm4726_vm1, %v4725_v8  ;;  %v4113_v60 = vld [vmem:[%s5400_s15] ss:$0 sm:$0xff] }
0x15ef   :  { %v3453_v61 = vpop.xlane.xlu1 %3452 }
0x15f0   :  { %v3457_v62 = vsub.f32 %v3369_v58, %v3453_v61 }
0x15f2   :  { %v3459_v63 = vmul.f32 1.442695, %v3457_v62 }
0x15f4   :  { %4681 = vpow2.f32 %v3459_v63 }
0x15fe   :  { %v4682_v6 = vpop.eup %4681 }
0x15ff   :  { %v3463_v9 = vsel %vm176_vm2, %v4682_v6, 0.0 }
0x1634   :  { %v3447_v0 = vpop.f32.mrb[24].mxu0 }
0x1635   :  { %v4467_v1 = vpop.f32.mrb[25].mxu0  ;;  %v3454_v4 = vsel %vm176_vm2, %v3447_v0, -inf }
0x1636   :  { %3455 = vmax.xlane.f32.xlu0 %v3454_v4  ;;  %v3874_v1 = vld [vmem:[%s5403_s18 + $0x8] sm:$0xff] }
0x163a   :  { %3464 = vadd.xlane.f32.xlu0 %v3463_v9  ;;  %v3876_v9 = vld [vmem:[%s5403_s18 + $0x18] sm:$0xff] }
0x1650   :  { %3473 = vrot.lane.b32.xlu0 %v5112_v18, %s4735_s6 }
0x16c3   :  { %v3456_v10 = vpop.xlane.xlu0 %3455 }
0x16c4   :  { %v3458_v11 = vsub.f32 %v3447_v0, %v3456_v10  ;;  %v3873_v0 = vld [vmem:[%s5403_s18] sm:$0xff] }
0x16c5   :  { %v4561_v4 = vpack.c.bf16 %v3874_v1, %v3873_v0 }
0x16c6   :  { %v3461_v14 = vmul.f32 1.442695, %v3458_v11  ;;  %v3877_v11 = vld [vmem:[%s5403_s18 + $0x20] sm:$0xff] }
0x16c7   :  { %v3465_v8 = vpop.xlane.xlu0 %3464 }
0x16c8   :  { %4683 = vpow2.f32 %v3461_v14  ;;  %v3878_v14 = vld [vmem:[%s5403_s18 + $0x28] sm:$0xff] }
0x16c9   :  { %4685 = vrcp.f32 %v3465_v8  ;;  %v4569_v8 = vpack.c.bf16 %v3878_v14, %v3877_v11 }
0x16cb   :  { %v3474_v15 = vpop.permute.xlu0 %3473 }
0x16cc   :  { %4469 = vmatpush3.msra.mxu1 %v3474_v15  ;;  %v3879_v15 = vld [vmem:[%s5403_s18 + $0x30] sm:$0xff] }
0x16d2   :  { %v4684_v17 = vpop.eup %4683 }
0x16d3   :  { %v4686_v12 = vpop.eup %4685  ;;  %v3466_v19 = vsel %vm176_vm2, %v4684_v17, 0.0 }
0x16d4   :  { %v3471_v20 = vmul.f32 %v4686_v12, %v4682_v6  ;;  %3467 = vadd.xlane.f32.xlu1 %v3466_v19  ;;  %v3875_v6 = vld [vmem:[%s5403_s18 + $0x10] sm:$0xff]  ;;  %v3881_v19 = vld [vmem:[%s5403_s18 + $0x40] sm:$0xff] }
0x16d5   :  { %v4565_v10 = vpack.c.bf16 %v3876_v9, %v3875_v6 }
0x16d6   :  { %4471 = vmatmul.mubr.msk.f32.vlgmr.msra.gmra.mrb[44].mxu1 %vm176_vm2, %v3471_v20  ;;  %v3882_v20 = vld [vmem:[%s5403_s18 + $0x48] sm:$0xff] }
0x16e5   :  { %3549 = vrot.lane.b32.xlu1 %v5107_v16, %s4735_s6 }
0x1761   :  { %v3468_v18 = vpop.xlane.xlu1 %3467 }
0x1762   :  { %4687 = vrcp.f32 %v3468_v18  ;;  %v3883_v18 = vld [vmem:[%s5403_s18 + $0x50] sm:$0xff] }
0x1765   :  { %v3550_v22 = vpop.permute.xlu1 %3549 }
0x1766   :  { %4474 = vmatpush3.msra.mxu0 %v3550_v22  ;;  %v3884_v22 = vld [vmem:[%s5403_s18 + $0x58] sm:$0xff] }
0x1767   :  { %4478 = vmatprep.subr.mxu0 %v2063_v21 }
0x176c   :  { %v4688_v13 = vpop.eup %4687 }
0x176d   :  { %v3472_v23 = vmul.f32 %v4688_v13, %v4684_v17  ;;  %v3880_v17 = vld [vmem:[%s5403_s18 + $0x38] sm:$0xff]  ;;  %v4581_v13 = vpack.c.bf16 %v3884_v22, %v3883_v18 }
0x176e   :  { %v4573_v12 = vpack.c.bf16 %v3880_v17, %v3879_v15  ;;  %v4118_v15 = vld [vmem:[%s5405_s20] ss:$0 sm:$0xff] }
0x176f   :  { %4476 = vmatmul.mubr.msk.f32.vlgmr.msra.gmra.mrb[26].mxu0 %vm176_vm2, %v3472_v23  ;;  %v3885_v23 = vld [vmem:[%s5403_s18 + $0x60] sm:$0xff] }
0x1770   :  { %4479 = vmatpush3.msra.mxu0 %v2063_v21  ;;  %v4577_v21 = vpack.c.bf16 %v3882_v20, %v3881_v19  ;;  %v4119_v20 = vld [vmem:[%s5406_s21] ss:$0 sm:$0xff] }
0x1771   :  { %4562 = vmatprep.subr.bf16.mxu0 %v4561_v4 }
0x17a9   :  { %v3545_v24 = vpop.f32.mrb[44].mxu1 }
0x17aa   :  { %v4472_v25 = vpop.f32.mrb[45].mxu1  ;;  %4480 = vmatprep.mubr.msk.f32.mxu0 %vm176_vm2, %v3545_v24  ;;  %v3886_v24 = vld [vmem:[%s5403_s18 + $0x68] sm:$0xff] }
0x17ab   :  { %v4585_v25 = vpack.c.bf16 %v3886_v24, %v3885_v23 }
0x1842   :  { %v3621_v26 = vpop.f32.mrb[26].mxu0 }
0x1843   :  { %v4477_v16 = vpop.f32.mrb[27].mxu0  ;;  %4481 = vmatmul.mubr.msk.f32.vlgmr.msra.gmra.mrb[20].mxu0 %vm176_vm2, %v3621_v26  ;;  %v3887_v26 = vld [vmem:[%s5403_s18 + $0x70] sm:$0xff] }
0x1844   :  { %4564 = vmatpush3.bf16.msra.mxu0 %v4561_v4  ;;  %v3888_v16 = vld [vmem:[%s5403_s18 + $0x78] sm:$0xff] }
0x1845   :  { %4566 = vmatprep.subr.bf16.mxu0 %v4565_v10 }
0x1848   :  { %4568 = vmatpush3.bf16.msra.mxu0 %v4565_v10 }
0x1849   :  { %4570 = vmatprep.subr.bf16.mxu0 %v4569_v8 }
0x184c   :  { %4572 = vmatpush3.bf16.msra.mxu0 %v4569_v8 }
0x184d   :  { %4574 = vmatprep.subr.bf16.mxu0 %v4573_v12 }
0x1850   :  { %4576 = vmatpush3.bf16.msra.mxu0 %v4573_v12 }
0x1851   :  { %4578 = vmatprep.subr.bf16.mxu0 %v4577_v21 }
0x1854   :  { %4580 = vmatpush3.bf16.msra.mxu0 %v4577_v21 }
0x1855   :  { %4582 = vmatprep.subr.bf16.mxu0 %v4581_v13 }
0x1858   :  { %4584 = vmatpush3.bf16.msra.mxu0 %v4581_v13 }
0x1859   :  { %4586 = vmatprep.subr.bf16.mxu0 %v4585_v25 }
0x185c   :  { %4588 = vmatpush3.bf16.msra.mxu0 %v4585_v25 }
0x1916   :  { %v4482_v28 = vpop.f32.mrb[20].mxu0 }
0x1917   :  { %v3716_v29 = vadd.f32 %v4482_v28, %v4111_v27  ;;  %v3697_v30 = vpop.f32.mrb[21].mxu0  ;;  %v4114_v28 = vld [vmem:[%s5402_s17] ss:$0 sm:$0xff] }
0x1918   :  { %v3715_v31 = vadd.f32 %v4111_v27, %v3697_v30  ;;  %v4589_v27 = vpack.c.bf16 %v3888_v16, %v3887_v26 }
0x1919   :  { %v3718_v32 = vadd.f32 %v3716_v29, %v5087_v3 }
0x191a   :  { %v3717_v33 = vadd.f32 %v3715_v31, %v5085_v2  ;;  %v3763_v2 = vld [vmem:[%s5401_s16] sm:$0xff]  ;;  %4590 = vmatprep.subr.bf16.mxu0 %v4589_v27 }
0x191b   :  { %v3722_v34 = vsel %vm87_vm0, %v3718_v32, 0.0  ;;  %v4553_v44 = vpack.c.bf16 %v3764_v43, %v3763_v2  ;;  %4592 = vmatpush3.bf16.msra.mxu0 %v4589_v27 }
0x191c   :  { %3723 = vadd.xlane.f32.xlu0 %v3722_v34  ;;  %v3719_v35 = vsel %vm87_vm0, %v3717_v33, 0.0 }
0x191d   :  { %3720 = vadd.xlane.f32.xlu1 %v3719_v35  ;;  %4554 = vmatprep.subr.bf16.mxu1 %v4553_v44 }
0x191e   :  { %4556 = vmatpush3.bf16.msra.mxu1 %v4553_v44 }
0x191f   :  { %4558 = vmatprep.subr.bf16.mxu1 %v4557_v48 }
0x1922   :  { %4560 = vmatpush3.bf16.msra.mxu1 %v4557_v48  ;;  %v4117_v48 = vld [vmem:[%s5404_s19] ss:$0 sm:$0xff] }
0x19a9   :  { %v3724_v36 = vpop.xlane.xlu0 %3723 }
0x19aa   :  { %v3726_v37 = vmul.f32 0.03125, %v3724_v36  ;;  %v3721_v38 = vpop.xlane.xlu1 %3720 }
0x19ab   :  { %v3725_v39 = vmul.f32 0.03125, %v3721_v38 }
0x19ac   :  { %v3728_v40 = vsub.f32 %v3718_v32, %v3726_v37 }
0x19ad   :  { %v3727_v41 = vsub.f32 %v3717_v33, %v3725_v39 }
0x19ae   :  { %v3730_v7 = vmul.f32 %v3728_v40, %v3728_v40 }
0x19af   :  { %v3729_v5 = vmul.f32 %v3727_v41, %v3727_v41 }
0x19b0   :  { %v3734_v42 = vsel %vm87_vm0, %v3730_v7, 0.0 }
0x19b1   :  { %3735 = vadd.xlane.f32.xlu1 %v3734_v42  ;;  %v3731_v3 = vsel %vm87_vm0, %v3729_v5, 0.0 }
0x19b2   :  { %3732 = vadd.xlane.f32.xlu0 %v3731_v3 }
0x1a3e   :  { %v3736_v49 = vpop.xlane.xlu1 %3735 }
0x1a3f   :  { %v3738_v50 = vmul.f32 0.03125, %v3736_v49  ;;  %v3733_v46 = vpop.xlane.xlu0 %3732 }
0x1a40   :  { %v3737_v51 = vmul.f32 0.03125, %v3733_v46 }
0x1a41   :  { %v3740_v52 = vadd.f32 1e-05, %v3738_v50 }
0x1a42   :  { %v3739_v53 = vadd.f32 1e-05, %v3737_v51 }
0x1a43   :  { %4689 = vrsqrt.f32 %v3740_v52 }
0x1a44   :  { %4691 = vrsqrt.f32 %v3739_v53 }
0x1a4d   :  { %v4690_v54 = vpop.eup %4689 }
0x1a4e   :  { %v4692_v56 = vpop.eup %4691  ;;  %v3744_v57 = vmul.f32 %v4690_v54, %v3728_v40 }
0x1a4f   :  { %v3743_v58 = vmul.f32 %v4692_v56, %v3727_v41 }
0x1a50   :  { %v3753_v59 = vmul.f32 %v4112_v55, %v3744_v57 }
0x1a51   :  { %v3752_v61 = vmul.f32 %v4112_v55, %v3743_v58 }
0x1a52   :  { %v5299_v63 = vadd.f32 %v4113_v60, %v3753_v59 }
0x1a53   :  { %v5297_v62 = vadd.f32 %v4113_v60, %v3752_v61 }
0x1a55   :  { %4491 = vmatprep.mubr.msk.f32.mxu1 %vm87_vm0, %v5297_v62 }
0x1a56   :  { %4492 = vmatmul.mubr.msk.f32.vlgmr.msra.gmra.mrb[46].mxu1 %vm87_vm0, %v5299_v63 }
0x1b29   :  { %v4493_v29 = vpop.f32.mrb[46].mxu1 }
0x1b2a   :  { %v3852_v30 = vadd.f32 %v4493_v29, %v4114_v28  ;;  %v3846_v31 = vpop.f32.mrb[47].mxu1 }
0x1b2b   :  { %v3847_v32 = vadd.f32 %v4114_v28, %v3846_v31 }
0x1b2c   :  { %v3856_v33 = vmul.f32 %v3852_v30, %v3852_v30 }
0x1b2d   :  { %v3855_v34 = vmul.f32 %v3847_v32, %v3847_v32 }
0x1b2e   :  { %v3858_v35 = vmul.f32 %v3856_v33, %v3852_v30 }
0x1b2f   :  { %v3857_v36 = vmul.f32 %v3855_v34, %v3847_v32 }
0x1b30   :  { %v3860_v37 = vmul.f32 0.044715, %v3858_v35 }
0x1b31   :  { %v3859_v38 = vmul.f32 0.044715, %v3857_v36 }
0x1b32   :  { %v3862_v39 = vadd.f32 %v3860_v37, %v3852_v30 }
0x1b33   :  { %v3861_v40 = vadd.f32 %v3859_v38, %v3847_v32 }
0x1b34   :  { %v3864_v41 = vmul.f32 0.7978846, %v3862_v39 }
0x1b35   :  { %v3863_v7 = vmul.f32 0.7978846, %v3861_v40 }
0x1b36   :  { %4693 = vtanh.f32 %v3864_v41 }
0x1b37   :  { %4695 = vtanh.f32 %v3863_v7 }
0x1b40   :  { %v4694_v5 = vpop.eup %4693 }
0x1b41   :  { %v4696_v42 = vpop.eup %4695  ;;  %v3868_v3 = vadd.f32 1.0, %v4694_v5 }
0x1b42   :  { %v3867_v2 = vadd.f32 1.0, %v4696_v42 }
0x1b43   :  { %v3870_v43 = vmul.f32 0.5, %v3868_v3 }
0x1b44   :  { %v3869_v44 = vmul.f32 0.5, %v3867_v2 }
0x1b45   :  { %v3872_v47 = vmul.f32 %v3870_v43, %v3852_v30 }
0x1b46   :  { %v3871_v45 = vmul.f32 %v3869_v44, %v3847_v32 }
0x1b48   :  { %4526 = vmatprep.mubr.f32.mxu0 %v3871_v45 }
0x1b49   :  { %4527 = vmatmul.mubr.f32.vlgmr.msra.gmra.mrb[28].mxu0 %v3872_v47 }
0x1c1c   :  { %v4528_v49 = vpop.f32.mrb[28].mxu0 }
0x1c1d   :  { %v3968_v50 = vadd.f32 %v4528_v49, %v4117_v48  ;;  %v3962_v46 = vpop.f32.mrb[29].mxu0 }
0x1c1e   :  { %v3963_v51 = vadd.f32 %v4117_v48, %v3962_v46 }
0x1c1f   :  { %v3972_v52 = vadd.f32 %v3968_v50, %v5299_v63 }
0x1c20   :  { %v3971_v53 = vadd.f32 %v3963_v51, %v5297_v62 }
0x1c21   :  { %v3976_v54 = vsel %vm87_vm0, %v3972_v52, 0.0 }
0x1c22   :  { %3977 = vadd.xlane.f32.xlu1 %v3976_v54  ;;  %v3973_v55 = vsel %vm87_vm0, %v3971_v53, 0.0 }
0x1c23   :  { %3974 = vadd.xlane.f32.xlu0 %v3973_v55 }
0x1caf   :  { %v3978_v56 = vpop.xlane.xlu1 %3977 }
0x1cb0   :  { %v3980_v57 = vmul.f32 0.03125, %v3978_v56  ;;  %v3975_v58 = vpop.xlane.xlu0 %3974 }
0x1cb1   :  { %v3979_v59 = vmul.f32 0.03125, %v3975_v58 }
0x1cb2   :  { %v3982_v60 = vsub.f32 %v3972_v52, %v3980_v57 }
0x1cb3   :  { %v3981_v61 = vsub.f32 %v3971_v53, %v3979_v59 }
0x1cb4   :  { %v3984_v0 = vmul.f32 %v3982_v60, %v3982_v60 }
0x1cb5   :  { %v3983_v1 = vmul.f32 %v3981_v61, %v3981_v61 }
0x1cb6   :  { %v3988_v4 = vsel %vm87_vm0, %v3984_v0, 0.0 }
0x1cb7   :  { %3989 = vadd.xlane.f32.xlu1 %v3988_v4  ;;  %v3985_v63 = vsel %vm87_vm0, %v3983_v1, 0.0 }
0x1cb8   :  { %3986 = vadd.xlane.f32.xlu0 %v3985_v63 }
0x1d44   :  { %v3990_v62 = vpop.xlane.xlu1 %3989 }
0x1d45   :  { %v3992_v6 = vmul.f32 0.03125, %v3990_v62  ;;  %v3987_v9 = vpop.xlane.xlu0 %3986 }
0x1d46   :  { %v3991_v10 = vmul.f32 0.03125, %v3987_v9 }
0x1d47   :  { %v3994_v11 = vadd.f32 1e-05, %v3992_v6 }
0x1d48   :  { %v3993_v14 = vadd.f32 1e-05, %v3991_v10 }
0x1d49   :  { %4697 = vrsqrt.f32 %v3994_v11 }
0x1d4a   :  { %4699 = vrsqrt.f32 %v3993_v14 }
0x1d53   :  { %v4698_v8 = vpop.eup %4697 }
0x1d54   :  { %v4700_v17 = vpop.eup %4699  ;;  %v3998_v12 = vmul.f32 %v4698_v8, %v3982_v60 }
0x1d55   :  { %v3997_v19 = vmul.f32 %v4700_v17, %v3981_v61 }
0x1d56   :  { %v4007_v18 = vmul.f32 %v4118_v15, %v3998_v12 }
0x1d57   :  { %v4006_v21 = vmul.f32 %v4118_v15, %v3997_v19 }
0x1d58   :  { %v4016_v22 = vadd.f32 %v4119_v20, %v4007_v18 }
0x1d59   :  { %v4015_v13 = vadd.f32 %v4119_v20, %v4006_v21 }
0x1d5a   :  { %4018 = vst.msk [vmem:[#allocation2 + $0x8] sm:$0xff] %vm87_vm0, %v4016_v22 }
0x1d5b   :  { %4017 = vst.msk [vmem:[#allocation2] sm:$0xff] %vm87_vm0, %v4015_v13 }
0x1d5c   :  { %4712 = shalt.err (!%p4709_p4)
}
0x1d5d   :  { %s4713_s26 = scalar_lea.hbm %s5407_s22, 256 }
0x1d5e   :  { %p4714_p5 = scmp.ne.s32.totalorder %s5407_s22, %s4713_s26  ;;  %p4717_p6 = scmp.lt.u32.totalorder %s4713_s26, %s5407_s22 }
0x1d60   :  { %p4719_p7 = pnand %p4717_p6, %p4714_p5 }
0x1d62   :  { %4722 = shalt.err (!%p4719_p7)
}
0x1d63   :  { %s4739_s10 = smov 128   ;;  %s4740_s3 = smov 8  }
0x1d64   :  { %4030 = dma.vmem_to_hbm [thread:$0]  %s4025_s12, 256, %s5407_s22, [#allocation3], %s4739_s10, %s4739_s10, %s4740_s3  }
0x1d65   :  { %4723 = dma.done.wait [#allocation3], 256  }
0x1d66   :  { %4724 = vsyncadd [#allocation3], 4294967040 }
0x1d67   :  { %4034 = vsyncpa [#allocation3], 1 }

// kernel: spatial_encoder_forward.2
= control target key start
LH: loop header
LB: loop body
LE: loop exit
PB: predicated region body
PF: predicated region fallthrough
CT: control target
= control target key end

     0   :  { %s5800_s0 = inlined_call_operand.vmem [shape: f32[2,8,32], index: 0, kind: input, shape index: {}]   ;;  %s5801_s1 = inlined_call_operand.vmem [shape: f32[2,8,32], index: 1, kind: input, shape index: {}]   ;;  %s5802_s2 = inlined_call_operand.vmem [shape: f32[32,96], index: 2, kind: input, shape index: {}]   ;;  %s5803_s3 = inlined_call_operand.vmem [shape: f32[1,96], index: 3, kind: input, shape index: {}]   ;;  %s5804_s4 = inlined_call_operand.vmem [shape: f32[32,32], index: 4, kind: input, shape index: {}]   ;;  %s5805_s5 = inlined_call_operand.vmem [shape: f32[1,32], index: 5, kind: input, shape index: {}]   ;;  %s5806_s6 = inlined_call_operand.hbm [shape: f32[1,32], index: 6, kind: input, shape index: {}]   ;;  %s5807_s7 = inlined_call_operand.hbm [shape: f32[1,32], index: 7, kind: input, shape index: {}]   ;;  %s5808_s8 = inlined_call_operand.vmem [shape: f32[32,32], index: 8, kind: input, shape index: {}]   ;;  %s5809_s9 = inlined_call_operand.hbm [shape: f32[1,32], index: 9, kind: input, shape index: {}]   ;;  %s5810_s10 = inlined_call_operand.vmem [shape: f32[32,64], index: 10, kind: input, shape index: {}]   ;;  %s5811_s11 = inlined_call_operand.hbm [shape: f32[1,64], index: 11, kind: input, shape index: {}]   ;;  %s5812_s12 = inlined_call_operand.vmem [shape: f32[32,32], index: 12, kind: input, shape index: {}]   ;;  %s5813_s13 = inlined_call_operand.hbm [shape: f32[1,32], index: 13, kind: input, shape index: {}]   ;;  %s5814_s14 = inlined_call_operand.hbm [shape: f32[1,32], index: 14, kind: input, shape index: {}]   ;;  %s5815_s15 = inlined_call_operand.hbm [shape: f32[1,32], index: 15, kind: input, shape index: {}]   ;;  %s5816_s16 = inlined_call_operand.vmem [shape: f32[32,128], index: 16, kind: input, shape index: {}]   ;;  %s5817_s17 = inlined_call_operand.hbm [shape: f32[1,128], index: 17, kind: input, shape index: {}]   ;;  %s5818_s18 = inlined_call_operand.vmem [shape: f32[128,32], index: 18, kind: input, shape index: {}]   ;;  %s5819_s19 = inlined_call_operand.hbm [shape: f32[1,32], index: 19, kind: input, shape index: {}]   ;;  %s5820_s20 = inlined_call_operand.vmem [shape: f32[1,32], index: 20, kind: input, shape index: {}]   ;;  %s5821_s21 = inlined_call_operand.hbm [shape: f32[1,32], index: 21, kind: input, shape index: {}]   ;;  %s5822_s22 = inlined_call_operand.vmem [shape: f32[2,8,32], index: 22, kind: output, shape index: {}]  }
   0x1   :  { %5828 = sst [smem:[#allocation24_spill]] %s5800_s0 }
   0x2   :  { %5829 = sst [smem:[#allocation25_spill]] %s5801_s1 }
   0x3   :  { %5830 = sst [smem:[#allocation26_spill]] %s5802_s2 }
   0x4   :  { %5831 = sst [smem:[#allocation27_spill]] %s5803_s3 }
   0x5   :  { %5832 = sst [smem:[#allocation28_spill]] %s5804_s4 }
   0x6   :  { %5833 = sst [smem:[#allocation29_spill]] %s5805_s5 }
   0x7   :  { %5834 = sst [smem:[#allocation30_spill]] %s5806_s6 }
   0x8   :  { %27 = vsyncpa [#allocation3], 0 }
   0x9   :  { %28 = vsyncpa [#allocation5], 0 }
   0xa   :  { %29 = vsyncpa [#allocation8], 0 }
   0xb   :  { %30 = vsyncpa [#allocation11], 0 }
   0xc   :  { %31 = vsyncpa [#allocation14], 0 }
   0xd   :  { %32 = vsyncpa [#allocation17], 0  ;;  %s5049_s3 = smov [#allocation4]   ;;  %s5050_s29 = smov [#allocation7]  }
   0xe   :  { %s61_s28 = sshll.u32 %s5049_s3, 4  ;;  %s85_s30 = sshll.u32 %s5050_s29, 4  ;;  %s62_s28 = int_to_ptr.vmem [resolvable:$true] %s61_s28  ;;  %s86_s30 = int_to_ptr.vmem [resolvable:$true] %s85_s30 }
   0xf   :  { %s4817_s23 = scalar_lea.hbm %s5807_s7, 16 }
  0x10   :  { %p4818_p0 = scmp.ne.s32.totalorder %s5807_s7, %s4817_s23  ;;  %p4821_p1 = scmp.lt.u32.totalorder %s4817_s23, %s5807_s7 }
  0x12   :  { %p4823_p2 = pnand %p4821_p1, %p4818_p0 }
  0x14   :  { %4826 = shalt.err (!%p4823_p2)
}
  0x15   :  { %s4827_s25 = scalar_lea.vmem %s62_s28, 16  ;;  %s4831_s26 = scalar_lea.vmem %s62_s28, 32 }
  0x16   :  { %p4828_p3 = scmp.ne.s32.totalorder %s62_s28, %s4827_s25  ;;  %p4832_p4 = scmp.lt.s32.totalorder %s62_s28, %s62_s28 }
  0x17   :  { %p4833_p5 = scmp.lt.s32.totalorder %s4831_s26, %s4827_s25 }
  0x19   :  { %p4834_p6 = por %p4833_p5, %p4832_p4 }
  0x1b   :  { %p4835_p7 = pnand %p4834_p6, %p4828_p3 }
  0x1d   :  { %4838 = shalt.err (!%p4835_p7)
}
  0x1e   :  { %64 = dma.hbm_to_vmem [thread:$0]  %s5807_s7, 16, %s62_s28, [#allocation5]  }
  0x1f   :  { %s4839_s4 = scalar_lea.hbm %s5811_s11, 16 }
  0x20   :  { %p4840_p8 = scmp.ne.s32.totalorder %s5811_s11, %s4839_s4  ;;  %p4843_p9 = scmp.lt.u32.totalorder %s4839_s4, %s5811_s11 }
  0x22   :  { %p4845_p10 = pnand %p4843_p9, %p4840_p8 }
  0x24   :  { %4848 = shalt.err (!%p4845_p10)
}
  0x25   :  { %s4849_s24 = scalar_lea.vmem %s86_s30, 16  ;;  %s4853_s6 = scalar_lea.vmem %s86_s30, 32 }
  0x26   :  { %p4850_p11 = scmp.ne.s32.totalorder %s86_s30, %s4849_s24  ;;  %p4854_p12 = scmp.lt.s32.totalorder %s86_s30, %s86_s30 }
  0x27   :  { %p4855_p13 = scmp.lt.s32.totalorder %s4853_s6, %s4849_s24 }
  0x29   :  { %p4856_p0 = por %p4855_p13, %p4854_p12 }
  0x2b   :  { %p4857_p1 = pnand %p4856_p0, %p4850_p11 }
  0x2d   :  { %4860 = shalt.err (!%p4857_p1)
}
  0x2e   :  { %88 = dma.hbm_to_vmem [thread:$0]  %s5811_s11, 16, %s86_s30, [#allocation8]  }
  0x2f   :  { %s5051_s25 = smov [#allocation10]   ;;  %s5052_s2 = smov [#allocation13]  }
  0x30   :  { %s107_s26 = sshll.u32 %s5051_s25, 4  ;;  %s129_s27 = sshll.u32 %s5052_s2, 4  ;;  %s108_s26 = int_to_ptr.vmem [resolvable:$true] %s107_s26  ;;  %s130_s27 = int_to_ptr.vmem [resolvable:$true] %s129_s27 }
  0x31   :  { %s4861_s4 = scalar_lea.hbm %s5814_s14, 16 }
  0x32   :  { %p4862_p2 = scmp.ne.s32.totalorder %s5814_s14, %s4861_s4  ;;  %p4865_p3 = scmp.lt.u32.totalorder %s4861_s4, %s5814_s14 }
  0x34   :  { %p4867_p4 = pnand %p4865_p3, %p4862_p2 }
  0x36   :  { %4870 = shalt.err (!%p4867_p4)
}
  0x37   :  { %s4871_s11 = scalar_lea.vmem %s108_s26, 16  ;;  %s4875_s30 = scalar_lea.vmem %s108_s26, 32 }
  0x38   :  { %p4872_p5 = scmp.ne.s32.totalorder %s108_s26, %s4871_s11  ;;  %p4876_p6 = scmp.lt.s32.totalorder %s108_s26, %s108_s26 }
  0x39   :  { %p4877_p7 = scmp.lt.s32.totalorder %s4875_s30, %s4871_s11 }
  0x3b   :  { %p4878_p8 = por %p4877_p7, %p4876_p6 }
  0x3d   :  { %p4879_p9 = pnand %p4878_p8, %p4872_p5 }
  0x3f   :  { %4882 = shalt.err (!%p4879_p9)
}
  0x40   :  { %110 = dma.hbm_to_vmem [thread:$0]  %s5814_s14, 16, %s108_s26, [#allocation11]  }
  0x41   :  { %s4883_s25 = scalar_lea.hbm %s5817_s17, 16 }
  0x42   :  { %p4884_p10 = scmp.ne.s32.totalorder %s5817_s17, %s4883_s25  ;;  %p4887_p11 = scmp.lt.u32.totalorder %s4883_s25, %s5817_s17 }
  0x44   :  { %p4889_p12 = pnand %p4887_p11, %p4884_p10 }
  0x46   :  { %4892 = shalt.err (!%p4889_p12)
}
  0x47   :  { %s4893_s0 = scalar_lea.vmem %s130_s27, 16  ;;  %s4897_s23 = scalar_lea.vmem %s130_s27, 32 }
  0x48   :  { %p4894_p13 = scmp.ne.s32.totalorder %s130_s27, %s4893_s0  ;;  %p4898_p0 = scmp.lt.s32.totalorder %s130_s27, %s130_s27 }
  0x49   :  { %p4899_p1 = scmp.lt.s32.totalorder %s4897_s23, %s4893_s0 }
  0x4b   :  { %p4900_p2 = por %p4899_p1, %p4898_p0 }
  0x4d   :  { %p4901_p3 = pnand %p4900_p2, %p4894_p13 }
  0x4f   :  { %4904 = shalt.err (!%p4901_p3)
}
  0x50   :  { %132 = dma.hbm_to_vmem [thread:$0]  %s5817_s17, 16, %s130_s27, [#allocation14]  }
  0x51   :  { %s5053_s1 = smov [#allocation2]   ;;  %s5054_s11 = smov [#allocation6]  }
  0x52   :  { %s51_s5 = sshll.u32 %s5053_s1, 4  ;;  %s73_s30 = sshll.u32 %s5054_s11, 4  ;;  %s52_s5 = int_to_ptr.vmem [resolvable:$true] %s51_s5  ;;  %s74_s30 = int_to_ptr.vmem [resolvable:$true] %s73_s30 }
  0x53   :  { %s5835_s7 = sld [smem:[#allocation30_spill]] }
  0x59   :  { %s4905_s28 = scalar_lea.hbm %s5835_s7, 16 }
  0x5a   :  { %p4906_p4 = scmp.ne.s32.totalorder %s5835_s7, %s4905_s28  ;;  %p4909_p5 = scmp.lt.u32.totalorder %s4905_s28, %s5835_s7 }
  0x5c   :  { %p4911_p6 = pnand %p4909_p5, %p4906_p4 }
  0x5e   :  { %4914 = shalt.err (!%p4911_p6)
}
  0x5f   :  { %s4915_s17 = scalar_lea.vmem %s52_s5, 16  ;;  %s4919_s27 = scalar_lea.vmem %s52_s5, 32 }
  0x60   :  { %p4916_p7 = scmp.ne.s32.totalorder %s52_s5, %s4915_s17  ;;  %p4920_p8 = scmp.lt.s32.totalorder %s52_s5, %s52_s5 }
  0x61   :  { %p4921_p9 = scmp.lt.s32.totalorder %s4919_s27, %s4915_s17 }
  0x63   :  { %p4922_p10 = por %p4921_p9, %p4920_p8 }
  0x65   :  { %p4923_p11 = pnand %p4922_p10, %p4916_p7 }
  0x67   :  { %4926 = shalt.err (!%p4923_p11)
}
  0x68   :  { %54 = dma.hbm_to_vmem [thread:$0]  %s5835_s7, 16, %s52_s5, [#allocation3]  }
  0x69   :  { %s4927_s26 = scalar_lea.hbm %s5809_s9, 16 }
  0x6a   :  { %p4928_p12 = scmp.ne.s32.totalorder %s5809_s9, %s4927_s26  ;;  %p4931_p13 = scmp.lt.u32.totalorder %s4927_s26, %s5809_s9 }
  0x6c   :  { %p4933_p0 = pnand %p4931_p13, %p4928_p12 }
  0x6e   :  { %4936 = shalt.err (!%p4933_p0)
}
  0x6f   :  { %s4937_s28 = scalar_lea.vmem %s74_s30, 16  ;;  %s4941_s25 = scalar_lea.vmem %s74_s30, 32 }
  0x70   :  { %p4938_p1 = scmp.ne.s32.totalorder %s74_s30, %s4937_s28  ;;  %p4942_p2 = scmp.lt.s32.totalorder %s74_s30, %s74_s30 }
  0x71   :  { %p4943_p3 = scmp.lt.s32.totalorder %s4941_s25, %s4937_s28 }
  0x73   :  { %p4944_p4 = por %p4943_p3, %p4942_p2 }
  0x75   :  { %p4945_p5 = pnand %p4944_p4, %p4938_p1 }
  0x77   :  { %4948 = shalt.err (!%p4945_p5)
}
  0x78   :  { %76 = dma.hbm_to_vmem [thread:$0]  %s5809_s9, 16, %s74_s30, [#allocation5]  }
  0x79   :  { %s5055_s2 = smov [#allocation9]   ;;  %s5056_s29 = smov [#allocation12]  }
  0x7a   :  { %s97_s3 = sshll.u32 %s5055_s2, 4  ;;  %s117_s17 = sshll.u32 %s5056_s29, 4  ;;  %s98_s3 = int_to_ptr.vmem [resolvable:$true] %s97_s3  ;;  %s118_s17 = int_to_ptr.vmem [resolvable:$true] %s117_s17 }
  0x7b   :  { %s4949_s0 = scalar_lea.hbm %s5813_s13, 16 }
  0x7c   :  { %p4950_p6 = scmp.ne.s32.totalorder %s5813_s13, %s4949_s0  ;;  %p4953_p7 = scmp.lt.u32.totalorder %s4949_s0, %s5813_s13 }
  0x7e   :  { %p4955_p8 = pnand %p4953_p7, %p4950_p6 }
  0x80   :  { %4958 = shalt.err (!%p4955_p8)
}
  0x81   :  { %s4959_s9 = scalar_lea.vmem %s98_s3, 16  ;;  %s4963_s30 = scalar_lea.vmem %s98_s3, 32 }
  0x82   :  { %p4960_p9 = scmp.ne.s32.totalorder %s98_s3, %s4959_s9  ;;  %p4964_p10 = scmp.lt.s32.totalorder %s98_s3, %s98_s3 }
  0x83   :  { %p4965_p11 = scmp.lt.s32.totalorder %s4963_s30, %s4959_s9 }
  0x85   :  { %p4966_p12 = por %p4965_p11, %p4964_p10 }
  0x87   :  { %p4967_p13 = pnand %p4966_p12, %p4960_p9 }
  0x89   :  { %4970 = shalt.err (!%p4967_p13)
}
  0x8a   :  { %100 = dma.hbm_to_vmem [thread:$0]  %s5813_s13, 16, %s98_s3, [#allocation8]  }
  0x8b   :  { %s4971_s25 = scalar_lea.hbm %s5815_s15, 16 }
  0x8c   :  { %p4972_p0 = scmp.ne.s32.totalorder %s5815_s15, %s4971_s25  ;;  %p4975_p1 = scmp.lt.u32.totalorder %s4971_s25, %s5815_s15 }
  0x8e   :  { %p4977_p2 = pnand %p4975_p1, %p4972_p0 }
  0x90   :  { %4980 = shalt.err (!%p4977_p2)
}
  0x91   :  { %s4981_s27 = scalar_lea.vmem %s118_s17, 16  ;;  %s4985_s4 = scalar_lea.vmem %s118_s17, 32 }
  0x92   :  { %p4982_p3 = scmp.ne.s32.totalorder %s118_s17, %s4981_s27  ;;  %p4986_p4 = scmp.lt.s32.totalorder %s118_s17, %s118_s17 }
  0x93   :  { %p4987_p5 = scmp.lt.s32.totalorder %s4985_s4, %s4981_s27 }
  0x95   :  { %p4988_p6 = por %p4987_p5, %p4986_p4 }
  0x97   :  { %p4989_p7 = pnand %p4988_p6, %p4982_p3 }
  0x99   :  { %4992 = shalt.err (!%p4989_p7)
}
  0x9a   :  { %120 = dma.hbm_to_vmem [thread:$0]  %s5815_s15, 16, %s118_s17, [#allocation11]  }
  0x9b   :  { %s5057_s0 = smov [#allocation15]   ;;  %s5058_s14 = smov [#allocation16]  }
  0x9c   :  { %s141_s23 = sshll.u32 %s5057_s0, 4  ;;  %s153_s26 = sshll.u32 %s5058_s14, 4  ;;  %s142_s23 = int_to_ptr.vmem [resolvable:$true] %s141_s23  ;;  %s154_s26 = int_to_ptr.vmem [resolvable:$true] %s153_s26 }
  0x9d   :  { %s4993_s30 = scalar_lea.hbm %s5819_s19, 16 }
  0x9e   :  { %p4994_p8 = scmp.ne.s32.totalorder %s5819_s19, %s4993_s30  ;;  %p4997_p9 = scmp.lt.u32.totalorder %s4993_s30, %s5819_s19 }
  0xa0   :  { %p4999_p10 = pnand %p4997_p9, %p4994_p8 }
  0xa2   :  { %5002 = shalt.err (!%p4999_p10)
}
  0xa3   :  { %s5003_s15 = scalar_lea.vmem %s142_s23, 16  ;;  %s5007_s17 = scalar_lea.vmem %s142_s23, 32 }
  0xa4   :  { %p5004_p11 = scmp.ne.s32.totalorder %s142_s23, %s5003_s15  ;;  %p5008_p12 = scmp.lt.s32.totalorder %s142_s23, %s142_s23 }
  0xa5   :  { %p5009_p13 = scmp.lt.s32.totalorder %s5007_s17, %s5003_s15 }
  0xa7   :  { %p5010_p0 = por %p5009_p13, %p5008_p12 }
  0xa9   :  { %p5011_p1 = pnand %p5010_p0, %p5004_p11 }
  0xab   :  { %5014 = shalt.err (!%p5011_p1)
}
  0xac   :  { %144 = dma.hbm_to_vmem [thread:$0]  %s5819_s19, 16, %s142_s23, [#allocation14]  }
  0xad   :  { %s5015_s29 = scalar_lea.hbm %s5821_s21, 16 }
  0xae   :  { %p5016_p2 = scmp.ne.s32.totalorder %s5821_s21, %s5015_s29  ;;  %p5019_p3 = scmp.lt.u32.totalorder %s5015_s29, %s5821_s21 }
  0xb0   :  { %p5021_p4 = pnand %p5019_p3, %p5016_p2 }
  0xb2   :  { %5024 = shalt.err (!%p5021_p4)
}
  0xb3   :  { %s5025_s0 = scalar_lea.vmem %s154_s26, 16  ;;  %s5029_s14 = scalar_lea.vmem %s154_s26, 32 }
  0xb4   :  { %p5026_p5 = scmp.ne.s32.totalorder %s154_s26, %s5025_s0  ;;  %p5030_p6 = scmp.lt.s32.totalorder %s154_s26, %s154_s26 }
  0xb5   :  { %p5031_p7 = scmp.lt.s32.totalorder %s5029_s14, %s5025_s0 }
  0xb7   :  { %p5032_p8 = por %p5031_p7, %p5030_p6 }
  0xb9   :  { %p5033_p9 = pnand %p5032_p8, %p5026_p5 }
  0xbb   :  { %5036 = shalt.err (!%p5033_p9)
}
  0xbc   :  { %156 = dma.hbm_to_vmem [thread:$0]  %s5821_s21, 16, %s154_s26, [#allocation17]  }
  0xbd   :  { %5037 = dma.done.wait [#allocation3], 16  }
  0xbe   :  { %5038 = vsyncadd [#allocation3], 4294967280 }
  0xbf   :  { %5039 = dma.done.wait [#allocation5], 32  }
  0xc0   :  { %5040 = vsyncadd [#allocation5], 4294967264 }
  0xc1   :  { %5041 = dma.done.wait [#allocation8], 32  }
  0xc2   :  { %5042 = vsyncadd [#allocation8], 4294967264 }
  0xc3   :  { %5043 = dma.done.wait [#allocation11], 32  }
  0xc4   :  { %5044 = vsyncadd [#allocation11], 4294967264 }
  0xc5   :  { %5045 = dma.done.wait [#allocation14], 32  }
  0xc6   :  { %5046 = vsyncadd [#allocation14], 4294967264 }
  0xc7   :  { %5047 = dma.done.wait [#allocation17], 16  }
  0xc8   :  { %5048 = vsyncadd [#allocation17], 4294967280  ;;  %vm202_vm0 = vcmask 261120   ;;  %s5836_s30 = sld [smem:[#allocation26_spill]]  ;;  %s5837_s25 = sld [smem:[#allocation24_spill]]  ;;  %v5059_v8 = vmov 0.0  }
  0xc9   :  { %4380 = vmatprep.subr.mxu0 %v5059_v8  ;;  %vm5060_vm1 = vmmov 0   ;;  %s5838_s27 = sld [smem:[#allocation27_spill]]  ;;  %s5061_s4 = smov 96   ;;  %vm291_vm2 = vcmask 64512  }
  0xca   :  { %4382 = vmatprep.mubr.msk.f32.mxu0 %vm5060_vm1, %v5059_v8  ;;  %s5062_s13 = smov 64   ;;  %s5063_s3 = smov 120  }
  0xcb   :  { %s5064_s0 = smov 88   ;;  %s5065_s14 = smov 80  }
  0xcc   :  { %s5066_s19 = smov 56   ;;  %s5067_s23 = smov 112  }
  0xcd   :  { %s5068_s1 = smov 48   ;;  %s5069_s9 = smov 72  }
  0xce   :  { %v191_v0 = vld [vmem:[%s5836_s30] sm:$0xff]  ;;  %v192_v1 = vld [vmem:[%s5836_s30 + $0x8] sm:$0xff]  ;;  %v193_v2 = vld [vmem:[%s5836_s30 + $0x10] sm:$0xff]  ;;  %s5839_s21 = sld [smem:[#allocation28_spill]]  ;;  %s5071_s17 = smov 40  }
  0xcf   :  { %v4638_v3 = vpack.c.bf16 %v192_v1, %v191_v0  ;;  %v194_v4 = vld [vmem:[%s5836_s30 + $0x18] sm:$0xff]  ;;  %v5322_v5 = vld [vmem:[%s5837_s25] sm:$0xff]  ;;  %v5329_v7 = vld [vmem:[%s5837_s25 + $0x8] sm:$0xff]  ;;  %s5070_s30 = smov 104   ;;  %s5840_s29 = sld [smem:[#allocation29_spill]] }
  0xd0   :  { %v4642_v6 = vpack.c.bf16 %v194_v4, %v193_v2  ;;  %4367 = vmatprep.mubr.msk.f32.mxu1 %vm202_vm0, %v5322_v5  ;;  %v4144_v9 = vld [vmem:[%s5838_s27] ss:$0 sm:$0xff]  ;;  %s5841_s27 = sld [smem:[#allocation25_spill]] }
  0xd1   :  { %4639 = vmatprep.subr.bf16.mxu1 %v4638_v3 }
  0xd2   :  { %4641 = vmatpush3.bf16.msra.mxu1 %v4638_v3 }
  0xd3   :  { %4643 = vmatprep.subr.bf16.mxu1 %v4642_v6 }
  0xd6   :  { %4645 = vmatpush3.bf16.msra.mxu1 %v4642_v6 }
  0xd7   :  { %4370 = vmatprep.subr.mxu1 %v5059_v8 }
  0xd9   :  { %4368 = vmatmul.mubr.msk.f32.vlgmr.msra.gmra.mrb[0].mxu1 %vm202_vm0, %v5329_v7 }
  0xda   :  { %4372 = vmatprep.mubr.msk.f32.mxu1 %vm5060_vm1, %v5059_v8 }
 0x1ac   :  { %v4369_v10 = vpop.f32.mrb[0].mxu1 }
 0x1ad   :  { %v275_v11 = vpop.f32.mrb[1].mxu1  ;;  %v5346_v13 = vadd.f32 %v4369_v10, %v4144_v9 }
 0x1ae   :  { %v5342_v12 = vadd.f32 %v4144_v9, %v275_v11 }
 0x1b0   :  { %289 = vrot.lane.b32.xlu0 %v5342_v12, %s5061_s4 }
 0x1b4   :  { %367 = vrot.lane.b32.xlu0 %v5346_v13, %s5061_s4 }
 0x1b8   :  { %541 = vrot.lane.b32.xlu0 %v5346_v13, %s5062_s13 }
 0x1bc   :  { %695 = vrot.lane.b32.xlu0 %v5346_v13, %s5063_s3 }
 0x222   :  { %v290_v14 = vpop.permute.xlu0 %289 }
 0x223   :  { %4371 = vmatpush3.xpose.msk.msra.mxu1 %vm291_vm2, %v290_v14 }
 0x224   :  { %4375 = vmatprep.subr.mxu1 %v5059_v8 }
 0x226   :  { %4373 = vmatmul.mubr.msk.f32.vlgmr.msra.gmra.mrb[2].mxu1 %vm291_vm2, %v5342_v12  ;;  %v368_v15 = vpop.permute.xlu0 %367 }
 0x227   :  { %4376 = vmatpush3.xpose.msk.msra.mxu1 %vm291_vm2, %v368_v15  ;;  %4377 = vmatprep.mubr.msk.f32.mxu1 %vm5060_vm1, %v5059_v8 }
 0x228   :  { %4385 = vmatprep.subr.mxu1 %v5059_v8 }
 0x22a   :  { %4378 = vmatmul.mubr.msk.f32.vlgmr.msra.gmra.mrb[4].mxu1 %vm291_vm2, %v5346_v13  ;;  %v542_v16 = vpop.permute.xlu0 %541 }
 0x22b   :  { %4386 = vmatpush3.msra.mxu1 %v542_v16  ;;  %4387 = vmatprep.mubr.msk.f32.mxu1 %vm5060_vm1, %v5059_v8 }
 0x22c   :  { %4395 = vmatprep.subr.mxu1 %v5059_v8 }
 0x22e   :  { %v696_v23 = vpop.permute.xlu0 %695 }
 0x2f9   :  { %v362_v17 = vpop.f32.mrb[2].mxu1 }
 0x2fa   :  { %v4374_v18 = vpop.f32.mrb[3].mxu1  ;;  %v443_v19 = vsel %vm291_vm2, %v362_v17, -inf }
 0x2fb   :  { %444 = vmax.xlane.f32.xlu0 %v443_v19  ;;  %v284_v18 = vld [vmem:[%s5839_s21] sm:$0xff] }
 0x2fd   :  { %v439_v20 = vpop.f32.mrb[4].mxu1 }
 0x2fe   :  { %v4379_v21 = vpop.f32.mrb[5].mxu1  ;;  %v446_v22 = vsel %vm291_vm2, %v439_v20, -inf }
 0x2ff   :  { %447 = vmax.xlane.f32.xlu1 %v446_v22 }
 0x311   :  { %465 = vrot.lane.b32.xlu0 %v5342_v12, %s5062_s13 }
 0x315   :  { %617 = vrot.lane.b32.xlu0 %v5342_v12, %s5063_s3 }
 0x388   :  { %v445_v24 = vpop.xlane.xlu0 %444 }
 0x389   :  { %v449_v31 = vsub.f32 %v362_v17, %v445_v24  ;;  %v285_v17 = vld [vmem:[%s5839_s21 + $0x8] sm:$0xff] }
 0x38b   :  { %v451_v32 = vmul.f32 1.442695, %v449_v31 }
 0x38c   :  { %v448_v25 = vpop.xlane.xlu1 %447  ;;  %v466_v26 = vpop.permute.xlu0 %465 }
 0x38d   :  { %v450_v27 = vsub.f32 %v439_v20, %v448_v25  ;;  %4381 = vmatpush3.msra.mxu0 %v466_v26 }
 0x38e   :  { %4390 = vmatprep.subr.mxu0 %v5059_v8 }
 0x38f   :  { %v453_v28 = vmul.f32 1.442695, %v450_v27 }
 0x390   :  { %v618_v43 = vpop.permute.xlu0 %617 }
 0x391   :  { %4737 = vpow2.f32 %v453_v28 }
 0x392   :  { %4739 = vpow2.f32 %v451_v32 }
 0x39b   :  { %v4738_v29 = vpop.eup %4737 }
 0x39c   :  { %v458_v30 = vsel %vm291_vm2, %v4738_v29, 0.0  ;;  %v4740_v33 = vpop.eup %4739 }
 0x39d   :  { %459 = vadd.xlane.f32.xlu1 %v458_v30  ;;  %v455_v34 = vsel %vm291_vm2, %v4740_v33, 0.0 }
 0x3ae   :  { %697 = vrot.lane.b32.xlu1 %v5346_v13, %s5064_s0 }
 0x3d2   :  { %456 = vadd.xlane.f32.xlu1 %v455_v34 }
 0x3e3   :  { %619 = vrot.lane.b32.xlu1 %v5342_v12, %s5064_s0 }
 0x3e7   :  { %1111 = vrot.lane.b32.xlu1 %v5342_v12, %s5065_s14 }
 0x42a   :  { %v460_v35 = vpop.xlane.xlu1 %459 }
 0x42b   :  { %4741 = vrcp.f32 %v460_v35 }
 0x42e   :  { %v698_v38 = vpop.permute.xlu1 %697 }
 0x435   :  { %v4742_v36 = vpop.eup %4741 }
 0x436   :  { %v464_v37 = vmul.f32 %v4742_v36, %v4738_v29 }
 0x438   :  { %4388 = vmatmul.mubr.msk.f32.vlgmr.msra.gmra.mrb[6].mxu1 %vm291_vm2, %v464_v37 }
 0x439   :  { %4396 = vmatpush3.xpose.msk.msra.mxu1 %vm291_vm2, %v698_v38  ;;  %4397 = vmatprep.mubr.msk.f32.mxu1 %vm5060_vm1, %v5059_v8 }
 0x43a   :  { %4405 = vmatprep.subr.mxu1 %v5059_v8 }
 0x43c   :  { %4398 = vmatmul.mubr.msk.f32.vlgmr.msra.gmra.mrb[8].mxu1 %vm291_vm2, %v696_v23 }
 0x43d   :  { %4407 = vmatprep.mubr.msk.f32.mxu1 %vm5060_vm1, %v5059_v8 }
 0x45f   :  { %v457_v39 = vpop.xlane.xlu1 %456 }
 0x460   :  { %4743 = vrcp.f32 %v457_v39 }
 0x463   :  { %v620_v42 = vpop.permute.xlu1 %619 }
 0x467   :  { %v1112_v4 = vpop.permute.xlu1 %1111 }
 0x46a   :  { %v4744_v40 = vpop.eup %4743 }
 0x46b   :  { %v463_v41 = vmul.f32 %v4744_v40, %v4740_v33  ;;  %v286_v40 = vld [vmem:[%s5839_s21 + $0x10] sm:$0xff] }
 0x46d   :  { %4383 = vmatmul.mubr.msk.f32.vlgmr.msra.gmra.mrb[0].mxu0 %vm291_vm2, %v463_v41 }
 0x46e   :  { %4391 = vmatpush3.xpose.msk.msra.mxu0 %vm291_vm2, %v620_v42  ;;  %4392 = vmatprep.mubr.msk.f32.mxu0 %vm5060_vm1, %v5059_v8 }
 0x46f   :  { %4400 = vmatprep.subr.mxu0 %v5059_v8 }
 0x471   :  { %4393 = vmatmul.mubr.msk.f32.vlgmr.msra.gmra.mrb[2].mxu0 %vm291_vm2, %v618_v43 }
 0x472   :  { %4402 = vmatprep.mubr.msk.f32.mxu0 %vm5060_vm1, %v5059_v8 }
 0x50b   :  { %v5396_v44 = vpop.f32.mrb[6].mxu1 }
 0x50c   :  { %v4389_v45 = vpop.f32.mrb[7].mxu1 }
 0x50f   :  { %v769_v46 = vpop.f32.mrb[8].mxu1 }
 0x510   :  { %v4399_v47 = vpop.f32.mrb[9].mxu1  ;;  %v776_v48 = vsel %vm291_vm2, %v769_v46, -inf }
 0x511   :  { %777 = vmax.xlane.f32.xlu0 %v776_v48 }
 0x527   :  { %871 = vrot.lane.b32.xlu0 %v5346_v13, %s5066_s19 }
 0x52b   :  { %1109 = vrot.lane.b32.xlu0 %v5342_v12, %s5067_s23 }
 0x52f   :  { %1189 = vrot.lane.b32.xlu0 %v5346_v13, %s5065_s14 }
 0x540   :  { %v5404_v49 = vpop.f32.mrb[0].mxu0 }
 0x541   :  { %v4384_v50 = vpop.f32.mrb[1].mxu0 }
 0x544   :  { %v691_v51 = vpop.f32.mrb[2].mxu0 }
 0x545   :  { %v4394_v52 = vpop.f32.mrb[3].mxu0  ;;  %v773_v53 = vsel %vm291_vm2, %v691_v51, -inf }
 0x54e   :  { %774 = vmax.xlane.f32.xlu0 %v773_v53 }
 0x564   :  { %795 = vrot.lane.b32.xlu0 %v5342_v12, %s5066_s19 }
 0x568   :  { %1287 = vrot.lane.b32.xlu0 %v5342_v12, %s5068_s1 }
 0x56c   :  { %1524 = vrot.lane.b32.xlu0 %v5342_v12, %s5069_s9 }
 0x570   :  { %1602 = vrot.lane.b32.xlu0 %v5346_v13, %s5069_s9 }
 0x574   :  { %1522 = vrot.lane.b32.xlu0 %v5342_v12, %s5070_s30 }
 0x578   :  { %1600 = vrot.lane.b32.xlu0 %v5346_v13, %s5070_s30 }
 0x59e   :  { %v778_v54 = vpop.xlane.xlu0 %777 }
 0x59f   :  { %v780_v55 = vsub.f32 %v769_v46, %v778_v54 }
 0x5a1   :  { %v783_v56 = vmul.f32 1.442695, %v780_v55 }
 0x5a2   :  { %v872_v57 = vpop.permute.xlu0 %871 }
 0x5a3   :  { %4745 = vpow2.f32 %v783_v56  ;;  %4406 = vmatpush3.msra.mxu1 %v872_v57 }
 0x5a4   :  { %4420 = vmatprep.subr.mxu1 %v5059_v8 }
 0x5a6   :  { %v1110_v60 = vpop.permute.xlu0 %1109 }
 0x5aa   :  { %v1190_v61 = vpop.permute.xlu0 %1189 }
 0x5ad   :  { %v4746_v58 = vpop.eup %4745 }
 0x5ae   :  { %v788_v59 = vsel %vm291_vm2, %v4746_v58, 0.0 }
 0x5af   :  { %789 = vadd.xlane.f32.xlu1 %v788_v59 }
 0x5c0   :  { %1187 = vrot.lane.b32.xlu1 %v5346_v13, %s5067_s23 }
 0x5db   :  { %v775_v62 = vpop.xlane.xlu0 %774 }
 0x5dc   :  { %v779_v63 = vsub.f32 %v691_v51, %v775_v62 }
 0x5de   :  { %v781_v0 = vmul.f32 1.442695, %v779_v63 }
 0x5df   :  { %v796_v1 = vpop.permute.xlu0 %795 }
 0x5e0   :  { %4747 = vpow2.f32 %v781_v0  ;;  %4401 = vmatpush3.msra.mxu0 %v796_v1 }
 0x5e1   :  { %4410 = vmatprep.subr.mxu0 %v285_v17 }
 0x5e3   :  { %v1288_v29 = vpop.permute.xlu0 %1287 }
 0x5ea   :  { %v4748_v2 = vpop.eup %4747 }
 0x5eb   :  { %v785_v3 = vsel %vm291_vm2, %v4748_v2, 0.0 }
 0x5ec   :  { %786 = vadd.xlane.f32.xlu1 %v785_v3 }
 0x63c   :  { %v790_v6 = vpop.xlane.xlu1 %789 }
 0x63d   :  { %4749 = vrcp.f32 %v790_v6 }
 0x640   :  { %v1188_v11 = vpop.permute.xlu1 %1187 }
 0x647   :  { %v4750_v9 = vpop.eup %4749 }
 0x648   :  { %v794_v10 = vmul.f32 %v4750_v9, %v4746_v58 }
 0x64a   :  { %4408 = vmatmul.mubr.msk.f32.vlgmr.msra.gmra.mrb[10].mxu1 %vm291_vm2, %v794_v10 }
 0x64b   :  { %4421 = vmatpush3.xpose.msk.msra.mxu1 %vm291_vm2, %v1112_v4  ;;  %4422 = vmatprep.mubr.msk.f32.mxu1 %vm5060_vm1, %v5059_v8 }
 0x64c   :  { %4425 = vmatprep.subr.mxu1 %v5059_v8 }
 0x64e   :  { %4423 = vmatmul.mubr.msk.f32.vlgmr.msra.gmra.mrb[12].mxu1 %vm291_vm2, %v1110_v60 }
 0x64f   :  { %4426 = vmatpush3.xpose.msk.msra.mxu1 %vm291_vm2, %v1190_v61  ;;  %4427 = vmatprep.mubr.msk.f32.mxu1 %vm5060_vm1, %v5059_v8 }
 0x650   :  { %4435 = vmatprep.subr.mxu1 %v5059_v8 }
 0x652   :  { %4428 = vmatmul.mubr.msk.f32.vlgmr.msra.gmra.mrb[14].mxu1 %vm291_vm2, %v1188_v11 }
 0x653   :  { %4437 = vmatprep.mubr.msk.f32.mxu1 %vm5060_vm1, %v5059_v8 }
 0x679   :  { %v787_v14 = vpop.xlane.xlu1 %786 }
 0x67a   :  { %4751 = vrcp.f32 %v787_v14 }
 0x684   :  { %v4752_v15 = vpop.eup %4751 }
 0x685   :  { %v793_v16 = vmul.f32 %v4752_v15, %v4748_v2 }
 0x687   :  { %4403 = vmatmul.mubr.msk.f32.vlgmr.msra.gmra.mrb[4].mxu0 %vm291_vm2, %v793_v16 }
 0x688   :  { %4411 = vmatpush3.msra.mxu0 %v285_v17 }
 0x689   :  { %4415 = vmatprep.subr.mxu0 %v284_v18 }
 0x71d   :  { %v943_v19 = vpop.f32.mrb[10].mxu1 }
 0x71e   :  { %v4409_v20 = vpop.f32.mrb[11].mxu1 }
 0x721   :  { %v1183_v21 = vpop.f32.mrb[12].mxu1 }
 0x722   :  { %v4424_v22 = vpop.f32.mrb[13].mxu1  ;;  %v1265_v23 = vsel %vm291_vm2, %v1183_v21, -inf }
 0x723   :  { %1266 = vmax.xlane.f32.xlu1 %v1265_v23 }
 0x725   :  { %v1261_v24 = vpop.f32.mrb[14].mxu1 }
 0x726   :  { %v4429_v25 = vpop.f32.mrb[15].mxu1  ;;  %v1268_v26 = vsel %vm291_vm2, %v1261_v24, -inf }
 0x727   :  { %1269 = vmax.xlane.f32.xlu1 %v1268_v26 }
 0x75a   :  { %v867_v27 = vpop.f32.mrb[4].mxu0 }
 0x75b   :  { %v4404_v28 = vpop.f32.mrb[5].mxu0  ;;  %4412 = vmatprep.mubr.msk.f32.mxu0 %vm291_vm2, %v867_v27 }
 0x75c   :  { %4413 = vmatmul.mubr.msk.f32.vlgmr.msra.gmra.mrb[6].mxu0 %vm291_vm2, %v943_v19 }
 0x75d   :  { %4417 = vmatprep.mubr.msk.f32.mxu0 %vm291_vm2, %v5404_v49  ;;  %4416 = vmatpush3.msra.mxu0 %v284_v18 }
 0x75e   :  { %4430 = vmatprep.subr.mxu0 %v5059_v8 }
 0x764   :  { %4418 = vmatmul.mubr.msk.f32.vlgmr.msra.gmra.mrb[6].mxu0 %vm291_vm2, %v5396_v44  ;;  %v1525_v44 = vpop.permute.xlu0 %1524 }
 0x765   :  { %4431 = vmatpush3.msra.mxu0 %v1288_v29  ;;  %4432 = vmatprep.mubr.msk.f32.mxu0 %vm5060_vm1, %v5059_v8 }
 0x766   :  { %4440 = vmatprep.subr.mxu0 %v286_v40 }
 0x768   :  { %v1603_v48 = vpop.permute.xlu0 %1602 }
 0x76c   :  { %v1523_v50 = vpop.permute.xlu0 %1522 }
 0x770   :  { %v1601_v55 = vpop.permute.xlu0 %1600 }
 0x7b0   :  { %v1267_v30 = vpop.xlane.xlu1 %1266 }
 0x7b1   :  { %v1271_v31 = vsub.f32 %v1183_v21, %v1267_v30 }
 0x7b3   :  { %v1273_v32 = vmul.f32 1.442695, %v1271_v31 }
 0x7b4   :  { %v1270_v33 = vpop.xlane.xlu1 %1269 }
 0x7b5   :  { %4753 = vpow2.f32 %v1273_v32  ;;  %v1272_v34 = vsub.f32 %v1261_v24, %v1270_v33  ;;  %v4179_v24 = vld [vmem:[%s5840_s29] ss:$0 sm:$0xff] }
 0x7b7   :  { %v1275_v35 = vmul.f32 1.442695, %v1272_v34 }
 0x7b9   :  { %4755 = vpow2.f32 %v1275_v35 }
 0x7bf   :  { %v4754_v36 = vpop.eup %4753 }
 0x7c0   :  { %v1277_v37 = vsel %vm291_vm2, %v4754_v36, 0.0 }
 0x7c1   :  { %1278 = vadd.xlane.f32.xlu1 %v1277_v37 }
 0x7c3   :  { %v4756_v38 = vpop.eup %4755 }
 0x7c4   :  { %v1280_v39 = vsel %vm291_vm2, %v4756_v38, 0.0 }
 0x7c5   :  { %1281 = vadd.xlane.f32.xlu1 %v1280_v39 }
 0x7d6   :  { %1363 = vrot.lane.b32.xlu1 %v5346_v13, %s5068_s1 }
 0x84e   :  { %v1279_v41 = vpop.xlane.xlu1 %1278 }
 0x84f   :  { %4757 = vrcp.f32 %v1279_v41 }
 0x852   :  { %v1282_v42 = vpop.xlane.xlu1 %1281 }
 0x853   :  { %4759 = vrcp.f32 %v1282_v42  ;;  %v1992_v42 = vld [vmem:[%s5808_s8 + $0x8] sm:$0xff] }
 0x856   :  { %v1364_v43 = vpop.permute.xlu1 %1363 }
 0x857   :  { %4436 = vmatpush3.msra.mxu1 %v1364_v43 }
 0x858   :  { %4445 = vmatprep.subr.mxu1 %v5059_v8 }
 0x859   :  { %v4758_v45 = vpop.eup %4757 }
 0x85a   :  { %v1285_v46 = vmul.f32 %v4758_v45, %v4754_v36  ;;  %v1994_v45 = vld [vmem:[%s5808_s8 + $0x18] sm:$0xff] }
 0x85c   :  { %4433 = vmatmul.mubr.msk.f32.vlgmr.msra.gmra.mrb[8].mxu0 %vm291_vm2, %v1285_v46 }
 0x85d   :  { %v4760_v47 = vpop.eup %4759  ;;  %4441 = vmatpush3.msra.mxu0 %v286_v40 }
 0x85e   :  { %v1286_v49 = vmul.f32 %v4760_v47, %v4756_v38  ;;  %4450 = vmatprep.subr.mxu0 %v5059_v8  ;;  %v2083_v47 = vld [vmem:[%s5810_s10] sm:$0xff] }
 0x860   :  { %4438 = vmatmul.mubr.msk.f32.vlgmr.msra.gmra.mrb[16].mxu1 %vm291_vm2, %v1286_v49 }
 0x861   :  { %4446 = vmatpush3.xpose.msk.msra.mxu1 %vm291_vm2, %v1525_v44  ;;  %4447 = vmatprep.mubr.msk.f32.mxu1 %vm5060_vm1, %v5059_v8  ;;  %v1993_v44 = vld [vmem:[%s5808_s8 + $0x10] sm:$0xff] }
 0x862   :  { %4455 = vmatprep.subr.mxu1 %v5059_v8  ;;  %v4650_v46 = vpack.c.bf16 %v1994_v45, %v1993_v44 }
 0x864   :  { %4448 = vmatmul.mubr.msk.f32.vlgmr.msra.gmra.mrb[18].mxu1 %vm291_vm2, %v1523_v50 }
 0x865   :  { %4457 = vmatprep.mubr.msk.f32.mxu1 %vm5060_vm1, %v5059_v8 }
 0x92f   :  { %v1359_v51 = vpop.f32.mrb[8].mxu0 }
 0x930   :  { %v4434_v52 = vpop.f32.mrb[9].mxu0  ;;  %4442 = vmatprep.mubr.msk.f32.mxu0 %vm291_vm2, %v1359_v51 }
 0x933   :  { %v1435_v53 = vpop.f32.mrb[16].mxu1 }
 0x934   :  { %v4439_v54 = vpop.f32.mrb[17].mxu1  ;;  %4443 = vmatmul.mubr.msk.f32.vlgmr.msra.gmra.mrb[6].mxu0 %vm291_vm2, %v1435_v53 }
 0x935   :  { %4451 = vmatpush3.xpose.msk.msra.mxu0 %vm291_vm2, %v1603_v48  ;;  %4452 = vmatprep.mubr.msk.f32.mxu0 %vm5060_vm1, %v5059_v8  ;;  %v2084_v48 = vld [vmem:[%s5810_s10 + $0x8] sm:$0xff] }
 0x936   :  { %4460 = vmatprep.subr.mxu0 %v5059_v8  ;;  %v4654_v49 = vpack.c.bf16 %v2084_v48, %v2083_v47 }
 0x937   :  { %v1596_v56 = vpop.f32.mrb[18].mxu1 }
 0x938   :  { %v4449_v57 = vpop.f32.mrb[19].mxu1  ;;  %4453 = vmatmul.mubr.msk.f32.vlgmr.msra.gmra.mrb[10].mxu0 %vm291_vm2, %v1601_v55  ;;  %v1678_v58 = vsel %vm291_vm2, %v1596_v56, -inf }
 0x939   :  { %1679 = vmax.xlane.f32.xlu1 %v1678_v58  ;;  %4462 = vmatprep.mubr.msk.f32.mxu0 %vm5060_vm1, %v5059_v8  ;;  %v4180_v57 = vld [vmem:[#allocation2] ss:$0 sm:$0xff] }
 0x9c6   :  { %v1680_v59 = vpop.xlane.xlu1 %1679 }
 0x9c7   :  { %v1684_v60 = vsub.f32 %v1596_v56, %v1680_v59 }
 0x9c9   :  { %v1686_v61 = vmul.f32 1.442695, %v1684_v60 }
 0x9cb   :  { %4761 = vpow2.f32 %v1686_v61 }
 0x9d5   :  { %v4762_v1 = vpop.eup %4761 }
 0x9d6   :  { %v1690_v2 = vsel %vm291_vm2, %v4762_v1, 0.0 }
 0xa0b   :  { %v1674_v62 = vpop.f32.mrb[10].mxu0 }
 0xa0c   :  { %v4454_v63 = vpop.f32.mrb[11].mxu0  ;;  %v1681_v0 = vsel %vm291_vm2, %v1674_v62, -inf }
 0xa0d   :  { %1682 = vmax.xlane.f32.xlu0 %v1681_v0  ;;  %v2085_v0 = vld [vmem:[%s5810_s10 + $0x10] sm:$0xff] }
 0xa11   :  { %1691 = vadd.xlane.f32.xlu0 %v1690_v2 }
 0xa27   :  { %1700 = vrot.lane.b32.xlu0 %v5342_v12, %s5071_s17  ;;  %v287_v12 = vld [vmem:[%s5839_s21 + $0x18] sm:$0xff] }
 0xa9a   :  { %v1683_v3 = vpop.xlane.xlu0 %1682 }
 0xa9b   :  { %v1685_v4 = vsub.f32 %v1674_v62, %v1683_v3  ;;  %v4181_v62 = vld [vmem:[#allocation4] ss:$0 sm:$0xff] }
 0xa9d   :  { %v1688_v6 = vmul.f32 1.442695, %v1685_v4 }
 0xa9e   :  { %v1692_v9 = vpop.xlane.xlu0 %1691 }
 0xa9f   :  { %4763 = vpow2.f32 %v1688_v6  ;;  %v189_v6 = vld [vmem:[%s5841_s27] sm:$0xff] }
 0xaa0   :  { %4765 = vrcp.f32 %v1692_v9  ;;  %v190_v9 = vld [vmem:[%s5841_s27 + $0x8] sm:$0xff] }
 0xaa2   :  { %v1701_v10 = vpop.permute.xlu0 %1700 }
 0xaa3   :  { %4456 = vmatpush3.msra.mxu1 %v1701_v10 }
 0xaa9   :  { %v4764_v11 = vpop.eup %4763 }
 0xaaa   :  { %v4766_v14 = vpop.eup %4765  ;;  %v1693_v15 = vsel %vm291_vm2, %v4764_v11, 0.0 }
 0xaab   :  { %v1698_v16 = vmul.f32 %v4766_v14, %v4762_v1  ;;  %1694 = vadd.xlane.f32.xlu1 %v1693_v15  ;;  %v2086_v1 = vld [vmem:[%s5810_s10 + $0x18] sm:$0xff]  ;;  %v4185_v14 = vld [vmem:[#allocation7] ss:$0 sm:$0xff] }
 0xaac   :  { %v4658_v4 = vpack.c.bf16 %v2086_v1, %v2085_v0 }
 0xaad   :  { %4458 = vmatmul.mubr.msk.f32.vlgmr.msra.gmra.mrb[20].mxu1 %vm291_vm2, %v1698_v16 }
 0xabc   :  { %1776 = vrot.lane.b32.xlu1 %v5346_v13, %s5071_s17 }
 0xb38   :  { %v1695_v17 = vpop.xlane.xlu1 %1694 }
 0xb39   :  { %4767 = vrcp.f32 %v1695_v17 }
 0xb3c   :  { %v1777_v18 = vpop.permute.xlu1 %1776 }
 0xb3d   :  { %4461 = vmatpush3.msra.mxu0 %v1777_v18 }
 0xb3e   :  { %4465 = vmatprep.subr.mxu0 %v287_v12 }
 0xb43   :  { %v4768_v19 = vpop.eup %4767 }
 0xb44   :  { %v1699_v20 = vmul.f32 %v4768_v19, %v4764_v11 }
 0xb46   :  { %4463 = vmatmul.mubr.msk.f32.vlgmr.msra.gmra.mrb[12].mxu0 %vm291_vm2, %v1699_v20 }
 0xb47   :  { %4466 = vmatpush3.msra.mxu0 %v287_v12  ;;  %v4182_v12 = vld [vmem:[#allocation6] ss:$0 sm:$0xff] }
 0xb48   :  { %4502 = vmatprep.subr.mxu0 %v5059_v8 }
 0xb80   :  { %v1772_v21 = vpop.f32.mrb[20].mxu1 }
 0xb81   :  { %v4459_v22 = vpop.f32.mrb[21].mxu1  ;;  %4467 = vmatprep.mubr.msk.f32.mxu0 %vm291_vm2, %v1772_v21 }
 0xc19   :  { %v1848_v13 = vpop.f32.mrb[12].mxu0 }
 0xc1a   :  { %v4464_v23 = vpop.f32.mrb[13].mxu0  ;;  %4468 = vmatmul.mubr.msk.f32.vlgmr.msra.gmra.mrb[6].mxu0 %vm291_vm2, %v1848_v13 }
 0xc1b   :  { %4504 = vmatprep.mubr.msk.f32.mxu0 %vm5060_vm1, %v5059_v8 }
 0xced   :  { %v4469_v25 = vpop.f32.mrb[6].mxu0 }
 0xcee   :  { %v1943_v26 = vadd.f32 %v4469_v25, %v4179_v24  ;;  %v1924_v27 = vpop.f32.mrb[7].mxu0 }
 0xcef   :  { %v1942_v28 = vadd.f32 %v4179_v24, %v1924_v27 }
 0xcf0   :  { %v1945_v29 = vadd.f32 %v1943_v26, %v5329_v7 }
 0xcf1   :  { %v1944_v30 = vadd.f32 %v1942_v28, %v5322_v5  ;;  %v1991_v5 = vld [vmem:[%s5808_s8] sm:$0xff] }
 0xcf2   :  { %v1949_v31 = vsel %vm202_vm0, %v1945_v29, 0.0  ;;  %v4646_v43 = vpack.c.bf16 %v1992_v42, %v1991_v5 }
 0xcf3   :  { %1950 = vadd.xlane.f32.xlu0 %v1949_v31  ;;  %v1946_v32 = vsel %vm202_vm0, %v1944_v30, 0.0 }
 0xcf4   :  { %1947 = vadd.xlane.f32.xlu1 %v1946_v32  ;;  %4647 = vmatprep.subr.bf16.mxu1 %v4646_v43 }
 0xcf5   :  { %4649 = vmatpush3.bf16.msra.mxu1 %v4646_v43 }
 0xcf6   :  { %4651 = vmatprep.subr.bf16.mxu1 %v4650_v46 }
 0xcf9   :  { %4653 = vmatpush3.bf16.msra.mxu1 %v4650_v46 }
 0xcfa   :  { %4655 = vmatprep.subr.bf16.mxu1 %v4654_v49 }
 0xd80   :  { %v1951_v33 = vpop.xlane.xlu0 %1950 }
 0xd81   :  { %v1954_v34 = vmul.f32 0.03125, %v1951_v33  ;;  %v1948_v35 = vpop.xlane.xlu1 %1947 }
 0xd82   :  { %v1953_v36 = vmul.f32 0.03125, %v1948_v35 }
 0xd83   :  { %v1956_v37 = vsub.f32 %v1945_v29, %v1954_v34 }
 0xd84   :  { %v1955_v38 = vsub.f32 %v1944_v30, %v1953_v36 }
 0xd85   :  { %v1958_v39 = vmul.f32 %v1956_v37, %v1956_v37 }
 0xd86   :  { %v1957_v40 = vmul.f32 %v1955_v38, %v1955_v38 }
 0xd87   :  { %v1962_v41 = vsel %vm202_vm0, %v1958_v39, 0.0 }
 0xd88   :  { %1963 = vadd.xlane.f32.xlu1 %v1962_v41  ;;  %v1959_v7 = vsel %vm202_vm0, %v1957_v40, 0.0 }
 0xd89   :  { %1960 = vadd.xlane.f32.xlu0 %v1959_v7 }
 0xe15   :  { %v1964_v50 = vpop.xlane.xlu1 %1963 }
 0xe16   :  { %v1966_v51 = vmul.f32 0.03125, %v1964_v50  ;;  %v1961_v52 = vpop.xlane.xlu0 %1960 }
 0xe17   :  { %v1965_v53 = vmul.f32 0.03125, %v1961_v52 }
 0xe18   :  { %v1968_v54 = vadd.f32 1e-05, %v1966_v51 }
 0xe19   :  { %v1967_v55 = vadd.f32 1e-05, %v1965_v53 }
 0xe1a   :  { %4769 = vrsqrt.f32 %v1968_v54 }
 0xe1b   :  { %4771 = vrsqrt.f32 %v1967_v55 }
 0xe24   :  { %v4770_v56 = vpop.eup %4769 }
 0xe25   :  { %v4772_v58 = vpop.eup %4771  ;;  %v1972_v59 = vmul.f32 %v4770_v56, %v1956_v37 }
 0xe26   :  { %v1971_v60 = vmul.f32 %v4772_v58, %v1955_v38 }
 0xe27   :  { %v1981_v61 = vmul.f32 %v4180_v57, %v1972_v59 }
 0xe28   :  { %v1980_v63 = vmul.f32 %v4180_v57, %v1971_v60 }
 0xe29   :  { %v5532_v3 = vadd.f32 %v4181_v62, %v1981_v61 }
 0xe2a   :  { %v5530_v2 = vadd.f32 %v4181_v62, %v1980_v63 }
 0xe2c   :  { %4478 = vmatprep.mubr.msk.f32.mxu1 %vm202_vm0, %v5530_v2 }
 0xe2d   :  { %4479 = vmatmul.mubr.msk.f32.vlgmr.msra.gmra.mrb[22].mxu1 %vm202_vm0, %v5532_v3 }
 0xe2e   :  { %4657 = vmatpush3.bf16.msra.mxu1 %v4654_v49  ;;  %4489 = vmatprep.mubr.msk.f32.mxu1 %vm202_vm0, %v189_v6 }
 0xe2f   :  { %4659 = vmatprep.subr.bf16.mxu1 %v4658_v4 }
 0xe32   :  { %4661 = vmatpush3.bf16.msra.mxu1 %v4658_v4 }
 0xe33   :  { %4492 = vmatprep.subr.mxu1 %v5059_v8 }
 0xe35   :  { %4490 = vmatmul.mubr.msk.f32.vlgmr.msra.gmra.mrb[24].mxu1 %vm202_vm0, %v190_v9 }
 0xe36   :  { %4494 = vmatprep.mubr.msk.f32.mxu1 %vm5060_vm1, %v5059_v8 }
 0xf00   :  { %v4480_v10 = vpop.f32.mrb[22].mxu1 }
 0xf01   :  { %v2074_v11 = vpop.f32.mrb[23].mxu1  ;;  %v5566_v20 = vadd.f32 %v4480_v10, %v4182_v12 }
 0xf02   :  { %v5557_v19 = vadd.f32 %v4182_v12, %v2074_v11 }
 0xf08   :  { %v4491_v15 = vpop.f32.mrb[24].mxu1 }
 0xf09   :  { %v5549_v16 = vadd.f32 %v4491_v15, %v4185_v14  ;;  %v2166_v17 = vpop.f32.mrb[25].mxu1 }
 0xf0a   :  { %v5551_v18 = vadd.f32 %v4185_v14, %v2166_v17 }
 0xf0b   :  { %2585 = vrot.lane.b32.xlu1 %v5549_v16, %s5063_s3 }
 0xf0c   :  { %4493 = vmatpush3.xpose.msk.msra.mxu1 %vm291_vm2, %v5551_v18 }
 0xf0d   :  { %4497 = vmatprep.subr.mxu1 %v5059_v8 }
 0xf0f   :  { %4495 = vmatmul.mubr.msk.f32.vlgmr.msra.gmra.mrb[26].mxu1 %vm291_vm2, %v5557_v19 }
 0xf10   :  { %4498 = vmatpush3.xpose.msk.msra.mxu1 %vm291_vm2, %v5549_v16  ;;  %4499 = vmatprep.mubr.msk.f32.mxu1 %vm5060_vm1, %v5059_v8 }
 0xf11   :  { %4507 = vmatprep.subr.mxu1 %v5059_v8 }
 0xf13   :  { %4500 = vmatmul.mubr.msk.f32.vlgmr.msra.gmra.mrb[28].mxu1 %vm291_vm2, %v5566_v20 }
 0xf14   :  { %4509 = vmatprep.mubr.msk.f32.mxu1 %vm5060_vm1, %v5059_v8 }
 0xf7d   :  { %v2586_v38 = vpop.permute.xlu1 %2585 }
 0xfe2   :  { %v2251_v21 = vpop.f32.mrb[26].mxu1 }
 0xfe3   :  { %v4496_v22 = vpop.f32.mrb[27].mxu1  ;;  %v2331_v25 = vsel %vm291_vm2, %v2251_v21, -inf }
 0xfe6   :  { %v2327_v13 = vpop.f32.mrb[28].mxu1 }
 0xfe7   :  { %v4501_v23 = vpop.f32.mrb[29].mxu1  ;;  %v2334_v24 = vsel %vm291_vm2, %v2327_v13, -inf }
 0xfe8   :  { %2335 = vmax.xlane.f32.xlu0 %v2334_v24 }
 0xffe   :  { %2429 = vrot.lane.b32.xlu0 %v5549_v16, %s5061_s4 }
0x101d   :  { %2332 = vmax.xlane.f32.xlu0 %v2331_v25 }
0x1033   :  { %2353 = vrot.lane.b32.xlu0 %v5551_v18, %s5061_s4 }
0x1037   :  { %2505 = vrot.lane.b32.xlu0 %v5557_v19, %s5063_s3 }
0x1075   :  { %v2336_v26 = vpop.xlane.xlu0 %2335 }
0x1076   :  { %v2338_v27 = vsub.f32 %v2327_v13, %v2336_v26 }
0x1078   :  { %v2341_v28 = vmul.f32 1.442695, %v2338_v27 }
0x1079   :  { %v2430_v29 = vpop.permute.xlu0 %2429 }
0x107a   :  { %4773 = vpow2.f32 %v2341_v28  ;;  %4508 = vmatpush3.msra.mxu1 %v2430_v29  ;;  %v2176_v29 = vld [vmem:[%s5812_s12 + $0x8] sm:$0xff] }
0x107b   :  { %4517 = vmatprep.subr.mxu1 %v5059_v8 }
0x1084   :  { %v4774_v30 = vpop.eup %4773 }
0x1085   :  { %v2346_v31 = vsel %vm291_vm2, %v4774_v30, 0.0 }
0x1086   :  { %2347 = vadd.xlane.f32.xlu1 %v2346_v31 }
0x1097   :  { %2583 = vrot.lane.b32.xlu1 %v5566_v20, %s5063_s3 }
0x10aa   :  { %v2333_v32 = vpop.xlane.xlu0 %2332 }
0x10ab   :  { %v2337_v33 = vsub.f32 %v2251_v21, %v2333_v32 }
0x10ad   :  { %v2339_v34 = vmul.f32 1.442695, %v2337_v33 }
0x10ae   :  { %v2354_v35 = vpop.permute.xlu0 %2353 }
0x10af   :  { %4775 = vpow2.f32 %v2339_v34  ;;  %4503 = vmatpush3.msra.mxu0 %v2354_v35 }
0x10b0   :  { %4512 = vmatprep.subr.mxu0 %v5059_v8 }
0x10b2   :  { %v2506_v45 = vpop.permute.xlu0 %2505 }
0x10b9   :  { %v4776_v36 = vpop.eup %4775 }
0x10ba   :  { %v2343_v37 = vsel %vm291_vm2, %v4776_v36, 0.0 }
0x10bb   :  { %2344 = vadd.xlane.f32.xlu1 %v2343_v37 }
0x10cc   :  { %2507 = vrot.lane.b32.xlu1 %v5551_v18, %s5063_s3 }
0x1113   :  { %v2348_v39 = vpop.xlane.xlu1 %2347 }
0x1114   :  { %4777 = vrcp.f32 %v2348_v39 }
0x1117   :  { %v2584_v7 = vpop.permute.xlu1 %2583 }
0x111e   :  { %v4778_v40 = vpop.eup %4777 }
0x111f   :  { %v2352_v41 = vmul.f32 %v4778_v40, %v4774_v30  ;;  %v2175_v30 = vld [vmem:[%s5812_s12] sm:$0xff] }
0x1121   :  { %4510 = vmatmul.mubr.msk.f32.vlgmr.msra.gmra.mrb[30].mxu1 %vm291_vm2, %v2352_v41 }
0x1122   :  { %4518 = vmatpush3.xpose.msk.msra.mxu1 %vm291_vm2, %v2586_v38  ;;  %4519 = vmatprep.mubr.msk.f32.mxu1 %vm5060_vm1, %v5059_v8 }
0x1123   :  { %4527 = vmatprep.subr.mxu1 %v5059_v8 }
0x1125   :  { %4520 = vmatmul.mubr.msk.f32.vlgmr.msra.gmra.mrb[32].mxu1 %vm291_vm2, %v2584_v7 }
0x1126   :  { %4529 = vmatprep.mubr.msk.f32.mxu1 %vm5060_vm1, %v5059_v8 }
0x1148   :  { %v2345_v5 = vpop.xlane.xlu1 %2344 }
0x1149   :  { %4779 = vrcp.f32 %v2345_v5  ;;  %v2177_v5 = vld [vmem:[%s5812_s12 + $0x10] sm:$0xff] }
0x114c   :  { %v2508_v44 = vpop.permute.xlu1 %2507 }
0x1153   :  { %v4780_v42 = vpop.eup %4779 }
0x1154   :  { %v2351_v43 = vmul.f32 %v4780_v42, %v4776_v36 }
0x1156   :  { %4505 = vmatmul.mubr.msk.f32.vlgmr.msra.gmra.mrb[14].mxu0 %vm291_vm2, %v2351_v43 }
0x1157   :  { %4513 = vmatpush3.xpose.msk.msra.mxu0 %vm291_vm2, %v2508_v44  ;;  %4514 = vmatprep.mubr.msk.f32.mxu0 %vm5060_vm1, %v5059_v8 }
0x1158   :  { %4522 = vmatprep.subr.mxu0 %v5059_v8 }
0x115a   :  { %4515 = vmatmul.mubr.msk.f32.vlgmr.msra.gmra.mrb[16].mxu0 %vm291_vm2, %v2506_v45 }
0x115b   :  { %4524 = vmatprep.mubr.msk.f32.mxu0 %vm5060_vm1, %v5059_v8 }
0x11f4   :  { %v5605_v46 = vpop.f32.mrb[30].mxu1 }
0x11f5   :  { %v4511_v47 = vpop.f32.mrb[31].mxu1 }
0x11f8   :  { %v2657_v48 = vpop.f32.mrb[32].mxu1 }
0x11f9   :  { %v4521_v49 = vpop.f32.mrb[33].mxu1  ;;  %v2664_v50 = vsel %vm291_vm2, %v2657_v48, -inf }
0x11fa   :  { %2665 = vmax.xlane.f32.xlu1 %v2664_v50 }
0x120b   :  { %2999 = vrot.lane.b32.xlu1 %v5551_v18, %s5067_s23 }
0x120f   :  { %2997 = vrot.lane.b32.xlu1 %v5557_v19, %s5067_s23 }
0x1213   :  { %3075 = vrot.lane.b32.xlu1 %v5566_v20, %s5067_s23 }
0x1229   :  { %v5614_v51 = vpop.f32.mrb[14].mxu0 }
0x122a   :  { %v4506_v52 = vpop.f32.mrb[15].mxu0 }
0x122d   :  { %v2579_v53 = vpop.f32.mrb[16].mxu0 }
0x122e   :  { %v4516_v54 = vpop.f32.mrb[17].mxu0  ;;  %v2661_v60 = vsel %vm291_vm2, %v2579_v53, -inf }
0x1287   :  { %v2666_v55 = vpop.xlane.xlu1 %2665 }
0x1288   :  { %v2668_v56 = vsub.f32 %v2657_v48, %v2666_v55 }
0x128a   :  { %v2671_v57 = vmul.f32 1.442695, %v2668_v56 }
0x128b   :  { %v3000_v63 = vpop.permute.xlu1 %2999 }
0x128c   :  { %4781 = vpow2.f32 %v2671_v57 }
0x128f   :  { %v2998_v4 = vpop.permute.xlu1 %2997 }
0x1293   :  { %v3076_v9 = vpop.permute.xlu1 %3075 }
0x1296   :  { %v4782_v58 = vpop.eup %4781 }
0x1297   :  { %v2676_v59 = vsel %vm291_vm2, %v4782_v58, 0.0 }
0x1298   :  { %2677 = vadd.xlane.f32.xlu0 %v2676_v59 }
0x12ae   :  { %2759 = vrot.lane.b32.xlu0 %v5549_v16, %s5064_s0 }
0x12b2   :  { %3077 = vrot.lane.b32.xlu0 %v5549_v16, %s5067_s23 }
0x12d1   :  { %2662 = vmax.xlane.f32.xlu0 %v2661_v60 }
0x12e7   :  { %2683 = vrot.lane.b32.xlu0 %v5551_v18, %s5064_s0 }
0x12eb   :  { %3175 = vrot.lane.b32.xlu0 %v5551_v18, %s5065_s14 }
0x12ef   :  { %3412 = vrot.lane.b32.xlu0 %v5551_v18, %s5070_s30 }
0x12f3   :  { %3490 = vrot.lane.b32.xlu0 %v5549_v16, %s5070_s30 }
0x12f7   :  { %3410 = vrot.lane.b32.xlu0 %v5557_v19, %s5070_s30 }
0x12fb   :  { %3488 = vrot.lane.b32.xlu0 %v5566_v20, %s5070_s30 }
0x1325   :  { %v2678_v61 = vpop.xlane.xlu0 %2677 }
0x1326   :  { %4783 = vrcp.f32 %v2678_v61 }
0x1329   :  { %v2760_v62 = vpop.permute.xlu0 %2759 }
0x132a   :  { %4528 = vmatpush3.msra.mxu1 %v2760_v62 }
0x132b   :  { %4542 = vmatprep.subr.mxu1 %v5059_v8 }
0x132d   :  { %v3078_v6 = vpop.permute.xlu0 %3077 }
0x1330   :  { %v4784_v0 = vpop.eup %4783 }
0x1331   :  { %v2682_v1 = vmul.f32 %v4784_v0, %v4782_v58 }
0x1333   :  { %4530 = vmatmul.mubr.msk.f32.vlgmr.msra.gmra.mrb[34].mxu1 %vm291_vm2, %v2682_v1 }
0x1334   :  { %4543 = vmatpush3.xpose.msk.msra.mxu1 %vm291_vm2, %v3000_v63  ;;  %4544 = vmatprep.mubr.msk.f32.mxu1 %vm5060_vm1, %v5059_v8 }
0x1335   :  { %4547 = vmatprep.subr.mxu1 %v5059_v8 }
0x1337   :  { %4545 = vmatmul.mubr.msk.f32.vlgmr.msra.gmra.mrb[36].mxu1 %vm291_vm2, %v2998_v4 }
0x1338   :  { %4548 = vmatpush3.xpose.msk.msra.mxu1 %vm291_vm2, %v3078_v6  ;;  %4549 = vmatprep.mubr.msk.f32.mxu1 %vm5060_vm1, %v5059_v8 }
0x1339   :  { %4557 = vmatprep.subr.mxu1 %v5059_v8 }
0x133b   :  { %4550 = vmatmul.mubr.msk.f32.vlgmr.msra.gmra.mrb[38].mxu1 %vm291_vm2, %v3076_v9 }
0x133c   :  { %4559 = vmatprep.mubr.msk.f32.mxu1 %vm5060_vm1, %v5059_v8 }
0x135e   :  { %v2663_v10 = vpop.xlane.xlu0 %2662 }
0x135f   :  { %v2667_v11 = vsub.f32 %v2579_v53, %v2663_v10 }
0x1361   :  { %v2669_v14 = vmul.f32 1.442695, %v2667_v11 }
0x1362   :  { %v2684_v15 = vpop.permute.xlu0 %2683 }
0x1363   :  { %4785 = vpow2.f32 %v2669_v14  ;;  %4523 = vmatpush3.msra.mxu0 %v2684_v15 }
0x1364   :  { %4532 = vmatprep.subr.mxu0 %v2176_v29 }
0x1366   :  { %v3176_v42 = vpop.permute.xlu0 %3175 }
0x136a   :  { %v3413_v47 = vpop.permute.xlu0 %3412 }
0x136d   :  { %v4786_v17 = vpop.eup %4785 }
0x136e   :  { %v2673_v12 = vsel %vm291_vm2, %v4786_v17, 0.0 }
0x136f   :  { %2674 = vadd.xlane.f32.xlu1 %v2673_v12 }
0x13fc   :  { %v2675_v19 = vpop.xlane.xlu1 %2674 }
0x13fd   :  { %4787 = vrcp.f32 %v2675_v19 }
0x1406   :  { %v2831_v20 = vpop.f32.mrb[34].mxu1 }
0x1407   :  { %v4788_v21 = vpop.eup %4787  ;;  %v4531_v22 = vpop.f32.mrb[35].mxu1 }
0x1408   :  { %v2681_v13 = vmul.f32 %v4788_v21, %v4786_v17  ;;  %v2178_v21 = vld [vmem:[%s5812_s12 + $0x18] sm:$0xff] }
0x140a   :  { %4525 = vmatmul.mubr.msk.f32.vlgmr.msra.gmra.mrb[18].mxu0 %vm291_vm2, %v2681_v13  ;;  %v3071_v23 = vpop.f32.mrb[36].mxu1 }
0x140b   :  { %v4546_v24 = vpop.f32.mrb[37].mxu1  ;;  %v3153_v25 = vsel %vm291_vm2, %v3071_v23, -inf  ;;  %4533 = vmatpush3.msra.mxu0 %v2176_v29 }
0x140c   :  { %3154 = vmax.xlane.f32.xlu1 %v3153_v25  ;;  %4537 = vmatprep.subr.mxu0 %v2175_v30 }
0x140e   :  { %v3149_v26 = vpop.f32.mrb[38].mxu1 }
0x140f   :  { %v4551_v27 = vpop.f32.mrb[39].mxu1  ;;  %v3156_v28 = vsel %vm291_vm2, %v3149_v26, -inf }
0x1410   :  { %3157 = vmax.xlane.f32.xlu1 %v3156_v28  ;;  %v4220_v27 = vld [vmem:[#allocation9] ss:$0 sm:$0xff] }
0x1499   :  { %v3155_v31 = vpop.xlane.xlu1 %3154 }
0x149a   :  { %v3159_v32 = vsub.f32 %v3071_v23, %v3155_v31 }
0x149c   :  { %v3161_v33 = vmul.f32 1.442695, %v3159_v32 }
0x149d   :  { %v3158_v34 = vpop.xlane.xlu1 %3157 }
0x149e   :  { %4789 = vpow2.f32 %v3161_v33  ;;  %v3160_v35 = vsub.f32 %v3149_v26, %v3158_v34 }
0x14a0   :  { %v3163_v36 = vmul.f32 1.442695, %v3160_v35 }
0x14a2   :  { %4791 = vpow2.f32 %v3163_v36 }
0x14a8   :  { %v4790_v37 = vpop.eup %4789 }
0x14a9   :  { %v3165_v38 = vsel %vm291_vm2, %v4790_v37, 0.0 }
0x14aa   :  { %3166 = vadd.xlane.f32.xlu1 %v3165_v38 }
0x14ac   :  { %v4792_v39 = vpop.eup %4791 }
0x14ad   :  { %v3168_v40 = vsel %vm291_vm2, %v4792_v39, 0.0 }
0x14ae   :  { %3169 = vadd.xlane.f32.xlu1 %v3168_v40 }
0x14bf   :  { %3251 = vrot.lane.b32.xlu1 %v5549_v16, %s5065_s14 }
0x14dd   :  { %v2755_v41 = vpop.f32.mrb[18].mxu0 }
0x14de   :  { %v4526_v7 = vpop.f32.mrb[19].mxu0  ;;  %4534 = vmatprep.mubr.msk.f32.mxu0 %vm291_vm2, %v2755_v41 }
0x14df   :  { %4535 = vmatmul.mubr.msk.f32.vlgmr.msra.gmra.mrb[20].mxu0 %vm291_vm2, %v2831_v20 }
0x14e0   :  { %4539 = vmatprep.mubr.msk.f32.mxu0 %vm291_vm2, %v5614_v51  ;;  %4538 = vmatpush3.msra.mxu0 %v2175_v30 }
0x14e1   :  { %4552 = vmatprep.subr.mxu0 %v5059_v8 }
0x14e7   :  { %4540 = vmatmul.mubr.msk.f32.vlgmr.msra.gmra.mrb[20].mxu0 %vm291_vm2, %v5605_v46  ;;  %v3491_v46 = vpop.permute.xlu0 %3490 }
0x14e8   :  { %4553 = vmatpush3.msra.mxu0 %v3176_v42  ;;  %4554 = vmatprep.mubr.msk.f32.mxu0 %vm5060_vm1, %v5059_v8 }
0x14e9   :  { %4562 = vmatprep.subr.mxu0 %v2177_v5 }
0x14eb   :  { %v3411_v52 = vpop.permute.xlu0 %3410 }
0x14ef   :  { %v3489_v57 = vpop.permute.xlu0 %3488 }
0x1537   :  { %v3167_v43 = vpop.xlane.xlu1 %3166 }
0x1538   :  { %4793 = vrcp.f32 %v3167_v43  ;;  %v3879_v43 = vld [vmem:[%s5816_s16 + $0x8] sm:$0xff] }
0x153b   :  { %v3170_v44 = vpop.xlane.xlu1 %3169 }
0x153c   :  { %4795 = vrcp.f32 %v3170_v44 }
0x153f   :  { %v3252_v45 = vpop.permute.xlu1 %3251 }
0x1540   :  { %4558 = vmatpush3.msra.mxu1 %v3252_v45  ;;  %v3880_v45 = vld [vmem:[%s5816_s16 + $0x10] sm:$0xff] }
0x1541   :  { %4567 = vmatprep.subr.mxu1 %v5059_v8 }
0x1542   :  { %v4794_v48 = vpop.eup %4793 }
0x1543   :  { %v3173_v49 = vmul.f32 %v4794_v48, %v4790_v37 }
0x1545   :  { %4555 = vmatmul.mubr.msk.f32.vlgmr.msra.gmra.mrb[22].mxu0 %vm291_vm2, %v3173_v49 }
0x1546   :  { %v4796_v50 = vpop.eup %4795  ;;  %4563 = vmatpush3.msra.mxu0 %v2177_v5 }
0x1547   :  { %v3174_v51 = vmul.f32 %v4796_v50, %v4792_v39  ;;  %4572 = vmatprep.subr.mxu0 %v5059_v8 }
0x1549   :  { %4560 = vmatmul.mubr.msk.f32.vlgmr.msra.gmra.mrb[40].mxu1 %vm291_vm2, %v3174_v51 }
0x154a   :  { %4568 = vmatpush3.xpose.msk.msra.mxu1 %vm291_vm2, %v3413_v47  ;;  %4569 = vmatprep.mubr.msk.f32.mxu1 %vm5060_vm1, %v5059_v8  ;;  %v3881_v47 = vld [vmem:[%s5816_s16 + $0x18] sm:$0xff] }
0x154b   :  { %4577 = vmatprep.subr.mxu1 %v5059_v8  ;;  %v4666_v48 = vpack.c.bf16 %v3881_v47, %v3880_v45 }
0x154d   :  { %4570 = vmatmul.mubr.msk.f32.vlgmr.msra.gmra.mrb[42].mxu1 %vm291_vm2, %v3411_v52 }
0x154e   :  { %4579 = vmatprep.mubr.msk.f32.mxu1 %vm5060_vm1, %v5059_v8 }
0x1618   :  { %v3247_v53 = vpop.f32.mrb[22].mxu0 }
0x1619   :  { %v4556_v54 = vpop.f32.mrb[23].mxu0  ;;  %4564 = vmatprep.mubr.msk.f32.mxu0 %vm291_vm2, %v3247_v53 }
0x161c   :  { %v3323_v55 = vpop.f32.mrb[40].mxu1 }
0x161d   :  { %v4561_v56 = vpop.f32.mrb[41].mxu1  ;;  %4565 = vmatmul.mubr.msk.f32.vlgmr.msra.gmra.mrb[20].mxu0 %vm291_vm2, %v3323_v55  ;;  %v4221_v55 = vld [vmem:[#allocation10] ss:$0 sm:$0xff] }
0x161e   :  { %4573 = vmatpush3.xpose.msk.msra.mxu0 %vm291_vm2, %v3491_v46  ;;  %4574 = vmatprep.mubr.msk.f32.mxu0 %vm5060_vm1, %v5059_v8 }
0x161f   :  { %4582 = vmatprep.subr.mxu0 %v5059_v8 }
0x1620   :  { %v3484_v58 = vpop.f32.mrb[42].mxu1 }
0x1621   :  { %v4571_v59 = vpop.f32.mrb[43].mxu1  ;;  %4575 = vmatmul.mubr.msk.f32.vlgmr.msra.gmra.mrb[24].mxu0 %vm291_vm2, %v3489_v57  ;;  %v3566_v60 = vsel %vm291_vm2, %v3484_v58, -inf }
0x1622   :  { %3567 = vmax.xlane.f32.xlu1 %v3566_v60  ;;  %4584 = vmatprep.mubr.msk.f32.mxu0 %vm5060_vm1, %v5059_v8  ;;  %v4222_v60 = vld [vmem:[#allocation12] ss:$0 sm:$0xff] }
0x16af   :  { %v3568_v61 = vpop.xlane.xlu1 %3567 }
0x16b0   :  { %v3572_v62 = vsub.f32 %v3484_v58, %v3568_v61 }
0x16b2   :  { %v3574_v63 = vmul.f32 1.442695, %v3572_v62 }
0x16b4   :  { %4797 = vpow2.f32 %v3574_v63 }
0x16be   :  { %v4798_v6 = vpop.eup %4797 }
0x16bf   :  { %v3578_v9 = vsel %vm291_vm2, %v4798_v6, 0.0 }
0x16f4   :  { %v3562_v0 = vpop.f32.mrb[24].mxu0 }
0x16f5   :  { %v4576_v1 = vpop.f32.mrb[25].mxu0  ;;  %v3569_v4 = vsel %vm291_vm2, %v3562_v0, -inf }
0x16f6   :  { %3570 = vmax.xlane.f32.xlu0 %v3569_v4  ;;  %v3989_v1 = vld [vmem:[%s5818_s18 + $0x8] sm:$0xff] }
0x16fa   :  { %3579 = vadd.xlane.f32.xlu0 %v3578_v9  ;;  %v3991_v9 = vld [vmem:[%s5818_s18 + $0x18] sm:$0xff] }
0x1710   :  { %3588 = vrot.lane.b32.xlu0 %v5551_v18, %s5069_s9 }
0x1783   :  { %v3571_v10 = vpop.xlane.xlu0 %3570 }
0x1784   :  { %v3573_v11 = vsub.f32 %v3562_v0, %v3571_v10  ;;  %v3988_v0 = vld [vmem:[%s5818_s18] sm:$0xff] }
0x1785   :  { %v4670_v4 = vpack.c.bf16 %v3989_v1, %v3988_v0 }
0x1786   :  { %v3576_v14 = vmul.f32 1.442695, %v3573_v11  ;;  %v3992_v11 = vld [vmem:[%s5818_s18 + $0x20] sm:$0xff] }
0x1787   :  { %v3580_v8 = vpop.xlane.xlu0 %3579 }
0x1788   :  { %4799 = vpow2.f32 %v3576_v14  ;;  %v3993_v14 = vld [vmem:[%s5818_s18 + $0x28] sm:$0xff] }
0x1789   :  { %4801 = vrcp.f32 %v3580_v8  ;;  %v4678_v8 = vpack.c.bf16 %v3993_v14, %v3992_v11 }
0x178b   :  { %v3589_v15 = vpop.permute.xlu0 %3588 }
0x178c   :  { %4578 = vmatpush3.msra.mxu1 %v3589_v15  ;;  %v3994_v15 = vld [vmem:[%s5818_s18 + $0x30] sm:$0xff] }
0x1792   :  { %v4800_v17 = vpop.eup %4799 }
0x1793   :  { %v4802_v12 = vpop.eup %4801  ;;  %v3581_v19 = vsel %vm291_vm2, %v4800_v17, 0.0 }
0x1794   :  { %v3586_v20 = vmul.f32 %v4802_v12, %v4798_v6  ;;  %3582 = vadd.xlane.f32.xlu1 %v3581_v19  ;;  %v3990_v6 = vld [vmem:[%s5818_s18 + $0x10] sm:$0xff]  ;;  %v3996_v19 = vld [vmem:[%s5818_s18 + $0x40] sm:$0xff] }
0x1795   :  { %v4674_v10 = vpack.c.bf16 %v3991_v9, %v3990_v6 }
0x1796   :  { %4580 = vmatmul.mubr.msk.f32.vlgmr.msra.gmra.mrb[44].mxu1 %vm291_vm2, %v3586_v20  ;;  %v3997_v20 = vld [vmem:[%s5818_s18 + $0x48] sm:$0xff] }
0x17a5   :  { %3664 = vrot.lane.b32.xlu1 %v5549_v16, %s5069_s9 }
0x1821   :  { %v3583_v18 = vpop.xlane.xlu1 %3582 }
0x1822   :  { %4803 = vrcp.f32 %v3583_v18  ;;  %v3998_v18 = vld [vmem:[%s5818_s18 + $0x50] sm:$0xff] }
0x1825   :  { %v3665_v22 = vpop.permute.xlu1 %3664 }
0x1826   :  { %4583 = vmatpush3.msra.mxu0 %v3665_v22  ;;  %v3999_v22 = vld [vmem:[%s5818_s18 + $0x58] sm:$0xff] }
0x1827   :  { %4587 = vmatprep.subr.mxu0 %v2178_v21 }
0x182c   :  { %v4804_v13 = vpop.eup %4803 }
0x182d   :  { %v3587_v23 = vmul.f32 %v4804_v13, %v4800_v17  ;;  %v3995_v17 = vld [vmem:[%s5818_s18 + $0x38] sm:$0xff]  ;;  %v4690_v13 = vpack.c.bf16 %v3999_v22, %v3998_v18 }
0x182e   :  { %v4682_v12 = vpack.c.bf16 %v3995_v17, %v3994_v15  ;;  %v4227_v15 = vld [vmem:[%s5820_s20] ss:$0 sm:$0xff] }
0x182f   :  { %4585 = vmatmul.mubr.msk.f32.vlgmr.msra.gmra.mrb[26].mxu0 %vm291_vm2, %v3587_v23  ;;  %v4000_v23 = vld [vmem:[%s5818_s18 + $0x60] sm:$0xff] }
0x1830   :  { %4588 = vmatpush3.msra.mxu0 %v2178_v21  ;;  %v4686_v21 = vpack.c.bf16 %v3997_v20, %v3996_v19  ;;  %v4228_v19 = vld [vmem:[#allocation16] ss:$0 sm:$0xff] }
0x1831   :  { %4671 = vmatprep.subr.bf16.mxu0 %v4670_v4 }
0x1869   :  { %v3660_v24 = vpop.f32.mrb[44].mxu1 }
0x186a   :  { %v4581_v25 = vpop.f32.mrb[45].mxu1  ;;  %4589 = vmatprep.mubr.msk.f32.mxu0 %vm291_vm2, %v3660_v24  ;;  %v4001_v24 = vld [vmem:[%s5818_s18 + $0x68] sm:$0xff] }
0x186b   :  { %v4694_v25 = vpack.c.bf16 %v4001_v24, %v4000_v23 }
0x1902   :  { %v3736_v26 = vpop.f32.mrb[26].mxu0 }
0x1903   :  { %v4586_v16 = vpop.f32.mrb[27].mxu0  ;;  %4590 = vmatmul.mubr.msk.f32.vlgmr.msra.gmra.mrb[20].mxu0 %vm291_vm2, %v3736_v26  ;;  %v4002_v26 = vld [vmem:[%s5818_s18 + $0x70] sm:$0xff] }
0x1904   :  { %4673 = vmatpush3.bf16.msra.mxu0 %v4670_v4  ;;  %v4003_v16 = vld [vmem:[%s5818_s18 + $0x78] sm:$0xff] }
0x1905   :  { %4675 = vmatprep.subr.bf16.mxu0 %v4674_v10 }
0x1908   :  { %4677 = vmatpush3.bf16.msra.mxu0 %v4674_v10 }
0x1909   :  { %4679 = vmatprep.subr.bf16.mxu0 %v4678_v8 }
0x190c   :  { %4681 = vmatpush3.bf16.msra.mxu0 %v4678_v8 }
0x190d   :  { %4683 = vmatprep.subr.bf16.mxu0 %v4682_v12 }
0x1910   :  { %4685 = vmatpush3.bf16.msra.mxu0 %v4682_v12 }
0x1911   :  { %4687 = vmatprep.subr.bf16.mxu0 %v4686_v21 }
0x1914   :  { %4689 = vmatpush3.bf16.msra.mxu0 %v4686_v21 }
0x1915   :  { %4691 = vmatprep.subr.bf16.mxu0 %v4690_v13 }
0x1918   :  { %4693 = vmatpush3.bf16.msra.mxu0 %v4690_v13 }
0x1919   :  { %4695 = vmatprep.subr.bf16.mxu0 %v4694_v25 }
0x191c   :  { %4697 = vmatpush3.bf16.msra.mxu0 %v4694_v25 }
0x19d6   :  { %v4591_v28 = vpop.f32.mrb[20].mxu0 }
0x19d7   :  { %v3831_v29 = vadd.f32 %v4591_v28, %v4220_v27  ;;  %v3812_v30 = vpop.f32.mrb[21].mxu0  ;;  %v4223_v28 = vld [vmem:[#allocation13] ss:$0 sm:$0xff] }
0x19d8   :  { %v3830_v31 = vadd.f32 %v4220_v27, %v3812_v30  ;;  %v4698_v27 = vpack.c.bf16 %v4003_v16, %v4002_v26 }
0x19d9   :  { %v3833_v32 = vadd.f32 %v3831_v29, %v5532_v3 }
0x19da   :  { %v3832_v33 = vadd.f32 %v3830_v31, %v5530_v2  ;;  %v3878_v2 = vld [vmem:[%s5816_s16] sm:$0xff]  ;;  %4699 = vmatprep.subr.bf16.mxu0 %v4698_v27 }
0x19db   :  { %v3837_v34 = vsel %vm202_vm0, %v3833_v32, 0.0  ;;  %v4662_v44 = vpack.c.bf16 %v3879_v43, %v3878_v2  ;;  %4701 = vmatpush3.bf16.msra.mxu0 %v4698_v27 }
0x19dc   :  { %3838 = vadd.xlane.f32.xlu0 %v3837_v34  ;;  %v3834_v35 = vsel %vm202_vm0, %v3832_v33, 0.0 }
0x19dd   :  { %3835 = vadd.xlane.f32.xlu1 %v3834_v35  ;;  %4663 = vmatprep.subr.bf16.mxu1 %v4662_v44 }
0x19de   :  { %4665 = vmatpush3.bf16.msra.mxu1 %v4662_v44 }
0x19df   :  { %4667 = vmatprep.subr.bf16.mxu1 %v4666_v48 }
0x19e2   :  { %4669 = vmatpush3.bf16.msra.mxu1 %v4666_v48  ;;  %v4226_v48 = vld [vmem:[#allocation15] ss:$0 sm:$0xff] }
0x1a69   :  { %v3839_v36 = vpop.xlane.xlu0 %3838 }
0x1a6a   :  { %v3841_v37 = vmul.f32 0.03125, %v3839_v36  ;;  %v3836_v38 = vpop.xlane.xlu1 %3835 }
0x1a6b   :  { %v3840_v39 = vmul.f32 0.03125, %v3836_v38 }
0x1a6c   :  { %v3843_v40 = vsub.f32 %v3833_v32, %v3841_v37 }
0x1a6d   :  { %v3842_v41 = vsub.f32 %v3832_v33, %v3840_v39 }
0x1a6e   :  { %v3845_v7 = vmul.f32 %v3843_v40, %v3843_v40 }
0x1a6f   :  { %v3844_v5 = vmul.f32 %v3842_v41, %v3842_v41 }
0x1a70   :  { %v3849_v42 = vsel %vm202_vm0, %v3845_v7, 0.0 }
0x1a71   :  { %3850 = vadd.xlane.f32.xlu1 %v3849_v42  ;;  %v3846_v3 = vsel %vm202_vm0, %v3844_v5, 0.0 }
0x1a72   :  { %3847 = vadd.xlane.f32.xlu0 %v3846_v3 }
0x1afe   :  { %v3851_v49 = vpop.xlane.xlu1 %3850 }
0x1aff   :  { %v3853_v50 = vmul.f32 0.03125, %v3851_v49  ;;  %v3848_v46 = vpop.xlane.xlu0 %3847 }
0x1b00   :  { %v3852_v51 = vmul.f32 0.03125, %v3848_v46 }
0x1b01   :  { %v3855_v52 = vadd.f32 1e-05, %v3853_v50 }
0x1b02   :  { %v3854_v53 = vadd.f32 1e-05, %v3852_v51 }
0x1b03   :  { %4805 = vrsqrt.f32 %v3855_v52 }
0x1b04   :  { %4807 = vrsqrt.f32 %v3854_v53 }
0x1b0d   :  { %v4806_v54 = vpop.eup %4805 }
0x1b0e   :  { %v4808_v56 = vpop.eup %4807  ;;  %v3859_v57 = vmul.f32 %v4806_v54, %v3843_v40 }
0x1b0f   :  { %v3858_v58 = vmul.f32 %v4808_v56, %v3842_v41 }
0x1b10   :  { %v3868_v59 = vmul.f32 %v4221_v55, %v3859_v57 }
0x1b11   :  { %v3867_v61 = vmul.f32 %v4221_v55, %v3858_v58 }
0x1b12   :  { %v5729_v63 = vadd.f32 %v4222_v60, %v3868_v59 }
0x1b13   :  { %v5727_v62 = vadd.f32 %v4222_v60, %v3867_v61 }
0x1b15   :  { %4600 = vmatprep.mubr.msk.f32.mxu1 %vm202_vm0, %v5727_v62 }
0x1b16   :  { %4601 = vmatmul.mubr.msk.f32.vlgmr.msra.gmra.mrb[46].mxu1 %vm202_vm0, %v5729_v63 }
0x1be9   :  { %v4602_v29 = vpop.f32.mrb[46].mxu1 }
0x1bea   :  { %v3967_v30 = vadd.f32 %v4602_v29, %v4223_v28  ;;  %v3961_v31 = vpop.f32.mrb[47].mxu1 }
0x1beb   :  { %v3962_v32 = vadd.f32 %v4223_v28, %v3961_v31 }
0x1bec   :  { %v3971_v33 = vmul.f32 %v3967_v30, %v3967_v30 }
0x1bed   :  { %v3970_v34 = vmul.f32 %v3962_v32, %v3962_v32 }
0x1bee   :  { %v3973_v35 = vmul.f32 %v3971_v33, %v3967_v30 }
0x1bef   :  { %v3972_v36 = vmul.f32 %v3970_v34, %v3962_v32 }
0x1bf0   :  { %v3975_v37 = vmul.f32 0.044715, %v3973_v35 }
0x1bf1   :  { %v3974_v38 = vmul.f32 0.044715, %v3972_v36 }
0x1bf2   :  { %v3977_v39 = vadd.f32 %v3975_v37, %v3967_v30 }
0x1bf3   :  { %v3976_v40 = vadd.f32 %v3974_v38, %v3962_v32 }
0x1bf4   :  { %v3979_v41 = vmul.f32 0.7978846, %v3977_v39 }
0x1bf5   :  { %v3978_v7 = vmul.f32 0.7978846, %v3976_v40 }
0x1bf6   :  { %4809 = vtanh.f32 %v3979_v41 }
0x1bf7   :  { %4811 = vtanh.f32 %v3978_v7 }
0x1c00   :  { %v4810_v5 = vpop.eup %4809 }
0x1c01   :  { %v4812_v42 = vpop.eup %4811  ;;  %v3983_v3 = vadd.f32 1.0, %v4810_v5 }
0x1c02   :  { %v3982_v2 = vadd.f32 1.0, %v4812_v42 }
0x1c03   :  { %v3985_v43 = vmul.f32 0.5, %v3983_v3 }
0x1c04   :  { %v3984_v44 = vmul.f32 0.5, %v3982_v2 }
0x1c05   :  { %v3987_v47 = vmul.f32 %v3985_v43, %v3967_v30 }
0x1c06   :  { %v3986_v45 = vmul.f32 %v3984_v44, %v3962_v32 }
0x1c08   :  { %4635 = vmatprep.mubr.f32.mxu0 %v3986_v45 }
0x1c09   :  { %4636 = vmatmul.mubr.f32.vlgmr.msra.gmra.mrb[28].mxu0 %v3987_v47 }
0x1cdc   :  { %v4637_v49 = vpop.f32.mrb[28].mxu0 }
0x1cdd   :  { %v4083_v50 = vadd.f32 %v4637_v49, %v4226_v48  ;;  %v4077_v46 = vpop.f32.mrb[29].mxu0 }
0x1cde   :  { %v4078_v51 = vadd.f32 %v4226_v48, %v4077_v46 }
0x1cdf   :  { %v4087_v52 = vadd.f32 %v4083_v50, %v5729_v63 }
0x1ce0   :  { %v4086_v53 = vadd.f32 %v4078_v51, %v5727_v62 }
0x1ce1   :  { %v4091_v54 = vsel %vm202_vm0, %v4087_v52, 0.0 }
0x1ce2   :  { %4092 = vadd.xlane.f32.xlu1 %v4091_v54  ;;  %v4088_v55 = vsel %vm202_vm0, %v4086_v53, 0.0 }
0x1ce3   :  { %4089 = vadd.xlane.f32.xlu0 %v4088_v55 }
0x1d6f   :  { %v4093_v56 = vpop.xlane.xlu1 %4092 }
0x1d70   :  { %v4095_v57 = vmul.f32 0.03125, %v4093_v56  ;;  %v4090_v58 = vpop.xlane.xlu0 %4089 }
0x1d71   :  { %v4094_v59 = vmul.f32 0.03125, %v4090_v58 }
0x1d72   :  { %v4097_v60 = vsub.f32 %v4087_v52, %v4095_v57 }
0x1d73   :  { %v4096_v61 = vsub.f32 %v4086_v53, %v4094_v59 }
0x1d74   :  { %v4099_v0 = vmul.f32 %v4097_v60, %v4097_v60 }
0x1d75   :  { %v4098_v1 = vmul.f32 %v4096_v61, %v4096_v61 }
0x1d76   :  { %v4103_v4 = vsel %vm202_vm0, %v4099_v0, 0.0 }
0x1d77   :  { %4104 = vadd.xlane.f32.xlu1 %v4103_v4  ;;  %v4100_v63 = vsel %vm202_vm0, %v4098_v1, 0.0 }
0x1d78   :  { %4101 = vadd.xlane.f32.xlu0 %v4100_v63 }
0x1e04   :  { %v4105_v62 = vpop.xlane.xlu1 %4104 }
0x1e05   :  { %v4107_v6 = vmul.f32 0.03125, %v4105_v62  ;;  %v4102_v9 = vpop.xlane.xlu0 %4101 }
0x1e06   :  { %v4106_v10 = vmul.f32 0.03125, %v4102_v9 }
0x1e07   :  { %v4109_v11 = vadd.f32 1e-05, %v4107_v6 }
0x1e08   :  { %v4108_v14 = vadd.f32 1e-05, %v4106_v10 }
0x1e09   :  { %4813 = vrsqrt.f32 %v4109_v11 }
0x1e0a   :  { %4815 = vrsqrt.f32 %v4108_v14 }
0x1e13   :  { %v4814_v8 = vpop.eup %4813 }
0x1e14   :  { %v4816_v17 = vpop.eup %4815  ;;  %v4113_v12 = vmul.f32 %v4814_v8, %v4097_v60 }
0x1e15   :  { %v4112_v20 = vmul.f32 %v4816_v17, %v4096_v61 }
0x1e16   :  { %v4122_v18 = vmul.f32 %v4227_v15, %v4113_v12 }
0x1e17   :  { %v4121_v21 = vmul.f32 %v4227_v15, %v4112_v20 }
0x1e18   :  { %v4131_v22 = vadd.f32 %v4228_v19, %v4122_v18 }
0x1e19   :  { %v4130_v13 = vadd.f32 %v4228_v19, %v4121_v21 }
0x1e1a   :  { %4133 = vst.msk [vmem:[%s5822_s22 + $0x8] sm:$0xff] %vm202_vm0, %v4131_v22 }
0x1e1b   :  { %4132 = vst.msk [vmem:[%s5822_s22] sm:$0xff] %vm202_vm0, %v4130_v13 }
0x1e1c   :  { %4138 = vsyncpa [#allocation3], 1 }
0x1e1d   :  { %4139 = vsyncpa [#allocation5], 1 }
0x1e1e   :  { %4140 = vsyncpa [#allocation8], 1 }
0x1e1f   :  { %4141 = vsyncpa [#allocation11], 1 }
0x1e20   :  { %4142 = vsyncpa [#allocation14], 1 }
0x1e21   :  { %4143 = vsyncpa [#allocation17], 1 }

</bundles_post_ra>
